<compile_context>
chip_gen: v5e
topology: v5e:2x2
jax: 0.10.0
libtpu: 0.0.40
codegen_flags: <defaults>
</compile_context>

<pallas_src>
import jax
import jax.numpy as jnp
from jax.experimental import pallas as pl
from jax.experimental.pallas import tpu as pltpu

# ----------------------------- model config ---------------------------------
B = 2             # batch
S = 8             # sequence length
H = 32            # hidden size (l_hidden_dim)
NH = 4            # attention heads
DH = H // NH      # head dim
FFN = 64          # feed-forward dim
N_LAYERS = 2      # opts.n_loc_layers
VOCAB = 64
MAX_POS = 16
LOC_OUT_DIM = 16  # opts.loc_out_dim
LN_EPS = 1e-12
DTYPE = jnp.float32


# ----------------------------- fused Pallas kernel ---------------------------
def _layernorm(x, g, b):
    mean = jnp.mean(x, axis=-1, keepdims=True)
    var = jnp.mean((x - mean) ** 2, axis=-1, keepdims=True)
    return (x - mean) * jax.lax.rsqrt(var + LN_EPS) * g + b


def _gelu(x):
    # exact (erf-based) GELU, matching DistilBERT
    return 0.5 * x * (1.0 + jax.lax.erf(x * (1.0 / jnp.sqrt(2.0).astype(jnp.float32))))


def _fused_encoder_kernel(
    emb_ref, mask_ref,                      # activations / mask
    emb_g_ref, emb_b_ref,                   # embedding LayerNorm
    wqkv_ref, bqkv_ref, wo_ref, bo_ref,     # attention (stacked over layers)
    ln1_g_ref, ln1_b_ref,
    w1_ref, b1_ref, w2_ref, b2_ref,         # FFN (stacked over layers)
    ln2_g_ref, ln2_b_ref,
    wout_ref, bout_ref,                     # pooler head
    out_ref,                                # (B, LOC_OUT_DIM)
    ctx_ref,                                # VMEM scratch (B*S, H)
):
    scale = 1.0 / (DH ** 0.5)

    # ---- embeddings LayerNorm ------------------------------------------------
    x = _layernorm(emb_ref[...], emb_g_ref[...], emb_b_ref[...])        # (B*S, H)

    # additive attention-mask bias built in-kernel: 0 keep / -1e9 pad   (B, S)
    bias = (1.0 - mask_ref[...]) * (-1e9)

    # ---- transformer layers (statically unrolled) -----------------------------
    for li in range(N_LAYERS):
        # fused Q/K/V projection: (B*S, H) @ (H, 3H)
        qkv = jnp.dot(x, wqkv_ref[li], preferred_element_type=jnp.float32) + bqkv_ref[li]
        q = qkv[:, 0:H]
        k = qkv[:, H:2 * H]
        v = qkv[:, 2 * H:3 * H]

        # attention: all (batch, head) pairs unrolled inside one kernel body
        for b in range(B):
            bias_b = bias[b:b + 1, :]                                   # (1, S)
            r0, r1 = b * S, (b + 1) * S
            for h in range(NH):
                c0, c1 = h * DH, (h + 1) * DH
                q_bh = q[r0:r1, c0:c1]                                  # (S, DH)
                k_bh = k[r0:r1, c0:c1]
                v_bh = v[r0:r1, c0:c1]
                # q @ k^T via contraction on the last dims (no transpose)
                scores = jax.lax.dot_general(
                    q_bh, k_bh, (((1,), (1,)), ((), ())),
                    preferred_element_type=jnp.float32) * scale + bias_b
                scores = scores - jnp.max(scores, axis=-1, keepdims=True)
                p = jnp.exp(scores)
                p = p * pl.reciprocal(jnp.sum(p, axis=-1, keepdims=True), approx=True)
                ctx_ref[r0:r1, c0:c1] = jnp.dot(
                    p, v_bh, preferred_element_type=jnp.float32)

        # attention output projection + residual + sa_layer_norm
        attn = (jnp.dot(ctx_ref[...], wo_ref[li], preferred_element_type=jnp.float32)
                + bo_ref[li])
        x = _layernorm(x + attn, ln1_g_ref[li], ln1_b_ref[li])

        # FFN + residual + output_layer_norm
        h1 = _gelu(jnp.dot(x, w1_ref[li], preferred_element_type=jnp.float32)
                   + b1_ref[li])
        h2 = jnp.dot(h1, w2_ref[li], preferred_element_type=jnp.float32) + b2_ref[li]
        x = _layernorm(x + h2, ln2_g_ref[li], ln2_b_ref[li])

    # ---- CLS pooling -> ReLU(Dropout) -> Linear --------------------------------
    # dropout(p=0.2) is identity at inference
    for b in range(B):
        cls = jnp.maximum(x[b * S:b * S + 1, :], 0.0)                    # (1, H)
        out_ref[b:b + 1, :] = (
            jnp.dot(cls, wout_ref[...], preferred_element_type=jnp.float32)
            + bout_ref[...]).astype(out_ref.dtype)


# ----------------------------- wrapper ---------------------------------------
def text_location_encoder_forward(params, input_ids, attention_mask):
    # Embedding lookup (gather) stays in JAX; everything else is one fused kernel.
    # TODO(synk): embedding-table gather (jnp.take) has no clean Pallas equivalent
    # at this scale; kept as wrapper-side glue.
    word = jnp.take(params["word_emb"], input_ids, axis=0)               # (B, S, H)
    pos = params["pos_emb"][:S][None, :, :]                              # (1, S, H)
    emb = (word + pos).reshape(B * S, H).astype(DTYPE)
    mask = attention_mask.astype(DTYPE)                                  # (B, S)

    L = N_LAYERS

    def full(shape):
        return pl.BlockSpec(shape, lambda i, _s=shape: (0,) * len(_s))

    in_specs = [
        full((B * S, H)), full((B, S)),
        full((1, H)), full((1, H)),
        full((L, H, 3 * H)), full((L, 1, 3 * H)),
        full((L, H, H)), full((L, 1, H)),
        full((L, 1, H)), full((L, 1, H)),
        full((L, H, FFN)), full((L, 1, FFN)),
        full((L, FFN, H)), full((L, 1, H)),
        full((L, 1, H)), full((L, 1, H)),
        full((H, LOC_OUT_DIM)), full((1, LOC_OUT_DIM)),
    ]

    return pl.pallas_call(
        _fused_encoder_kernel,
        out_shape=jax.ShapeDtypeStruct((B, LOC_OUT_DIM), DTYPE),
        grid=(1,),
        in_specs=in_specs,
        out_specs=pl.BlockSpec((B, LOC_OUT_DIM), lambda i: (0, 0)),
        scratch_shapes=[pltpu.VMEM((B * S, H), jnp.float32)],
        compiler_params=pltpu.CompilerParams(
            dimension_semantics=("arbitrary",)),
    )(
        emb, mask,
        params["emb_ln_g"], params["emb_ln_b"],
        params["wqkv"], params["bqkv"], params["wo"], params["bo"],
        params["ln1_g"], params["ln1_b"],
        params["w1"], params["b1"], params["w2"], params["b2"],
        params["ln2_g"], params["ln2_b"],
        params["w_out"], params["b_out"],
    )


# ----------------------------- deterministic params --------------------------
def init_params(key):
    def nrm(k, shape, scale=0.02):
        return (scale * jax.random.normal(k, shape)).astype(DTYPE)

    keys = jax.random.split(key, 3 + N_LAYERS)
    params = {
        "word_emb": nrm(keys[0], (VOCAB, H)),
        "pos_emb": nrm(keys[1], (MAX_POS, H)),
        "emb_ln_g": jnp.ones((1, H), DTYPE),
        "emb_ln_b": jnp.zeros((1, H), DTYPE),
        "w_out": nrm(keys[2], (H, LOC_OUT_DIM)),
        "b_out": jnp.zeros((1, LOC_OUT_DIM), DTYPE),
    }

    wqkv, bqkv, wo, bo = [], [], [], []
    ln1g, ln1b, w1, b1, w2, b2, ln2g, ln2b = [], [], [], [], [], [], [], []
    for li in range(N_LAYERS):
        lk = jax.random.split(keys[3 + li], 6)
        wq, wk, wv = nrm(lk[0], (H, H)), nrm(lk[1], (H, H)), nrm(lk[2], (H, H))
        wqkv.append(jnp.concatenate([wq, wk, wv], axis=1))   # fused (H, 3H)
        bqkv.append(jnp.zeros((1, 3 * H), DTYPE))
        wo.append(nrm(lk[3], (H, H)))
        bo.append(jnp.zeros((1, H), DTYPE))
        ln1g.append(jnp.ones((1, H), DTYPE))
        ln1b.append(jnp.zeros((1, H), DTYPE))
        w1.append(nrm(lk[4], (H, FFN)))
        b1.append(jnp.zeros((1, FFN), DTYPE))
        w2.append(nrm(lk[5], (FFN, H)))
        b2.append(jnp.zeros((1, H), DTYPE))
        ln2g.append(jnp.ones((1, H), DTYPE))
        ln2b.append(jnp.zeros((1, H), DTYPE))

    params.update({
        "wqkv": jnp.stack(wqkv), "bqkv": jnp.stack(bqkv),
        "wo": jnp.stack(wo), "bo": jnp.stack(bo),
        "ln1_g": jnp.stack(ln1g), "ln1_b": jnp.stack(ln1b),
        "w1": jnp.stack(w1), "b1": jnp.stack(b1),
        "w2": jnp.stack(w2), "b2": jnp.stack(b2),
        "ln2_g": jnp.stack(ln2g), "ln2_b": jnp.stack(ln2b),
    })
    return params


# ----------------------------- main -------------------------------------------
if __name__ == "__main__":
    key = jax.random.PRNGKey(0)
    k_ids, _ = jax.random.split(key)

    input_ids = jax.random.randint(k_ids, (B, S), 0, VOCAB, dtype=jnp.int32)
    # last two tokens of the second example are padding
    attention_mask = jnp.ones((B, S), dtype=jnp.int32).at[1, S - 2:].set(0)

    params = init_params(jax.random.PRNGKey(42))

    fwd = jax.jit(text_location_encoder_forward)
    out = fwd(params, input_ids, attention_mask)
    out = jax.block_until_ready(out)

    assert out.shape == (B, LOC_OUT_DIM)
    assert out.dtype == DTYPE
    assert bool(jnp.all(jnp.isfinite(out)))
    print("KERNEL_OK")
</pallas_src>

<mosaic_0001>
module attributes {stable_mosaic.version = 11 : i64} {
  func.func @_fused_encoder_kernel(%arg0: i32, %arg1: memref<16x32xf32, #tpu.memory_space<vmem>>, %arg2: memref<2x8xf32, #tpu.memory_space<vmem>>, %arg3: memref<1x32xf32, #tpu.memory_space<vmem>>, %arg4: memref<1x32xf32, #tpu.memory_space<vmem>>, %arg5: memref<2x32x96xf32, #tpu.memory_space<vmem>>, %arg6: memref<2x1x96xf32, #tpu.memory_space<vmem>>, %arg7: memref<2x32x32xf32, #tpu.memory_space<vmem>>, %arg8: memref<2x1x32xf32, #tpu.memory_space<vmem>>, %arg9: memref<2x1x32xf32, #tpu.memory_space<vmem>>, %arg10: memref<2x1x32xf32, #tpu.memory_space<vmem>>, %arg11: memref<2x32x64xf32, #tpu.memory_space<vmem>>, %arg12: memref<2x1x64xf32, #tpu.memory_space<vmem>>, %arg13: memref<2x64x32xf32, #tpu.memory_space<vmem>>, %arg14: memref<2x1x32xf32, #tpu.memory_space<vmem>>, %arg15: memref<2x1x32xf32, #tpu.memory_space<vmem>>, %arg16: memref<2x1x32xf32, #tpu.memory_space<vmem>>, %arg17: memref<32x16xf32, #tpu.memory_space<vmem>>, %arg18: memref<1x16xf32, #tpu.memory_space<vmem>>, %arg19: memref<2x16xf32, #tpu.memory_space<vmem>>, %arg20: memref<16x32xf32, #tpu.memory_space<vmem>>) attributes {dimension_semantics = [#tpu.dimension_semantics<arbitrary>], iteration_bounds = array<i64: 1>, scalar_prefetch = 0 : i64, scratch_operands = 1 : i64, tpu.core_type = #tpu.core_type<tc>, window_params = [{pipeline_mode = #tpu.pipeline_mode<synchronous>, transform_indices = @transform_0, window_bounds = array<i64: 16, 32>}, {pipeline_mode = #tpu.pipeline_mode<synchronous>, transform_indices = @transform_1, window_bounds = array<i64: 2, 8>}, {pipeline_mode = #tpu.pipeline_mode<synchronous>, transform_indices = @transform_2, window_bounds = array<i64: 1, 32>}, {pipeline_mode = #tpu.pipeline_mode<synchronous>, transform_indices = @transform_3, window_bounds = array<i64: 1, 32>}, {pipeline_mode = #tpu.pipeline_mode<synchronous>, transform_indices = @transform_4, window_bounds = array<i64: 2, 32, 96>}, {pipeline_mode = #tpu.pipeline_mode<synchronous>, transform_indices = @transform_5, window_bounds = array<i64: 2, 1, 96>}, {pipeline_mode = #tpu.pipeline_mode<synchronous>, transform_indices = @transform_6, window_bounds = array<i64: 2, 32, 32>}, {pipeline_mode = #tpu.pipeline_mode<synchronous>, transform_indices = @transform_7, window_bounds = array<i64: 2, 1, 32>}, {pipeline_mode = #tpu.pipeline_mode<synchronous>, transform_indices = @transform_8, window_bounds = array<i64: 2, 1, 32>}, {pipeline_mode = #tpu.pipeline_mode<synchronous>, transform_indices = @transform_9, window_bounds = array<i64: 2, 1, 32>}, {pipeline_mode = #tpu.pipeline_mode<synchronous>, transform_indices = @transform_10, window_bounds = array<i64: 2, 32, 64>}, {pipeline_mode = #tpu.pipeline_mode<synchronous>, transform_indices = @transform_11, window_bounds = array<i64: 2, 1, 64>}, {pipeline_mode = #tpu.pipeline_mode<synchronous>, transform_indices = @transform_12, window_bounds = array<i64: 2, 64, 32>}, {pipeline_mode = #tpu.pipeline_mode<synchronous>, transform_indices = @transform_13, window_bounds = array<i64: 2, 1, 32>}, {pipeline_mode = #tpu.pipeline_mode<synchronous>, transform_indices = @transform_14, window_bounds = array<i64: 2, 1, 32>}, {pipeline_mode = #tpu.pipeline_mode<synchronous>, transform_indices = @transform_15, window_bounds = array<i64: 2, 1, 32>}, {pipeline_mode = #tpu.pipeline_mode<synchronous>, transform_indices = @transform_16, window_bounds = array<i64: 32, 16>}, {pipeline_mode = #tpu.pipeline_mode<synchronous>, transform_indices = @transform_17, window_bounds = array<i64: 1, 16>}, {pipeline_mode = #tpu.pipeline_mode<synchronous>, transform_indices = @transform_18, window_bounds = array<i64: 2, 16>}]} {
    %c0 = arith.constant 0 : index
    %c0_0 = arith.constant 0 : index
    %0 = vector.load %arg1[%c0, %c0_0] : memref<16x32xf32, #tpu.memory_space<vmem>>, vector<16x32xf32>
    %c0_1 = arith.constant 0 : index
    %c0_2 = arith.constant 0 : index
    %1 = vector.load %arg3[%c0_1, %c0_2] : memref<1x32xf32, #tpu.memory_space<vmem>>, vector<1x32xf32>
    %c0_3 = arith.constant 0 : index
    %c0_4 = arith.constant 0 : index
    %2 = vector.load %arg4[%c0_3, %c0_4] : memref<1x32xf32, #tpu.memory_space<vmem>>, vector<1x32xf32>
    %cst = arith.constant dense<0.000000e+00> : vector<16xf32>
    %3 = vector.multi_reduction <add>, %0, %cst [1] : vector<16x32xf32> to vector<16xf32>
    %4 = vector.shape_cast %3 : vector<16xf32> to vector<16x1xf32>
    %cst_5 = arith.constant 3.200000e+01 : f32
    %5 = vector.broadcast %cst_5 : f32 to vector<16x1xf32>
    %6 = arith.divf %4, %5 : vector<16x1xf32>
    %7 = vector.broadcast %6 : vector<16x1xf32> to vector<16x32xf32>
    %8 = arith.subf %0, %7 : vector<16x32xf32>
    %9 = arith.mulf %8, %8 : vector<16x32xf32>
    %cst_6 = arith.constant dense<0.000000e+00> : vector<16xf32>
    %10 = vector.multi_reduction <add>, %9, %cst_6 [1] : vector<16x32xf32> to vector<16xf32>
    %11 = vector.shape_cast %10 : vector<16xf32> to vector<16x1xf32>
    %cst_7 = arith.constant 3.200000e+01 : f32
    %12 = vector.broadcast %cst_7 : f32 to vector<16x1xf32>
    %13 = arith.divf %11, %12 : vector<16x1xf32>
    %14 = vector.broadcast %6 : vector<16x1xf32> to vector<16x32xf32>
    %15 = arith.subf %0, %14 : vector<16x32xf32>
    %cst_8 = arith.constant 9.99999996E-13 : f32
    %16 = vector.broadcast %cst_8 : f32 to vector<16x1xf32>
    %17 = arith.addf %13, %16 : vector<16x1xf32>
    %18 = math.rsqrt %17 : vector<16x1xf32>
    %19 = vector.broadcast %18 : vector<16x1xf32> to vector<16x32xf32>
    %20 = arith.mulf %15, %19 : vector<16x32xf32>
    %21 = vector.broadcast %1 : vector<1x32xf32> to vector<16x32xf32>
    %22 = arith.mulf %20, %21 : vector<16x32xf32>
    %23 = vector.broadcast %2 : vector<1x32xf32> to vector<16x32xf32>
    %24 = arith.addf %22, %23 : vector<16x32xf32>
    %c0_9 = arith.constant 0 : index
    %c0_10 = arith.constant 0 : index
    %25 = vector.load %arg2[%c0_9, %c0_10] : memref<2x8xf32, #tpu.memory_space<vmem>>, vector<2x8xf32>
    %cst_11 = arith.constant 1.000000e+00 : f32
    %26 = vector.broadcast %cst_11 : f32 to vector<2x8xf32>
    %27 = arith.subf %26, %25 : vector<2x8xf32>
    %cst_12 = arith.constant -1.000000e+09 : f32
    %28 = vector.broadcast %cst_12 : f32 to vector<2x8xf32>
    %29 = arith.mulf %27, %28 : vector<2x8xf32>
    %c0_13 = arith.constant 0 : index
    %c0_14 = arith.constant 0 : index
    %c0_15 = arith.constant 0 : index
    %30 = vector.load %arg5[%c0_13, %c0_14, %c0_15] : memref<2x32x96xf32, #tpu.memory_space<vmem>>, vector<1x32x96xf32>
    %31 = vector.shape_cast %30 : vector<1x32x96xf32> to vector<32x96xf32>
    %cst_16 = arith.constant dense<0.000000e+00> : vector<16x96xf32>
    %32 = tpu.matmul %24, %31, %cst_16 {dimension_numbers = #tpu.dot_dimension_numbers<[1], [0], [0], [1], [0, 0, 1, 1], [], []>} : vector<16x32xf32>, vector<32x96xf32>, vector<16x96xf32> -> vector<16x96xf32>
    %c0_17 = arith.constant 0 : index
    %c0_18 = arith.constant 0 : index
    %c0_19 = arith.constant 0 : index
    %33 = vector.load %arg6[%c0_17, %c0_18, %c0_19] : memref<2x1x96xf32, #tpu.memory_space<vmem>>, vector<1x1x96xf32>
    %34 = vector.shape_cast %33 : vector<1x1x96xf32> to vector<1x96xf32>
    %35 = vector.broadcast %34 : vector<1x96xf32> to vector<16x96xf32>
    %36 = arith.addf %32, %35 : vector<16x96xf32>
    %37 = vector.extract_strided_slice %36 {offsets = [0, 0], sizes = [16, 32], strides = [1, 1]} : vector<16x96xf32> to vector<16x32xf32>
    %38 = vector.extract_strided_slice %36 {offsets = [0, 32], sizes = [16, 32], strides = [1, 1]} : vector<16x96xf32> to vector<16x32xf32>
    %39 = vector.extract_strided_slice %36 {offsets = [0, 64], sizes = [16, 32], strides = [1, 1]} : vector<16x96xf32> to vector<16x32xf32>
    %40 = vector.extract_strided_slice %29 {offsets = [0, 0], sizes = [1, 8], strides = [1, 1]} : vector<2x8xf32> to vector<1x8xf32>
    %41 = vector.extract_strided_slice %37 {offsets = [0, 0], sizes = [8, 8], strides = [1, 1]} : vector<16x32xf32> to vector<8x8xf32>
    %42 = vector.extract_strided_slice %38 {offsets = [0, 0], sizes = [8, 8], strides = [1, 1]} : vector<16x32xf32> to vector<8x8xf32>
    %43 = vector.extract_strided_slice %39 {offsets = [0, 0], sizes = [8, 8], strides = [1, 1]} : vector<16x32xf32> to vector<8x8xf32>
    %cst_20 = arith.constant dense<0.000000e+00> : vector<8x8xf32>
    %44 = tpu.matmul %41, %42, %cst_20 {dimension_numbers = #tpu.dot_dimension_numbers<[1], [1], [0], [0], [0, 0, 1, 0], [], []>} : vector<8x8xf32>, vector<8x8xf32>, vector<8x8xf32> -> vector<8x8xf32>
    %cst_21 = arith.constant 0.353553385 : f32
    %45 = vector.broadcast %cst_21 : f32 to vector<8x8xf32>
    %46 = arith.mulf %44, %45 : vector<8x8xf32>
    %47 = vector.broadcast %40 : vector<1x8xf32> to vector<8x8xf32>
    %48 = arith.addf %46, %47 : vector<8x8xf32>
    %cst_22 = arith.constant dense<0xFF800000> : vector<8xf32>
    %49 = vector.multi_reduction <maximumf>, %48, %cst_22 [1] : vector<8x8xf32> to vector<8xf32>
    %50 = vector.shape_cast %49 : vector<8xf32> to vector<8x1xf32>
    %51 = vector.broadcast %50 : vector<8x1xf32> to vector<8x8xf32>
    %52 = arith.subf %48, %51 : vector<8x8xf32>
    %53 = math.exp %52 : vector<8x8xf32>
    %cst_23 = arith.constant dense<0.000000e+00> : vector<8xf32>
    %54 = vector.multi_reduction <add>, %53, %cst_23 [1] : vector<8x8xf32> to vector<8xf32>
    %55 = vector.shape_cast %54 : vector<8xf32> to vector<8x1xf32>
    %56 = tpu.reciprocal %55 {approx = true} : vector<8x1xf32> -> vector<8x1xf32>
    %57 = vector.broadcast %56 : vector<8x1xf32> to vector<8x8xf32>
    %58 = arith.mulf %53, %57 : vector<8x8xf32>
    %cst_24 = arith.constant dense<0.000000e+00> : vector<8x8xf32>
    %59 = tpu.matmul %58, %43, %cst_24 {dimension_numbers = #tpu.dot_dimension_numbers<[1], [0], [0], [1], [0, 0, 1, 1], [], []>} : vector<8x8xf32>, vector<8x8xf32>, vector<8x8xf32> -> vector<8x8xf32>
    %c0_25 = arith.constant 0 : index
    %c0_26 = arith.constant 0 : index
    %60 = vector.load %arg20[%c0_25, %c0_26] : memref<16x32xf32, #tpu.memory_space<vmem>>, vector<8x8xf32>
    tpu.vector_store %arg20[%c0_25, %c0_26], %59 {strides = array<i32>} : memref<16x32xf32, #tpu.memory_space<vmem>>, vector<8x8xf32>,
    %61 = vector.extract_strided_slice %37 {offsets = [0, 8], sizes = [8, 8], strides = [1, 1]} : vector<16x32xf32> to vector<8x8xf32>
    %62 = vector.extract_strided_slice %38 {offsets = [0, 8], sizes = [8, 8], strides = [1, 1]} : vector<16x32xf32> to vector<8x8xf32>
    %63 = vector.extract_strided_slice %39 {offsets = [0, 8], sizes = [8, 8], strides = [1, 1]} : vector<16x32xf32> to vector<8x8xf32>
    %cst_27 = arith.constant dense<0.000000e+00> : vector<8x8xf32>
    %64 = tpu.matmul %61, %62, %cst_27 {dimension_numbers = #tpu.dot_dimension_numbers<[1], [1], [0], [0], [0, 0, 1, 0], [], []>} : vector<8x8xf32>, vector<8x8xf32>, vector<8x8xf32> -> vector<8x8xf32>
    %cst_28 = arith.constant 0.353553385 : f32
    %65 = vector.broadcast %cst_28 : f32 to vector<8x8xf32>
    %66 = arith.mulf %64, %65 : vector<8x8xf32>
    %67 = vector.broadcast %40 : vector<1x8xf32> to vector<8x8xf32>
    %68 = arith.addf %66, %67 : vector<8x8xf32>
    %cst_29 = arith.constant dense<0xFF800000> : vector<8xf32>
    %69 = vector.multi_reduction <maximumf>, %68, %cst_29 [1] : vector<8x8xf32> to vector<8xf32>
    %70 = vector.shape_cast %69 : vector<8xf32> to vector<8x1xf32>
    %71 = vector.broadcast %70 : vector<8x1xf32> to vector<8x8xf32>
    %72 = arith.subf %68, %71 : vector<8x8xf32>
    %73 = math.exp %72 : vector<8x8xf32>
    %cst_30 = arith.constant dense<0.000000e+00> : vector<8xf32>
    %74 = vector.multi_reduction <add>, %73, %cst_30 [1] : vector<8x8xf32> to vector<8xf32>
    %75 = vector.shape_cast %74 : vector<8xf32> to vector<8x1xf32>
    %76 = tpu.reciprocal %75 {approx = true} : vector<8x1xf32> -> vector<8x1xf32>
    %77 = vector.broadcast %76 : vector<8x1xf32> to vector<8x8xf32>
    %78 = arith.mulf %73, %77 : vector<8x8xf32>
    %cst_31 = arith.constant dense<0.000000e+00> : vector<8x8xf32>
    %79 = tpu.matmul %78, %63, %cst_31 {dimension_numbers = #tpu.dot_dimension_numbers<[1], [0], [0], [1], [0, 0, 1, 1], [], []>} : vector<8x8xf32>, vector<8x8xf32>, vector<8x8xf32> -> vector<8x8xf32>
    %c0_32 = arith.constant 0 : index
    %c8 = arith.constant 8 : index
    %80 = vector.load %arg20[%c0_32, %c8] : memref<16x32xf32, #tpu.memory_space<vmem>>, vector<8x8xf32>
    tpu.vector_store %arg20[%c0_32, %c8], %79 {strides = array<i32>} : memref<16x32xf32, #tpu.memory_space<vmem>>, vector<8x8xf32>,
    %81 = vector.extract_strided_slice %37 {offsets = [0, 16], sizes = [8, 8], strides = [1, 1]} : vector<16x32xf32> to vector<8x8xf32>
    %82 = vector.extract_strided_slice %38 {offsets = [0, 16], sizes = [8, 8], strides = [1, 1]} : vector<16x32xf32> to vector<8x8xf32>
    %83 = vector.extract_strided_slice %39 {offsets = [0, 16], sizes = [8, 8], strides = [1, 1]} : vector<16x32xf32> to vector<8x8xf32>
    %cst_33 = arith.constant dense<0.000000e+00> : vector<8x8xf32>
    %84 = tpu.matmul %81, %82, %cst_33 {dimension_numbers = #tpu.dot_dimension_numbers<[1], [1], [0], [0], [0, 0, 1, 0], [], []>} : vector<8x8xf32>, vector<8x8xf32>, vector<8x8xf32> -> vector<8x8xf32>
    %cst_34 = arith.constant 0.353553385 : f32
    %85 = vector.broadcast %cst_34 : f32 to vector<8x8xf32>
    %86 = arith.mulf %84, %85 : vector<8x8xf32>
    %87 = vector.broadcast %40 : vector<1x8xf32> to vector<8x8xf32>
    %88 = arith.addf %86, %87 : vector<8x8xf32>
    %cst_35 = arith.constant dense<0xFF800000> : vector<8xf32>
    %89 = vector.multi_reduction <maximumf>, %88, %cst_35 [1] : vector<8x8xf32> to vector<8xf32>
    %90 = vector.shape_cast %89 : vector<8xf32> to vector<8x1xf32>
    %91 = vector.broadcast %90 : vector<8x1xf32> to vector<8x8xf32>
    %92 = arith.subf %88, %91 : vector<8x8xf32>
    %93 = math.exp %92 : vector<8x8xf32>
    %cst_36 = arith.constant dense<0.000000e+00> : vector<8xf32>
    %94 = vector.multi_reduction <add>, %93, %cst_36 [1] : vector<8x8xf32> to vector<8xf32>
    %95 = vector.shape_cast %94 : vector<8xf32> to vector<8x1xf32>
    %96 = tpu.reciprocal %95 {approx = true} : vector<8x1xf32> -> vector<8x1xf32>
    %97 = vector.broadcast %96 : vector<8x1xf32> to vector<8x8xf32>
    %98 = arith.mulf %93, %97 : vector<8x8xf32>
    %cst_37 = arith.constant dense<0.000000e+00> : vector<8x8xf32>
    %99 = tpu.matmul %98, %83, %cst_37 {dimension_numbers = #tpu.dot_dimension_numbers<[1], [0], [0], [1], [0, 0, 1, 1], [], []>} : vector<8x8xf32>, vector<8x8xf32>, vector<8x8xf32> -> vector<8x8xf32>
    %c0_38 = arith.constant 0 : index
    %c16 = arith.constant 16 : index
    %100 = vector.load %arg20[%c0_38, %c16] : memref<16x32xf32, #tpu.memory_space<vmem>>, vector<8x8xf32>
    tpu.vector_store %arg20[%c0_38, %c16], %99 {strides = array<i32>} : memref<16x32xf32, #tpu.memory_space<vmem>>, vector<8x8xf32>,
    %101 = vector.extract_strided_slice %37 {offsets = [0, 24], sizes = [8, 8], strides = [1, 1]} : vector<16x32xf32> to vector<8x8xf32>
    %102 = vector.extract_strided_slice %38 {offsets = [0, 24], sizes = [8, 8], strides = [1, 1]} : vector<16x32xf32> to vector<8x8xf32>
    %103 = vector.extract_strided_slice %39 {offsets = [0, 24], sizes = [8, 8], strides = [1, 1]} : vector<16x32xf32> to vector<8x8xf32>
    %cst_39 = arith.constant dense<0.000000e+00> : vector<8x8xf32>
    %104 = tpu.matmul %101, %102, %cst_39 {dimension_numbers = #tpu.dot_dimension_numbers<[1], [1], [0], [0], [0, 0, 1, 0], [], []>} : vector<8x8xf32>, vector<8x8xf32>, vector<8x8xf32> -> vector<8x8xf32>
    %cst_40 = arith.constant 0.353553385 : f32
    %105 = vector.broadcast %cst_40 : f32 to vector<8x8xf32>
    %106 = arith.mulf %104, %105 : vector<8x8xf32>
    %107 = vector.broadcast %40 : vector<1x8xf32> to vector<8x8xf32>
    %108 = arith.addf %106, %107 : vector<8x8xf32>
    %cst_41 = arith.constant dense<0xFF800000> : vector<8xf32>
    %109 = vector.multi_reduction <maximumf>, %108, %cst_41 [1] : vector<8x8xf32> to vector<8xf32>
    %110 = vector.shape_cast %109 : vector<8xf32> to vector<8x1xf32>
    %111 = vector.broadcast %110 : vector<8x1xf32> to vector<8x8xf32>
    %112 = arith.subf %108, %111 : vector<8x8xf32>
    %113 = math.exp %112 : vector<8x8xf32>
    %cst_42 = arith.constant dense<0.000000e+00> : vector<8xf32>
    %114 = vector.multi_reduction <add>, %113, %cst_42 [1] : vector<8x8xf32> to vector<8xf32>
    %115 = vector.shape_cast %114 : vector<8xf32> to vector<8x1xf32>
    %116 = tpu.reciprocal %115 {approx = true} : vector<8x1xf32> -> vector<8x1xf32>
    %117 = vector.broadcast %116 : vector<8x1xf32> to vector<8x8xf32>
    %118 = arith.mulf %113, %117 : vector<8x8xf32>
    %cst_43 = arith.constant dense<0.000000e+00> : vector<8x8xf32>
    %119 = tpu.matmul %118, %103, %cst_43 {dimension_numbers = #tpu.dot_dimension_numbers<[1], [0], [0], [1], [0, 0, 1, 1], [], []>} : vector<8x8xf32>, vector<8x8xf32>, vector<8x8xf32> -> vector<8x8xf32>
    %c0_44 = arith.constant 0 : index
    %c24 = arith.constant 24 : index
    %120 = vector.load %arg20[%c0_44, %c24] : memref<16x32xf32, #tpu.memory_space<vmem>>, vector<8x8xf32>
    tpu.vector_store %arg20[%c0_44, %c24], %119 {strides = array<i32>} : memref<16x32xf32, #tpu.memory_space<vmem>>, vector<8x8xf32>,
    %121 = vector.extract_strided_slice %29 {offsets = [1, 0], sizes = [1, 8], strides = [1, 1]} : vector<2x8xf32> to vector<1x8xf32>
    %122 = vector.extract_strided_slice %37 {offsets = [8, 0], sizes = [8, 8], strides = [1, 1]} : vector<16x32xf32> to vector<8x8xf32>
    %123 = vector.extract_strided_slice %38 {offsets = [8, 0], sizes = [8, 8], strides = [1, 1]} : vector<16x32xf32> to vector<8x8xf32>
    %124 = vector.extract_strided_slice %39 {offsets = [8, 0], sizes = [8, 8], strides = [1, 1]} : vector<16x32xf32> to vector<8x8xf32>
    %cst_45 = arith.constant dense<0.000000e+00> : vector<8x8xf32>
    %125 = tpu.matmul %122, %123, %cst_45 {dimension_numbers = #tpu.dot_dimension_numbers<[1], [1], [0], [0], [0, 0, 1, 0], [], []>} : vector<8x8xf32>, vector<8x8xf32>, vector<8x8xf32> -> vector<8x8xf32>
    %cst_46 = arith.constant 0.353553385 : f32
    %126 = vector.broadcast %cst_46 : f32 to vector<8x8xf32>
    %127 = arith.mulf %125, %126 : vector<8x8xf32>
    %128 = vector.broadcast %121 : vector<1x8xf32> to vector<8x8xf32>
    %129 = arith.addf %127, %128 : vector<8x8xf32>
    %cst_47 = arith.constant dense<0xFF800000> : vector<8xf32>
    %130 = vector.multi_reduction <maximumf>, %129, %cst_47 [1] : vector<8x8xf32> to vector<8xf32>
    %131 = vector.shape_cast %130 : vector<8xf32> to vector<8x1xf32>
    %132 = vector.broadcast %131 : vector<8x1xf32> to vector<8x8xf32>
    %133 = arith.subf %129, %132 : vector<8x8xf32>
    %134 = math.exp %133 : vector<8x8xf32>
    %cst_48 = arith.constant dense<0.000000e+00> : vector<8xf32>
    %135 = vector.multi_reduction <add>, %134, %cst_48 [1] : vector<8x8xf32> to vector<8xf32>
    %136 = vector.shape_cast %135 : vector<8xf32> to vector<8x1xf32>
    %137 = tpu.reciprocal %136 {approx = true} : vector<8x1xf32> -> vector<8x1xf32>
    %138 = vector.broadcast %137 : vector<8x1xf32> to vector<8x8xf32>
    %139 = arith.mulf %134, %138 : vector<8x8xf32>
    %cst_49 = arith.constant dense<0.000000e+00> : vector<8x8xf32>
    %140 = tpu.matmul %139, %124, %cst_49 {dimension_numbers = #tpu.dot_dimension_numbers<[1], [0], [0], [1], [0, 0, 1, 1], [], []>} : vector<8x8xf32>, vector<8x8xf32>, vector<8x8xf32> -> vector<8x8xf32>
    %c8_50 = arith.constant 8 : index
    %c0_51 = arith.constant 0 : index
    %141 = vector.load %arg20[%c8_50, %c0_51] : memref<16x32xf32, #tpu.memory_space<vmem>>, vector<8x8xf32>
    tpu.vector_store %arg20[%c8_50, %c0_51], %140 {strides = array<i32>} : memref<16x32xf32, #tpu.memory_space<vmem>>, vector<8x8xf32>,
    %142 = vector.extract_strided_slice %37 {offsets = [8, 8], sizes = [8, 8], strides = [1, 1]} : vector<16x32xf32> to vector<8x8xf32>
    %143 = vector.extract_strided_slice %38 {offsets = [8, 8], sizes = [8, 8], strides = [1, 1]} : vector<16x32xf32> to vector<8x8xf32>
    %144 = vector.extract_strided_slice %39 {offsets = [8, 8], sizes = [8, 8], strides = [1, 1]} : vector<16x32xf32> to vector<8x8xf32>
    %cst_52 = arith.constant dense<0.000000e+00> : vector<8x8xf32>
    %145 = tpu.matmul %142, %143, %cst_52 {dimension_numbers = #tpu.dot_dimension_numbers<[1], [1], [0], [0], [0, 0, 1, 0], [], []>} : vector<8x8xf32>, vector<8x8xf32>, vector<8x8xf32> -> vector<8x8xf32>
    %cst_53 = arith.constant 0.353553385 : f32
    %146 = vector.broadcast %cst_53 : f32 to vector<8x8xf32>
    %147 = arith.mulf %145, %146 : vector<8x8xf32>
    %148 = vector.broadcast %121 : vector<1x8xf32> to vector<8x8xf32>
    %149 = arith.addf %147, %148 : vector<8x8xf32>
    %cst_54 = arith.constant dense<0xFF800000> : vector<8xf32>
    %150 = vector.multi_reduction <maximumf>, %149, %cst_54 [1] : vector<8x8xf32> to vector<8xf32>
    %151 = vector.shape_cast %150 : vector<8xf32> to vector<8x1xf32>
    %152 = vector.broadcast %151 : vector<8x1xf32> to vector<8x8xf32>
    %153 = arith.subf %149, %152 : vector<8x8xf32>
    %154 = math.exp %153 : vector<8x8xf32>
    %cst_55 = arith.constant dense<0.000000e+00> : vector<8xf32>
    %155 = vector.multi_reduction <add>, %154, %cst_55 [1] : vector<8x8xf32> to vector<8xf32>
    %156 = vector.shape_cast %155 : vector<8xf32> to vector<8x1xf32>
    %157 = tpu.reciprocal %156 {approx = true} : vector<8x1xf32> -> vector<8x1xf32>
    %158 = vector.broadcast %157 : vector<8x1xf32> to vector<8x8xf32>
    %159 = arith.mulf %154, %158 : vector<8x8xf32>
    %cst_56 = arith.constant dense<0.000000e+00> : vector<8x8xf32>
    %160 = tpu.matmul %159, %144, %cst_56 {dimension_numbers = #tpu.dot_dimension_numbers<[1], [0], [0], [1], [0, 0, 1, 1], [], []>} : vector<8x8xf32>, vector<8x8xf32>, vector<8x8xf32> -> vector<8x8xf32>
    %c8_57 = arith.constant 8 : index
    %c8_58 = arith.constant 8 : index
    %161 = vector.load %arg20[%c8_57, %c8_58] : memref<16x32xf32, #tpu.memory_space<vmem>>, vector<8x8xf32>
    tpu.vector_store %arg20[%c8_57, %c8_58], %160 {strides = array<i32>} : memref<16x32xf32, #tpu.memory_space<vmem>>, vector<8x8xf32>,
    %162 = vector.extract_strided_slice %37 {offsets = [8, 16], sizes = [8, 8], strides = [1, 1]} : vector<16x32xf32> to vector<8x8xf32>
    %163 = vector.extract_strided_slice %38 {offsets = [8, 16], sizes = [8, 8], strides = [1, 1]} : vector<16x32xf32> to vector<8x8xf32>
    %164 = vector.extract_strided_slice %39 {offsets = [8, 16], sizes = [8, 8], strides = [1, 1]} : vector<16x32xf32> to vector<8x8xf32>
    %cst_59 = arith.constant dense<0.000000e+00> : vector<8x8xf32>
    %165 = tpu.matmul %162, %163, %cst_59 {dimension_numbers = #tpu.dot_dimension_numbers<[1], [1], [0], [0], [0, 0, 1, 0], [], []>} : vector<8x8xf32>, vector<8x8xf32>, vector<8x8xf32> -> vector<8x8xf32>
    %cst_60 = arith.constant 0.353553385 : f32
    %166 = vector.broadcast %cst_60 : f32 to vector<8x8xf32>
    %167 = arith.mulf %165, %166 : vector<8x8xf32>
    %168 = vector.broadcast %121 : vector<1x8xf32> to vector<8x8xf32>
    %169 = arith.addf %167, %168 : vector<8x8xf32>
    %cst_61 = arith.constant dense<0xFF800000> : vector<8xf32>
    %170 = vector.multi_reduction <maximumf>, %169, %cst_61 [1] : vector<8x8xf32> to vector<8xf32>
    %171 = vector.shape_cast %170 : vector<8xf32> to vector<8x1xf32>
    %172 = vector.broadcast %171 : vector<8x1xf32> to vector<8x8xf32>
    %173 = arith.subf %169, %172 : vector<8x8xf32>
    %174 = math.exp %173 : vector<8x8xf32>
    %cst_62 = arith.constant dense<0.000000e+00> : vector<8xf32>
    %175 = vector.multi_reduction <add>, %174, %cst_62 [1] : vector<8x8xf32> to vector<8xf32>
    %176 = vector.shape_cast %175 : vector<8xf32> to vector<8x1xf32>
    %177 = tpu.reciprocal %176 {approx = true} : vector<8x1xf32> -> vector<8x1xf32>
    %178 = vector.broadcast %177 : vector<8x1xf32> to vector<8x8xf32>
    %179 = arith.mulf %174, %178 : vector<8x8xf32>
    %cst_63 = arith.constant dense<0.000000e+00> : vector<8x8xf32>
    %180 = tpu.matmul %179, %164, %cst_63 {dimension_numbers = #tpu.dot_dimension_numbers<[1], [0], [0], [1], [0, 0, 1, 1], [], []>} : vector<8x8xf32>, vector<8x8xf32>, vector<8x8xf32> -> vector<8x8xf32>
    %c8_64 = arith.constant 8 : index
    %c16_65 = arith.constant 16 : index
    %181 = vector.load %arg20[%c8_64, %c16_65] : memref<16x32xf32, #tpu.memory_space<vmem>>, vector<8x8xf32>
    tpu.vector_store %arg20[%c8_64, %c16_65], %180 {strides = array<i32>} : memref<16x32xf32, #tpu.memory_space<vmem>>, vector<8x8xf32>,
    %182 = vector.extract_strided_slice %37 {offsets = [8, 24], sizes = [8, 8], strides = [1, 1]} : vector<16x32xf32> to vector<8x8xf32>
    %183 = vector.extract_strided_slice %38 {offsets = [8, 24], sizes = [8, 8], strides = [1, 1]} : vector<16x32xf32> to vector<8x8xf32>
    %184 = vector.extract_strided_slice %39 {offsets = [8, 24], sizes = [8, 8], strides = [1, 1]} : vector<16x32xf32> to vector<8x8xf32>
    %cst_66 = arith.constant dense<0.000000e+00> : vector<8x8xf32>
    %185 = tpu.matmul %182, %183, %cst_66 {dimension_numbers = #tpu.dot_dimension_numbers<[1], [1], [0], [0], [0, 0, 1, 0], [], []>} : vector<8x8xf32>, vector<8x8xf32>, vector<8x8xf32> -> vector<8x8xf32>
    %cst_67 = arith.constant 0.353553385 : f32
    %186 = vector.broadcast %cst_67 : f32 to vector<8x8xf32>
    %187 = arith.mulf %185, %186 : vector<8x8xf32>
    %188 = vector.broadcast %121 : vector<1x8xf32> to vector<8x8xf32>
    %189 = arith.addf %187, %188 : vector<8x8xf32>
    %cst_68 = arith.constant dense<0xFF800000> : vector<8xf32>
    %190 = vector.multi_reduction <maximumf>, %189, %cst_68 [1] : vector<8x8xf32> to vector<8xf32>
    %191 = vector.shape_cast %190 : vector<8xf32> to vector<8x1xf32>
    %192 = vector.broadcast %191 : vector<8x1xf32> to vector<8x8xf32>
    %193 = arith.subf %189, %192 : vector<8x8xf32>
    %194 = math.exp %193 : vector<8x8xf32>
    %cst_69 = arith.constant dense<0.000000e+00> : vector<8xf32>
    %195 = vector.multi_reduction <add>, %194, %cst_69 [1] : vector<8x8xf32> to vector<8xf32>
    %196 = vector.shape_cast %195 : vector<8xf32> to vector<8x1xf32>
    %197 = tpu.reciprocal %196 {approx = true} : vector<8x1xf32> -> vector<8x1xf32>
    %198 = vector.broadcast %197 : vector<8x1xf32> to vector<8x8xf32>
    %199 = arith.mulf %194, %198 : vector<8x8xf32>
    %cst_70 = arith.constant dense<0.000000e+00> : vector<8x8xf32>
    %200 = tpu.matmul %199, %184, %cst_70 {dimension_numbers = #tpu.dot_dimension_numbers<[1], [0], [0], [1], [0, 0, 1, 1], [], []>} : vector<8x8xf32>, vector<8x8xf32>, vector<8x8xf32> -> vector<8x8xf32>
    %c8_71 = arith.constant 8 : index
    %c24_72 = arith.constant 24 : index
    %201 = vector.load %arg20[%c8_71, %c24_72] : memref<16x32xf32, #tpu.memory_space<vmem>>, vector<8x8xf32>
    tpu.vector_store %arg20[%c8_71, %c24_72], %200 {strides = array<i32>} : memref<16x32xf32, #tpu.memory_space<vmem>>, vector<8x8xf32>,
    %c0_73 = arith.constant 0 : index
    %c0_74 = arith.constant 0 : index
    %202 = vector.load %arg20[%c0_73, %c0_74] : memref<16x32xf32, #tpu.memory_space<vmem>>, vector<16x32xf32>
    %c0_75 = arith.constant 0 : index
    %c0_76 = arith.constant 0 : index
    %c0_77 = arith.constant 0 : index
    %203 = vector.load %arg7[%c0_75, %c0_76, %c0_77] : memref<2x32x32xf32, #tpu.memory_space<vmem>>, vector<1x32x32xf32>
    %204 = vector.shape_cast %203 : vector<1x32x32xf32> to vector<32x32xf32>
    %cst_78 = arith.constant dense<0.000000e+00> : vector<16x32xf32>
    %205 = tpu.matmul %202, %204, %cst_78 {dimension_numbers = #tpu.dot_dimension_numbers<[1], [0], [0], [1], [0, 0, 1, 1], [], []>} : vector<16x32xf32>, vector<32x32xf32>, vector<16x32xf32> -> vector<16x32xf32>
    %c0_79 = arith.constant 0 : index
    %c0_80 = arith.constant 0 : index
    %c0_81 = arith.constant 0 : index
    %206 = vector.load %arg8[%c0_79, %c0_80, %c0_81] : memref<2x1x32xf32, #tpu.memory_space<vmem>>, vector<1x1x32xf32>
    %207 = vector.shape_cast %206 : vector<1x1x32xf32> to vector<1x32xf32>
    %208 = vector.broadcast %207 : vector<1x32xf32> to vector<16x32xf32>
    %209 = arith.addf %205, %208 : vector<16x32xf32>
    %210 = arith.addf %24, %209 : vector<16x32xf32>
    %c0_82 = arith.constant 0 : index
    %c0_83 = arith.constant 0 : index
    %c0_84 = arith.constant 0 : index
    %211 = vector.load %arg9[%c0_82, %c0_83, %c0_84] : memref<2x1x32xf32, #tpu.memory_space<vmem>>, vector<1x1x32xf32>
    %212 = vector.shape_cast %211 : vector<1x1x32xf32> to vector<1x32xf32>
    %c0_85 = arith.constant 0 : index
    %c0_86 = arith.constant 0 : index
    %c0_87 = arith.constant 0 : index
    %213 = vector.load %arg10[%c0_85, %c0_86, %c0_87] : memref<2x1x32xf32, #tpu.memory_space<vmem>>, vector<1x1x32xf32>
    %214 = vector.shape_cast %213 : vector<1x1x32xf32> to vector<1x32xf32>
    %cst_88 = arith.constant dense<0.000000e+00> : vector<16xf32>
    %215 = vector.multi_reduction <add>, %210, %cst_88 [1] : vector<16x32xf32> to vector<16xf32>
    %216 = vector.shape_cast %215 : vector<16xf32> to vector<16x1xf32>
    %cst_89 = arith.constant 3.200000e+01 : f32
    %217 = vector.broadcast %cst_89 : f32 to vector<16x1xf32>
    %218 = arith.divf %216, %217 : vector<16x1xf32>
    %219 = vector.broadcast %218 : vector<16x1xf32> to vector<16x32xf32>
    %220 = arith.subf %210, %219 : vector<16x32xf32>
    %221 = arith.mulf %220, %220 : vector<16x32xf32>
    %cst_90 = arith.constant dense<0.000000e+00> : vector<16xf32>
    %222 = vector.multi_reduction <add>, %221, %cst_90 [1] : vector<16x32xf32> to vector<16xf32>
    %223 = vector.shape_cast %222 : vector<16xf32> to vector<16x1xf32>
    %cst_91 = arith.constant 3.200000e+01 : f32
    %224 = vector.broadcast %cst_91 : f32 to vector<16x1xf32>
    %225 = arith.divf %223, %224 : vector<16x1xf32>
    %226 = vector.broadcast %218 : vector<16x1xf32> to vector<16x32xf32>
    %227 = arith.subf %210, %226 : vector<16x32xf32>
    %cst_92 = arith.constant 9.99999996E-13 : f32
    %228 = vector.broadcast %cst_92 : f32 to vector<16x1xf32>
    %229 = arith.addf %225, %228 : vector<16x1xf32>
    %230 = math.rsqrt %229 : vector<16x1xf32>
    %231 = vector.broadcast %230 : vector<16x1xf32> to vector<16x32xf32>
    %232 = arith.mulf %227, %231 : vector<16x32xf32>
    %233 = vector.broadcast %212 : vector<1x32xf32> to vector<16x32xf32>
    %234 = arith.mulf %232, %233 : vector<16x32xf32>
    %235 = vector.broadcast %214 : vector<1x32xf32> to vector<16x32xf32>
    %236 = arith.addf %234, %235 : vector<16x32xf32>
    %c0_93 = arith.constant 0 : index
    %c0_94 = arith.constant 0 : index
    %c0_95 = arith.constant 0 : index
    %237 = vector.load %arg11[%c0_93, %c0_94, %c0_95] : memref<2x32x64xf32, #tpu.memory_space<vmem>>, vector<1x32x64xf32>
    %238 = vector.shape_cast %237 : vector<1x32x64xf32> to vector<32x64xf32>
    %cst_96 = arith.constant dense<0.000000e+00> : vector<16x64xf32>
    %239 = tpu.matmul %236, %238, %cst_96 {dimension_numbers = #tpu.dot_dimension_numbers<[1], [0], [0], [1], [0, 0, 1, 1], [], []>} : vector<16x32xf32>, vector<32x64xf32>, vector<16x64xf32> -> vector<16x64xf32>
    %c0_97 = arith.constant 0 : index
    %c0_98 = arith.constant 0 : index
    %c0_99 = arith.constant 0 : index
    %240 = vector.load %arg12[%c0_97, %c0_98, %c0_99] : memref<2x1x64xf32, #tpu.memory_space<vmem>>, vector<1x1x64xf32>
    %241 = vector.shape_cast %240 : vector<1x1x64xf32> to vector<1x64xf32>
    %242 = vector.broadcast %241 : vector<1x64xf32> to vector<16x64xf32>
    %243 = arith.addf %239, %242 : vector<16x64xf32>
    %cst_100 = arith.constant 5.000000e-01 : f32
    %244 = vector.broadcast %cst_100 : f32 to vector<16x64xf32>
    %245 = arith.mulf %244, %243 : vector<16x64xf32>
    %cst_101 = arith.constant 2.000000e+00 : f32
    %246 = math.sqrt %cst_101 : f32
    %cst_102 = arith.constant 1.000000e+00 : f32
    %247 = arith.divf %cst_102, %246 : f32
    %248 = vector.broadcast %247 : f32 to vector<16x64xf32>
    %249 = arith.mulf %243, %248 : vector<16x64xf32>
    %250 = math.erf %249 : vector<16x64xf32>
    %cst_103 = arith.constant 1.000000e+00 : f32
    %251 = vector.broadcast %cst_103 : f32 to vector<16x64xf32>
    %252 = arith.addf %251, %250 : vector<16x64xf32>
    %253 = arith.mulf %245, %252 : vector<16x64xf32>
    %c0_104 = arith.constant 0 : index
    %c0_105 = arith.constant 0 : index
    %c0_106 = arith.constant 0 : index
    %254 = vector.load %arg13[%c0_104, %c0_105, %c0_106] : memref<2x64x32xf32, #tpu.memory_space<vmem>>, vector<1x64x32xf32>
    %255 = vector.shape_cast %254 : vector<1x64x32xf32> to vector<64x32xf32>
    %cst_107 = arith.constant dense<0.000000e+00> : vector<16x32xf32>
    %256 = tpu.matmul %253, %255, %cst_107 {dimension_numbers = #tpu.dot_dimension_numbers<[1], [0], [0], [1], [0, 0, 1, 1], [], []>} : vector<16x64xf32>, vector<64x32xf32>, vector<16x32xf32> -> vector<16x32xf32>
    %c0_108 = arith.constant 0 : index
    %c0_109 = arith.constant 0 : index
    %c0_110 = arith.constant 0 : index
    %257 = vector.load %arg14[%c0_108, %c0_109, %c0_110] : memref<2x1x32xf32, #tpu.memory_space<vmem>>, vector<1x1x32xf32>
    %258 = vector.shape_cast %257 : vector<1x1x32xf32> to vector<1x32xf32>
    %259 = vector.broadcast %258 : vector<1x32xf32> to vector<16x32xf32>
    %260 = arith.addf %256, %259 : vector<16x32xf32>
    %261 = arith.addf %236, %260 : vector<16x32xf32>
    %c0_111 = arith.constant 0 : index
    %c0_112 = arith.constant 0 : index
    %c0_113 = arith.constant 0 : index
    %262 = vector.load %arg15[%c0_111, %c0_112, %c0_113] : memref<2x1x32xf32, #tpu.memory_space<vmem>>, vector<1x1x32xf32>
    %263 = vector.shape_cast %262 : vector<1x1x32xf32> to vector<1x32xf32>
    %c0_114 = arith.constant 0 : index
    %c0_115 = arith.constant 0 : index
    %c0_116 = arith.constant 0 : index
    %264 = vector.load %arg16[%c0_114, %c0_115, %c0_116] : memref<2x1x32xf32, #tpu.memory_space<vmem>>, vector<1x1x32xf32>
    %265 = vector.shape_cast %264 : vector<1x1x32xf32> to vector<1x32xf32>
    %cst_117 = arith.constant dense<0.000000e+00> : vector<16xf32>
    %266 = vector.multi_reduction <add>, %261, %cst_117 [1] : vector<16x32xf32> to vector<16xf32>
    %267 = vector.shape_cast %266 : vector<16xf32> to vector<16x1xf32>
    %cst_118 = arith.constant 3.200000e+01 : f32
    %268 = vector.broadcast %cst_118 : f32 to vector<16x1xf32>
    %269 = arith.divf %267, %268 : vector<16x1xf32>
    %270 = vector.broadcast %269 : vector<16x1xf32> to vector<16x32xf32>
    %271 = arith.subf %261, %270 : vector<16x32xf32>
    %272 = arith.mulf %271, %271 : vector<16x32xf32>
    %cst_119 = arith.constant dense<0.000000e+00> : vector<16xf32>
    %273 = vector.multi_reduction <add>, %272, %cst_119 [1] : vector<16x32xf32> to vector<16xf32>
    %274 = vector.shape_cast %273 : vector<16xf32> to vector<16x1xf32>
    %cst_120 = arith.constant 3.200000e+01 : f32
    %275 = vector.broadcast %cst_120 : f32 to vector<16x1xf32>
    %276 = arith.divf %274, %275 : vector<16x1xf32>
    %277 = vector.broadcast %269 : vector<16x1xf32> to vector<16x32xf32>
    %278 = arith.subf %261, %277 : vector<16x32xf32>
    %cst_121 = arith.constant 9.99999996E-13 : f32
    %279 = vector.broadcast %cst_121 : f32 to vector<16x1xf32>
    %280 = arith.addf %276, %279 : vector<16x1xf32>
    %281 = math.rsqrt %280 : vector<16x1xf32>
    %282 = vector.broadcast %281 : vector<16x1xf32> to vector<16x32xf32>
    %283 = arith.mulf %278, %282 : vector<16x32xf32>
    %284 = vector.broadcast %263 : vector<1x32xf32> to vector<16x32xf32>
    %285 = arith.mulf %283, %284 : vector<16x32xf32>
    %286 = vector.broadcast %265 : vector<1x32xf32> to vector<16x32xf32>
    %287 = arith.addf %285, %286 : vector<16x32xf32>
    %c1 = arith.constant 1 : index
    %c0_122 = arith.constant 0 : index
    %c0_123 = arith.constant 0 : index
    %288 = vector.load %arg5[%c1, %c0_122, %c0_123] : memref<2x32x96xf32, #tpu.memory_space<vmem>>, vector<1x32x96xf32>
    %289 = vector.shape_cast %288 : vector<1x32x96xf32> to vector<32x96xf32>
    %cst_124 = arith.constant dense<0.000000e+00> : vector<16x96xf32>
    %290 = tpu.matmul %287, %289, %cst_124 {dimension_numbers = #tpu.dot_dimension_numbers<[1], [0], [0], [1], [0, 0, 1, 1], [], []>} : vector<16x32xf32>, vector<32x96xf32>, vector<16x96xf32> -> vector<16x96xf32>
    %c1_125 = arith.constant 1 : index
    %c0_126 = arith.constant 0 : index
    %c0_127 = arith.constant 0 : index
    %291 = vector.load %arg6[%c1_125, %c0_126, %c0_127] : memref<2x1x96xf32, #tpu.memory_space<vmem>>, vector<1x1x96xf32>
    %292 = vector.shape_cast %291 : vector<1x1x96xf32> to vector<1x96xf32>
    %293 = vector.broadcast %292 : vector<1x96xf32> to vector<16x96xf32>
    %294 = arith.addf %290, %293 : vector<16x96xf32>
    %295 = vector.extract_strided_slice %294 {offsets = [0, 0], sizes = [16, 32], strides = [1, 1]} : vector<16x96xf32> to vector<16x32xf32>
    %296 = vector.extract_strided_slice %294 {offsets = [0, 32], sizes = [16, 32], strides = [1, 1]} : vector<16x96xf32> to vector<16x32xf32>
    %297 = vector.extract_strided_slice %294 {offsets = [0, 64], sizes = [16, 32], strides = [1, 1]} : vector<16x96xf32> to vector<16x32xf32>
    %298 = vector.extract_strided_slice %29 {offsets = [0, 0], sizes = [1, 8], strides = [1, 1]} : vector<2x8xf32> to vector<1x8xf32>
    %299 = vector.extract_strided_slice %295 {offsets = [0, 0], sizes = [8, 8], strides = [1, 1]} : vector<16x32xf32> to vector<8x8xf32>
    %300 = vector.extract_strided_slice %296 {offsets = [0, 0], sizes = [8, 8], strides = [1, 1]} : vector<16x32xf32> to vector<8x8xf32>
    %301 = vector.extract_strided_slice %297 {offsets = [0, 0], sizes = [8, 8], strides = [1, 1]} : vector<16x32xf32> to vector<8x8xf32>
    %cst_128 = arith.constant dense<0.000000e+00> : vector<8x8xf32>
    %302 = tpu.matmul %299, %300, %cst_128 {dimension_numbers = #tpu.dot_dimension_numbers<[1], [1], [0], [0], [0, 0, 1, 0], [], []>} : vector<8x8xf32>, vector<8x8xf32>, vector<8x8xf32> -> vector<8x8xf32>
    %cst_129 = arith.constant 0.353553385 : f32
    %303 = vector.broadcast %cst_129 : f32 to vector<8x8xf32>
    %304 = arith.mulf %302, %303 : vector<8x8xf32>
    %305 = vector.broadcast %298 : vector<1x8xf32> to vector<8x8xf32>
    %306 = arith.addf %304, %305 : vector<8x8xf32>
    %cst_130 = arith.constant dense<0xFF800000> : vector<8xf32>
    %307 = vector.multi_reduction <maximumf>, %306, %cst_130 [1] : vector<8x8xf32> to vector<8xf32>
    %308 = vector.shape_cast %307 : vector<8xf32> to vector<8x1xf32>
    %309 = vector.broadcast %308 : vector<8x1xf32> to vector<8x8xf32>
    %310 = arith.subf %306, %309 : vector<8x8xf32>
    %311 = math.exp %310 : vector<8x8xf32>
    %cst_131 = arith.constant dense<0.000000e+00> : vector<8xf32>
    %312 = vector.multi_reduction <add>, %311, %cst_131 [1] : vector<8x8xf32> to vector<8xf32>
    %313 = vector.shape_cast %312 : vector<8xf32> to vector<8x1xf32>
    %314 = tpu.reciprocal %313 {approx = true} : vector<8x1xf32> -> vector<8x1xf32>
    %315 = vector.broadcast %314 : vector<8x1xf32> to vector<8x8xf32>
    %316 = arith.mulf %311, %315 : vector<8x8xf32>
    %cst_132 = arith.constant dense<0.000000e+00> : vector<8x8xf32>
    %317 = tpu.matmul %316, %301, %cst_132 {dimension_numbers = #tpu.dot_dimension_numbers<[1], [0], [0], [1], [0, 0, 1, 1], [], []>} : vector<8x8xf32>, vector<8x8xf32>, vector<8x8xf32> -> vector<8x8xf32>
    %c0_133 = arith.constant 0 : index
    %c0_134 = arith.constant 0 : index
    %318 = vector.load %arg20[%c0_133, %c0_134] : memref<16x32xf32, #tpu.memory_space<vmem>>, vector<8x8xf32>
    tpu.vector_store %arg20[%c0_133, %c0_134], %317 {strides = array<i32>} : memref<16x32xf32, #tpu.memory_space<vmem>>, vector<8x8xf32>,
    %319 = vector.extract_strided_slice %295 {offsets = [0, 8], sizes = [8, 8], strides = [1, 1]} : vector<16x32xf32> to vector<8x8xf32>
    %320 = vector.extract_strided_slice %296 {offsets = [0, 8], sizes = [8, 8], strides = [1, 1]} : vector<16x32xf32> to vector<8x8xf32>
    %321 = vector.extract_strided_slice %297 {offsets = [0, 8], sizes = [8, 8], strides = [1, 1]} : vector<16x32xf32> to vector<8x8xf32>
    %cst_135 = arith.constant dense<0.000000e+00> : vector<8x8xf32>
    %322 = tpu.matmul %319, %320, %cst_135 {dimension_numbers = #tpu.dot_dimension_numbers<[1], [1], [0], [0], [0, 0, 1, 0], [], []>} : vector<8x8xf32>, vector<8x8xf32>, vector<8x8xf32> -> vector<8x8xf32>
    %cst_136 = arith.constant 0.353553385 : f32
    %323 = vector.broadcast %cst_136 : f32 to vector<8x8xf32>
    %324 = arith.mulf %322, %323 : vector<8x8xf32>
    %325 = vector.broadcast %298 : vector<1x8xf32> to vector<8x8xf32>
    %326 = arith.addf %324, %325 : vector<8x8xf32>
    %cst_137 = arith.constant dense<0xFF800000> : vector<8xf32>
    %327 = vector.multi_reduction <maximumf>, %326, %cst_137 [1] : vector<8x8xf32> to vector<8xf32>
    %328 = vector.shape_cast %327 : vector<8xf32> to vector<8x1xf32>
    %329 = vector.broadcast %328 : vector<8x1xf32> to vector<8x8xf32>
    %330 = arith.subf %326, %329 : vector<8x8xf32>
    %331 = math.exp %330 : vector<8x8xf32>
    %cst_138 = arith.constant dense<0.000000e+00> : vector<8xf32>
    %332 = vector.multi_reduction <add>, %331, %cst_138 [1] : vector<8x8xf32> to vector<8xf32>
    %333 = vector.shape_cast %332 : vector<8xf32> to vector<8x1xf32>
    %334 = tpu.reciprocal %333 {approx = true} : vector<8x1xf32> -> vector<8x1xf32>
    %335 = vector.broadcast %334 : vector<8x1xf32> to vector<8x8xf32>
    %336 = arith.mulf %331, %335 : vector<8x8xf32>
    %cst_139 = arith.constant dense<0.000000e+00> : vector<8x8xf32>
    %337 = tpu.matmul %336, %321, %cst_139 {dimension_numbers = #tpu.dot_dimension_numbers<[1], [0], [0], [1], [0, 0, 1, 1], [], []>} : vector<8x8xf32>, vector<8x8xf32>, vector<8x8xf32> -> vector<8x8xf32>
    %c0_140 = arith.constant 0 : index
    %c8_141 = arith.constant 8 : index
    %338 = vector.load %arg20[%c0_140, %c8_141] : memref<16x32xf32, #tpu.memory_space<vmem>>, vector<8x8xf32>
    tpu.vector_store %arg20[%c0_140, %c8_141], %337 {strides = array<i32>} : memref<16x32xf32, #tpu.memory_space<vmem>>, vector<8x8xf32>,
    %339 = vector.extract_strided_slice %295 {offsets = [0, 16], sizes = [8, 8], strides = [1, 1]} : vector<16x32xf32> to vector<8x8xf32>
    %340 = vector.extract_strided_slice %296 {offsets = [0, 16], sizes = [8, 8], strides = [1, 1]} : vector<16x32xf32> to vector<8x8xf32>
    %341 = vector.extract_strided_slice %297 {offsets = [0, 16], sizes = [8, 8], strides = [1, 1]} : vector<16x32xf32> to vector<8x8xf32>
    %cst_142 = arith.constant dense<0.000000e+00> : vector<8x8xf32>
    %342 = tpu.matmul %339, %340, %cst_142 {dimension_numbers = #tpu.dot_dimension_numbers<[1], [1], [0], [0], [0, 0, 1, 0], [], []>} : vector<8x8xf32>, vector<8x8xf32>, vector<8x8xf32> -> vector<8x8xf32>
    %cst_143 = arith.constant 0.353553385 : f32
    %343 = vector.broadcast %cst_143 : f32 to vector<8x8xf32>
    %344 = arith.mulf %342, %343 : vector<8x8xf32>
    %345 = vector.broadcast %298 : vector<1x8xf32> to vector<8x8xf32>
    %346 = arith.addf %344, %345 : vector<8x8xf32>
    %cst_144 = arith.constant dense<0xFF800000> : vector<8xf32>
    %347 = vector.multi_reduction <maximumf>, %346, %cst_144 [1] : vector<8x8xf32> to vector<8xf32>
    %348 = vector.shape_cast %347 : vector<8xf32> to vector<8x1xf32>
    %349 = vector.broadcast %348 : vector<8x1xf32> to vector<8x8xf32>
    %350 = arith.subf %346, %349 : vector<8x8xf32>
    %351 = math.exp %350 : vector<8x8xf32>
    %cst_145 = arith.constant dense<0.000000e+00> : vector<8xf32>
    %352 = vector.multi_reduction <add>, %351, %cst_145 [1] : vector<8x8xf32> to vector<8xf32>
    %353 = vector.shape_cast %352 : vector<8xf32> to vector<8x1xf32>
    %354 = tpu.reciprocal %353 {approx = true} : vector<8x1xf32> -> vector<8x1xf32>
    %355 = vector.broadcast %354 : vector<8x1xf32> to vector<8x8xf32>
    %356 = arith.mulf %351, %355 : vector<8x8xf32>
    %cst_146 = arith.constant dense<0.000000e+00> : vector<8x8xf32>
    %357 = tpu.matmul %356, %341, %cst_146 {dimension_numbers = #tpu.dot_dimension_numbers<[1], [0], [0], [1], [0, 0, 1, 1], [], []>} : vector<8x8xf32>, vector<8x8xf32>, vector<8x8xf32> -> vector<8x8xf32>
    %c0_147 = arith.constant 0 : index
    %c16_148 = arith.constant 16 : index
    %358 = vector.load %arg20[%c0_147, %c16_148] : memref<16x32xf32, #tpu.memory_space<vmem>>, vector<8x8xf32>
    tpu.vector_store %arg20[%c0_147, %c16_148], %357 {strides = array<i32>} : memref<16x32xf32, #tpu.memory_space<vmem>>, vector<8x8xf32>,
    %359 = vector.extract_strided_slice %295 {offsets = [0, 24], sizes = [8, 8], strides = [1, 1]} : vector<16x32xf32> to vector<8x8xf32>
    %360 = vector.extract_strided_slice %296 {offsets = [0, 24], sizes = [8, 8], strides = [1, 1]} : vector<16x32xf32> to vector<8x8xf32>
    %361 = vector.extract_strided_slice %297 {offsets = [0, 24], sizes = [8, 8], strides = [1, 1]} : vector<16x32xf32> to vector<8x8xf32>
    %cst_149 = arith.constant dense<0.000000e+00> : vector<8x8xf32>
    %362 = tpu.matmul %359, %360, %cst_149 {dimension_numbers = #tpu.dot_dimension_numbers<[1], [1], [0], [0], [0, 0, 1, 0], [], []>} : vector<8x8xf32>, vector<8x8xf32>, vector<8x8xf32> -> vector<8x8xf32>
    %cst_150 = arith.constant 0.353553385 : f32
    %363 = vector.broadcast %cst_150 : f32 to vector<8x8xf32>
    %364 = arith.mulf %362, %363 : vector<8x8xf32>
    %365 = vector.broadcast %298 : vector<1x8xf32> to vector<8x8xf32>
    %366 = arith.addf %364, %365 : vector<8x8xf32>
    %cst_151 = arith.constant dense<0xFF800000> : vector<8xf32>
    %367 = vector.multi_reduction <maximumf>, %366, %cst_151 [1] : vector<8x8xf32> to vector<8xf32>
    %368 = vector.shape_cast %367 : vector<8xf32> to vector<8x1xf32>
    %369 = vector.broadcast %368 : vector<8x1xf32> to vector<8x8xf32>
    %370 = arith.subf %366, %369 : vector<8x8xf32>
    %371 = math.exp %370 : vector<8x8xf32>
    %cst_152 = arith.constant dense<0.000000e+00> : vector<8xf32>
    %372 = vector.multi_reduction <add>, %371, %cst_152 [1] : vector<8x8xf32> to vector<8xf32>
    %373 = vector.shape_cast %372 : vector<8xf32> to vector<8x1xf32>
    %374 = tpu.reciprocal %373 {approx = true} : vector<8x1xf32> -> vector<8x1xf32>
    %375 = vector.broadcast %374 : vector<8x1xf32> to vector<8x8xf32>
    %376 = arith.mulf %371, %375 : vector<8x8xf32>
    %cst_153 = arith.constant dense<0.000000e+00> : vector<8x8xf32>
    %377 = tpu.matmul %376, %361, %cst_153 {dimension_numbers = #tpu.dot_dimension_numbers<[1], [0], [0], [1], [0, 0, 1, 1], [], []>} : vector<8x8xf32>, vector<8x8xf32>, vector<8x8xf32> -> vector<8x8xf32>
    %c0_154 = arith.constant 0 : index
    %c24_155 = arith.constant 24 : index
    %378 = vector.load %arg20[%c0_154, %c24_155] : memref<16x32xf32, #tpu.memory_space<vmem>>, vector<8x8xf32>
    tpu.vector_store %arg20[%c0_154, %c24_155], %377 {strides = array<i32>} : memref<16x32xf32, #tpu.memory_space<vmem>>, vector<8x8xf32>,
    %379 = vector.extract_strided_slice %29 {offsets = [1, 0], sizes = [1, 8], strides = [1, 1]} : vector<2x8xf32> to vector<1x8xf32>
    %380 = vector.extract_strided_slice %295 {offsets = [8, 0], sizes = [8, 8], strides = [1, 1]} : vector<16x32xf32> to vector<8x8xf32>
    %381 = vector.extract_strided_slice %296 {offsets = [8, 0], sizes = [8, 8], strides = [1, 1]} : vector<16x32xf32> to vector<8x8xf32>
    %382 = vector.extract_strided_slice %297 {offsets = [8, 0], sizes = [8, 8], strides = [1, 1]} : vector<16x32xf32> to vector<8x8xf32>
    %cst_156 = arith.constant dense<0.000000e+00> : vector<8x8xf32>
    %383 = tpu.matmul %380, %381, %cst_156 {dimension_numbers = #tpu.dot_dimension_numbers<[1], [1], [0], [0], [0, 0, 1, 0], [], []>} : vector<8x8xf32>, vector<8x8xf32>, vector<8x8xf32> -> vector<8x8xf32>
    %cst_157 = arith.constant 0.353553385 : f32
    %384 = vector.broadcast %cst_157 : f32 to vector<8x8xf32>
    %385 = arith.mulf %383, %384 : vector<8x8xf32>
    %386 = vector.broadcast %379 : vector<1x8xf32> to vector<8x8xf32>
    %387 = arith.addf %385, %386 : vector<8x8xf32>
    %cst_158 = arith.constant dense<0xFF800000> : vector<8xf32>
    %388 = vector.multi_reduction <maximumf>, %387, %cst_158 [1] : vector<8x8xf32> to vector<8xf32>
    %389 = vector.shape_cast %388 : vector<8xf32> to vector<8x1xf32>
    %390 = vector.broadcast %389 : vector<8x1xf32> to vector<8x8xf32>
    %391 = arith.subf %387, %390 : vector<8x8xf32>
    %392 = math.exp %391 : vector<8x8xf32>
    %cst_159 = arith.constant dense<0.000000e+00> : vector<8xf32>
    %393 = vector.multi_reduction <add>, %392, %cst_159 [1] : vector<8x8xf32> to vector<8xf32>
    %394 = vector.shape_cast %393 : vector<8xf32> to vector<8x1xf32>
    %395 = tpu.reciprocal %394 {approx = true} : vector<8x1xf32> -> vector<8x1xf32>
    %396 = vector.broadcast %395 : vector<8x1xf32> to vector<8x8xf32>
    %397 = arith.mulf %392, %396 : vector<8x8xf32>
    %cst_160 = arith.constant dense<0.000000e+00> : vector<8x8xf32>
    %398 = tpu.matmul %397, %382, %cst_160 {dimension_numbers = #tpu.dot_dimension_numbers<[1], [0], [0], [1], [0, 0, 1, 1], [], []>} : vector<8x8xf32>, vector<8x8xf32>, vector<8x8xf32> -> vector<8x8xf32>
    %c8_161 = arith.constant 8 : index
    %c0_162 = arith.constant 0 : index
    %399 = vector.load %arg20[%c8_161, %c0_162] : memref<16x32xf32, #tpu.memory_space<vmem>>, vector<8x8xf32>
    tpu.vector_store %arg20[%c8_161, %c0_162], %398 {strides = array<i32>} : memref<16x32xf32, #tpu.memory_space<vmem>>, vector<8x8xf32>,
    %400 = vector.extract_strided_slice %295 {offsets = [8, 8], sizes = [8, 8], strides = [1, 1]} : vector<16x32xf32> to vector<8x8xf32>
    %401 = vector.extract_strided_slice %296 {offsets = [8, 8], sizes = [8, 8], strides = [1, 1]} : vector<16x32xf32> to vector<8x8xf32>
    %402 = vector.extract_strided_slice %297 {offsets = [8, 8], sizes = [8, 8], strides = [1, 1]} : vector<16x32xf32> to vector<8x8xf32>
    %cst_163 = arith.constant dense<0.000000e+00> : vector<8x8xf32>
    %403 = tpu.matmul %400, %401, %cst_163 {dimension_numbers = #tpu.dot_dimension_numbers<[1], [1], [0], [0], [0, 0, 1, 0], [], []>} : vector<8x8xf32>, vector<8x8xf32>, vector<8x8xf32> -> vector<8x8xf32>
    %cst_164 = arith.constant 0.353553385 : f32
    %404 = vector.broadcast %cst_164 : f32 to vector<8x8xf32>
    %405 = arith.mulf %403, %404 : vector<8x8xf32>
    %406 = vector.broadcast %379 : vector<1x8xf32> to vector<8x8xf32>
    %407 = arith.addf %405, %406 : vector<8x8xf32>
    %cst_165 = arith.constant dense<0xFF800000> : vector<8xf32>
    %408 = vector.multi_reduction <maximumf>, %407, %cst_165 [1] : vector<8x8xf32> to vector<8xf32>
    %409 = vector.shape_cast %408 : vector<8xf32> to vector<8x1xf32>
    %410 = vector.broadcast %409 : vector<8x1xf32> to vector<8x8xf32>
    %411 = arith.subf %407, %410 : vector<8x8xf32>
    %412 = math.exp %411 : vector<8x8xf32>
    %cst_166 = arith.constant dense<0.000000e+00> : vector<8xf32>
    %413 = vector.multi_reduction <add>, %412, %cst_166 [1] : vector<8x8xf32> to vector<8xf32>
    %414 = vector.shape_cast %413 : vector<8xf32> to vector<8x1xf32>
    %415 = tpu.reciprocal %414 {approx = true} : vector<8x1xf32> -> vector<8x1xf32>
    %416 = vector.broadcast %415 : vector<8x1xf32> to vector<8x8xf32>
    %417 = arith.mulf %412, %416 : vector<8x8xf32>
    %cst_167 = arith.constant dense<0.000000e+00> : vector<8x8xf32>
    %418 = tpu.matmul %417, %402, %cst_167 {dimension_numbers = #tpu.dot_dimension_numbers<[1], [0], [0], [1], [0, 0, 1, 1], [], []>} : vector<8x8xf32>, vector<8x8xf32>, vector<8x8xf32> -> vector<8x8xf32>
    %c8_168 = arith.constant 8 : index
    %c8_169 = arith.constant 8 : index
    %419 = vector.load %arg20[%c8_168, %c8_169] : memref<16x32xf32, #tpu.memory_space<vmem>>, vector<8x8xf32>
    tpu.vector_store %arg20[%c8_168, %c8_169], %418 {strides = array<i32>} : memref<16x32xf32, #tpu.memory_space<vmem>>, vector<8x8xf32>,
    %420 = vector.extract_strided_slice %295 {offsets = [8, 16], sizes = [8, 8], strides = [1, 1]} : vector<16x32xf32> to vector<8x8xf32>
    %421 = vector.extract_strided_slice %296 {offsets = [8, 16], sizes = [8, 8], strides = [1, 1]} : vector<16x32xf32> to vector<8x8xf32>
    %422 = vector.extract_strided_slice %297 {offsets = [8, 16], sizes = [8, 8], strides = [1, 1]} : vector<16x32xf32> to vector<8x8xf32>
    %cst_170 = arith.constant dense<0.000000e+00> : vector<8x8xf32>
    %423 = tpu.matmul %420, %421, %cst_170 {dimension_numbers = #tpu.dot_dimension_numbers<[1], [1], [0], [0], [0, 0, 1, 0], [], []>} : vector<8x8xf32>, vector<8x8xf32>, vector<8x8xf32> -> vector<8x8xf32>
    %cst_171 = arith.constant 0.353553385 : f32
    %424 = vector.broadcast %cst_171 : f32 to vector<8x8xf32>
    %425 = arith.mulf %423, %424 : vector<8x8xf32>
    %426 = vector.broadcast %379 : vector<1x8xf32> to vector<8x8xf32>
    %427 = arith.addf %425, %426 : vector<8x8xf32>
    %cst_172 = arith.constant dense<0xFF800000> : vector<8xf32>
    %428 = vector.multi_reduction <maximumf>, %427, %cst_172 [1] : vector<8x8xf32> to vector<8xf32>
    %429 = vector.shape_cast %428 : vector<8xf32> to vector<8x1xf32>
    %430 = vector.broadcast %429 : vector<8x1xf32> to vector<8x8xf32>
    %431 = arith.subf %427, %430 : vector<8x8xf32>
    %432 = math.exp %431 : vector<8x8xf32>
    %cst_173 = arith.constant dense<0.000000e+00> : vector<8xf32>
    %433 = vector.multi_reduction <add>, %432, %cst_173 [1] : vector<8x8xf32> to vector<8xf32>
    %434 = vector.shape_cast %433 : vector<8xf32> to vector<8x1xf32>
    %435 = tpu.reciprocal %434 {approx = true} : vector<8x1xf32> -> vector<8x1xf32>
    %436 = vector.broadcast %435 : vector<8x1xf32> to vector<8x8xf32>
    %437 = arith.mulf %432, %436 : vector<8x8xf32>
    %cst_174 = arith.constant dense<0.000000e+00> : vector<8x8xf32>
    %438 = tpu.matmul %437, %422, %cst_174 {dimension_numbers = #tpu.dot_dimension_numbers<[1], [0], [0], [1], [0, 0, 1, 1], [], []>} : vector<8x8xf32>, vector<8x8xf32>, vector<8x8xf32> -> vector<8x8xf32>
    %c8_175 = arith.constant 8 : index
    %c16_176 = arith.constant 16 : index
    %439 = vector.load %arg20[%c8_175, %c16_176] : memref<16x32xf32, #tpu.memory_space<vmem>>, vector<8x8xf32>
    tpu.vector_store %arg20[%c8_175, %c16_176], %438 {strides = array<i32>} : memref<16x32xf32, #tpu.memory_space<vmem>>, vector<8x8xf32>,
    %440 = vector.extract_strided_slice %295 {offsets = [8, 24], sizes = [8, 8], strides = [1, 1]} : vector<16x32xf32> to vector<8x8xf32>
    %441 = vector.extract_strided_slice %296 {offsets = [8, 24], sizes = [8, 8], strides = [1, 1]} : vector<16x32xf32> to vector<8x8xf32>
    %442 = vector.extract_strided_slice %297 {offsets = [8, 24], sizes = [8, 8], strides = [1, 1]} : vector<16x32xf32> to vector<8x8xf32>
    %cst_177 = arith.constant dense<0.000000e+00> : vector<8x8xf32>
    %443 = tpu.matmul %440, %441, %cst_177 {dimension_numbers = #tpu.dot_dimension_numbers<[1], [1], [0], [0], [0, 0, 1, 0], [], []>} : vector<8x8xf32>, vector<8x8xf32>, vector<8x8xf32> -> vector<8x8xf32>
    %cst_178 = arith.constant 0.353553385 : f32
    %444 = vector.broadcast %cst_178 : f32 to vector<8x8xf32>
    %445 = arith.mulf %443, %444 : vector<8x8xf32>
    %446 = vector.broadcast %379 : vector<1x8xf32> to vector<8x8xf32>
    %447 = arith.addf %445, %446 : vector<8x8xf32>
    %cst_179 = arith.constant dense<0xFF800000> : vector<8xf32>
    %448 = vector.multi_reduction <maximumf>, %447, %cst_179 [1] : vector<8x8xf32> to vector<8xf32>
    %449 = vector.shape_cast %448 : vector<8xf32> to vector<8x1xf32>
    %450 = vector.broadcast %449 : vector<8x1xf32> to vector<8x8xf32>
    %451 = arith.subf %447, %450 : vector<8x8xf32>
    %452 = math.exp %451 : vector<8x8xf32>
    %cst_180 = arith.constant dense<0.000000e+00> : vector<8xf32>
    %453 = vector.multi_reduction <add>, %452, %cst_180 [1] : vector<8x8xf32> to vector<8xf32>
    %454 = vector.shape_cast %453 : vector<8xf32> to vector<8x1xf32>
    %455 = tpu.reciprocal %454 {approx = true} : vector<8x1xf32> -> vector<8x1xf32>
    %456 = vector.broadcast %455 : vector<8x1xf32> to vector<8x8xf32>
    %457 = arith.mulf %452, %456 : vector<8x8xf32>
    %cst_181 = arith.constant dense<0.000000e+00> : vector<8x8xf32>
    %458 = tpu.matmul %457, %442, %cst_181 {dimension_numbers = #tpu.dot_dimension_numbers<[1], [0], [0], [1], [0, 0, 1, 1], [], []>} : vector<8x8xf32>, vector<8x8xf32>, vector<8x8xf32> -> vector<8x8xf32>
    %c8_182 = arith.constant 8 : index
    %c24_183 = arith.constant 24 : index
    %459 = vector.load %arg20[%c8_182, %c24_183] : memref<16x32xf32, #tpu.memory_space<vmem>>, vector<8x8xf32>
    tpu.vector_store %arg20[%c8_182, %c24_183], %458 {strides = array<i32>} : memref<16x32xf32, #tpu.memory_space<vmem>>, vector<8x8xf32>,
    %c0_184 = arith.constant 0 : index
    %c0_185 = arith.constant 0 : index
    %460 = vector.load %arg20[%c0_184, %c0_185] : memref<16x32xf32, #tpu.memory_space<vmem>>, vector<16x32xf32>
    %c1_186 = arith.constant 1 : index
    %c0_187 = arith.constant 0 : index
    %c0_188 = arith.constant 0 : index
    %461 = vector.load %arg7[%c1_186, %c0_187, %c0_188] : memref<2x32x32xf32, #tpu.memory_space<vmem>>, vector<1x32x32xf32>
    %462 = vector.shape_cast %461 : vector<1x32x32xf32> to vector<32x32xf32>
    %cst_189 = arith.constant dense<0.000000e+00> : vector<16x32xf32>
    %463 = tpu.matmul %460, %462, %cst_189 {dimension_numbers = #tpu.dot_dimension_numbers<[1], [0], [0], [1], [0, 0, 1, 1], [], []>} : vector<16x32xf32>, vector<32x32xf32>, vector<16x32xf32> -> vector<16x32xf32>
    %c1_190 = arith.constant 1 : index
    %c0_191 = arith.constant 0 : index
    %c0_192 = arith.constant 0 : index
    %464 = vector.load %arg8[%c1_190, %c0_191, %c0_192] : memref<2x1x32xf32, #tpu.memory_space<vmem>>, vector<1x1x32xf32>
    %465 = vector.shape_cast %464 : vector<1x1x32xf32> to vector<1x32xf32>
    %466 = vector.broadcast %465 : vector<1x32xf32> to vector<16x32xf32>
    %467 = arith.addf %463, %466 : vector<16x32xf32>
    %468 = arith.addf %287, %467 : vector<16x32xf32>
    %c1_193 = arith.constant 1 : index
    %c0_194 = arith.constant 0 : index
    %c0_195 = arith.constant 0 : index
    %469 = vector.load %arg9[%c1_193, %c0_194, %c0_195] : memref<2x1x32xf32, #tpu.memory_space<vmem>>, vector<1x1x32xf32>
    %470 = vector.shape_cast %469 : vector<1x1x32xf32> to vector<1x32xf32>
    %c1_196 = arith.constant 1 : index
    %c0_197 = arith.constant 0 : index
    %c0_198 = arith.constant 0 : index
    %471 = vector.load %arg10[%c1_196, %c0_197, %c0_198] : memref<2x1x32xf32, #tpu.memory_space<vmem>>, vector<1x1x32xf32>
    %472 = vector.shape_cast %471 : vector<1x1x32xf32> to vector<1x32xf32>
    %cst_199 = arith.constant dense<0.000000e+00> : vector<16xf32>
    %473 = vector.multi_reduction <add>, %468, %cst_199 [1] : vector<16x32xf32> to vector<16xf32>
    %474 = vector.shape_cast %473 : vector<16xf32> to vector<16x1xf32>
    %cst_200 = arith.constant 3.200000e+01 : f32
    %475 = vector.broadcast %cst_200 : f32 to vector<16x1xf32>
    %476 = arith.divf %474, %475 : vector<16x1xf32>
    %477 = vector.broadcast %476 : vector<16x1xf32> to vector<16x32xf32>
    %478 = arith.subf %468, %477 : vector<16x32xf32>
    %479 = arith.mulf %478, %478 : vector<16x32xf32>
    %cst_201 = arith.constant dense<0.000000e+00> : vector<16xf32>
    %480 = vector.multi_reduction <add>, %479, %cst_201 [1] : vector<16x32xf32> to vector<16xf32>
    %481 = vector.shape_cast %480 : vector<16xf32> to vector<16x1xf32>
    %cst_202 = arith.constant 3.200000e+01 : f32
    %482 = vector.broadcast %cst_202 : f32 to vector<16x1xf32>
    %483 = arith.divf %481, %482 : vector<16x1xf32>
    %484 = vector.broadcast %476 : vector<16x1xf32> to vector<16x32xf32>
    %485 = arith.subf %468, %484 : vector<16x32xf32>
    %cst_203 = arith.constant 9.99999996E-13 : f32
    %486 = vector.broadcast %cst_203 : f32 to vector<16x1xf32>
    %487 = arith.addf %483, %486 : vector<16x1xf32>
    %488 = math.rsqrt %487 : vector<16x1xf32>
    %489 = vector.broadcast %488 : vector<16x1xf32> to vector<16x32xf32>
    %490 = arith.mulf %485, %489 : vector<16x32xf32>
    %491 = vector.broadcast %470 : vector<1x32xf32> to vector<16x32xf32>
    %492 = arith.mulf %490, %491 : vector<16x32xf32>
    %493 = vector.broadcast %472 : vector<1x32xf32> to vector<16x32xf32>
    %494 = arith.addf %492, %493 : vector<16x32xf32>
    %c1_204 = arith.constant 1 : index
    %c0_205 = arith.constant 0 : index
    %c0_206 = arith.constant 0 : index
    %495 = vector.load %arg11[%c1_204, %c0_205, %c0_206] : memref<2x32x64xf32, #tpu.memory_space<vmem>>, vector<1x32x64xf32>
    %496 = vector.shape_cast %495 : vector<1x32x64xf32> to vector<32x64xf32>
    %cst_207 = arith.constant dense<0.000000e+00> : vector<16x64xf32>
    %497 = tpu.matmul %494, %496, %cst_207 {dimension_numbers = #tpu.dot_dimension_numbers<[1], [0], [0], [1], [0, 0, 1, 1], [], []>} : vector<16x32xf32>, vector<32x64xf32>, vector<16x64xf32> -> vector<16x64xf32>
    %c1_208 = arith.constant 1 : index
    %c0_209 = arith.constant 0 : index
    %c0_210 = arith.constant 0 : index
    %498 = vector.load %arg12[%c1_208, %c0_209, %c0_210] : memref<2x1x64xf32, #tpu.memory_space<vmem>>, vector<1x1x64xf32>
    %499 = vector.shape_cast %498 : vector<1x1x64xf32> to vector<1x64xf32>
    %500 = vector.broadcast %499 : vector<1x64xf32> to vector<16x64xf32>
    %501 = arith.addf %497, %500 : vector<16x64xf32>
    %cst_211 = arith.constant 5.000000e-01 : f32
    %502 = vector.broadcast %cst_211 : f32 to vector<16x64xf32>
    %503 = arith.mulf %502, %501 : vector<16x64xf32>
    %cst_212 = arith.constant 2.000000e+00 : f32
    %504 = math.sqrt %cst_212 : f32
    %cst_213 = arith.constant 1.000000e+00 : f32
    %505 = arith.divf %cst_213, %504 : f32
    %506 = vector.broadcast %505 : f32 to vector<16x64xf32>
    %507 = arith.mulf %501, %506 : vector<16x64xf32>
    %508 = math.erf %507 : vector<16x64xf32>
    %cst_214 = arith.constant 1.000000e+00 : f32
    %509 = vector.broadcast %cst_214 : f32 to vector<16x64xf32>
    %510 = arith.addf %509, %508 : vector<16x64xf32>
    %511 = arith.mulf %503, %510 : vector<16x64xf32>
    %c1_215 = arith.constant 1 : index
    %c0_216 = arith.constant 0 : index
    %c0_217 = arith.constant 0 : index
    %512 = vector.load %arg13[%c1_215, %c0_216, %c0_217] : memref<2x64x32xf32, #tpu.memory_space<vmem>>, vector<1x64x32xf32>
    %513 = vector.shape_cast %512 : vector<1x64x32xf32> to vector<64x32xf32>
    %cst_218 = arith.constant dense<0.000000e+00> : vector<16x32xf32>
    %514 = tpu.matmul %511, %513, %cst_218 {dimension_numbers = #tpu.dot_dimension_numbers<[1], [0], [0], [1], [0, 0, 1, 1], [], []>} : vector<16x64xf32>, vector<64x32xf32>, vector<16x32xf32> -> vector<16x32xf32>
    %c1_219 = arith.constant 1 : index
    %c0_220 = arith.constant 0 : index
    %c0_221 = arith.constant 0 : index
    %515 = vector.load %arg14[%c1_219, %c0_220, %c0_221] : memref<2x1x32xf32, #tpu.memory_space<vmem>>, vector<1x1x32xf32>
    %516 = vector.shape_cast %515 : vector<1x1x32xf32> to vector<1x32xf32>
    %517 = vector.broadcast %516 : vector<1x32xf32> to vector<16x32xf32>
    %518 = arith.addf %514, %517 : vector<16x32xf32>
    %519 = arith.addf %494, %518 : vector<16x32xf32>
    %c1_222 = arith.constant 1 : index
    %c0_223 = arith.constant 0 : index
    %c0_224 = arith.constant 0 : index
    %520 = vector.load %arg15[%c1_222, %c0_223, %c0_224] : memref<2x1x32xf32, #tpu.memory_space<vmem>>, vector<1x1x32xf32>
    %521 = vector.shape_cast %520 : vector<1x1x32xf32> to vector<1x32xf32>
    %c1_225 = arith.constant 1 : index
    %c0_226 = arith.constant 0 : index
    %c0_227 = arith.constant 0 : index
    %522 = vector.load %arg16[%c1_225, %c0_226, %c0_227] : memref<2x1x32xf32, #tpu.memory_space<vmem>>, vector<1x1x32xf32>
    %523 = vector.shape_cast %522 : vector<1x1x32xf32> to vector<1x32xf32>
    %cst_228 = arith.constant dense<0.000000e+00> : vector<16xf32>
    %524 = vector.multi_reduction <add>, %519, %cst_228 [1] : vector<16x32xf32> to vector<16xf32>
    %525 = vector.shape_cast %524 : vector<16xf32> to vector<16x1xf32>
    %cst_229 = arith.constant 3.200000e+01 : f32
    %526 = vector.broadcast %cst_229 : f32 to vector<16x1xf32>
    %527 = arith.divf %525, %526 : vector<16x1xf32>
    %528 = vector.broadcast %527 : vector<16x1xf32> to vector<16x32xf32>
    %529 = arith.subf %519, %528 : vector<16x32xf32>
    %530 = arith.mulf %529, %529 : vector<16x32xf32>
    %cst_230 = arith.constant dense<0.000000e+00> : vector<16xf32>
    %531 = vector.multi_reduction <add>, %530, %cst_230 [1] : vector<16x32xf32> to vector<16xf32>
    %532 = vector.shape_cast %531 : vector<16xf32> to vector<16x1xf32>
    %cst_231 = arith.constant 3.200000e+01 : f32
    %533 = vector.broadcast %cst_231 : f32 to vector<16x1xf32>
    %534 = arith.divf %532, %533 : vector<16x1xf32>
    %535 = vector.broadcast %527 : vector<16x1xf32> to vector<16x32xf32>
    %536 = arith.subf %519, %535 : vector<16x32xf32>
    %cst_232 = arith.constant 9.99999996E-13 : f32
    %537 = vector.broadcast %cst_232 : f32 to vector<16x1xf32>
    %538 = arith.addf %534, %537 : vector<16x1xf32>
    %539 = math.rsqrt %538 : vector<16x1xf32>
    %540 = vector.broadcast %539 : vector<16x1xf32> to vector<16x32xf32>
    %541 = arith.mulf %536, %540 : vector<16x32xf32>
    %542 = vector.broadcast %521 : vector<1x32xf32> to vector<16x32xf32>
    %543 = arith.mulf %541, %542 : vector<16x32xf32>
    %544 = vector.broadcast %523 : vector<1x32xf32> to vector<16x32xf32>
    %545 = arith.addf %543, %544 : vector<16x32xf32>
    %546 = vector.extract_strided_slice %545 {offsets = [0, 0], sizes = [1, 32], strides = [1, 1]} : vector<16x32xf32> to vector<1x32xf32>
    %cst_233 = arith.constant 0.000000e+00 : f32
    %547 = vector.broadcast %cst_233 : f32 to vector<1x32xf32>
    %548 = arith.maximumf %546, %547 : vector<1x32xf32>
    %c0_234 = arith.constant 0 : index
    %c0_235 = arith.constant 0 : index
    %549 = vector.load %arg17[%c0_234, %c0_235] : memref<32x16xf32, #tpu.memory_space<vmem>>, vector<32x16xf32>
    %cst_236 = arith.constant dense<0.000000e+00> : vector<1x16xf32>
    %550 = tpu.matmul %548, %549, %cst_236 {dimension_numbers = #tpu.dot_dimension_numbers<[1], [0], [0], [1], [0, 0, 1, 1], [], []>} : vector<1x32xf32>, vector<32x16xf32>, vector<1x16xf32> -> vector<1x16xf32>
    %c0_237 = arith.constant 0 : index
    %c0_238 = arith.constant 0 : index
    %551 = vector.load %arg18[%c0_237, %c0_238] : memref<1x16xf32, #tpu.memory_space<vmem>>, vector<1x16xf32>
    %552 = arith.addf %550, %551 : vector<1x16xf32>
    %c0_239 = arith.constant 0 : index
    %c0_240 = arith.constant 0 : index
    %553 = vector.load %arg19[%c0_239, %c0_240] : memref<2x16xf32, #tpu.memory_space<vmem>>, vector<1x16xf32>
    tpu.vector_store %arg19[%c0_239, %c0_240], %552 {strides = array<i32>} : memref<2x16xf32, #tpu.memory_space<vmem>>, vector<1x16xf32>,
    %554 = vector.extract_strided_slice %545 {offsets = [8, 0], sizes = [1, 32], strides = [1, 1]} : vector<16x32xf32> to vector<1x32xf32>
    %cst_241 = arith.constant 0.000000e+00 : f32
    %555 = vector.broadcast %cst_241 : f32 to vector<1x32xf32>
    %556 = arith.maximumf %554, %555 : vector<1x32xf32>
    %c0_242 = arith.constant 0 : index
    %c0_243 = arith.constant 0 : index
    %557 = vector.load %arg17[%c0_242, %c0_243] : memref<32x16xf32, #tpu.memory_space<vmem>>, vector<32x16xf32>
    %cst_244 = arith.constant dense<0.000000e+00> : vector<1x16xf32>
    %558 = tpu.matmul %556, %557, %cst_244 {dimension_numbers = #tpu.dot_dimension_numbers<[1], [0], [0], [1], [0, 0, 1, 1], [], []>} : vector<1x32xf32>, vector<32x16xf32>, vector<1x16xf32> -> vector<1x16xf32>
    %c0_245 = arith.constant 0 : index
    %c0_246 = arith.constant 0 : index
    %559 = vector.load %arg18[%c0_245, %c0_246] : memref<1x16xf32, #tpu.memory_space<vmem>>, vector<1x16xf32>
    %560 = arith.addf %558, %559 : vector<1x16xf32>
    %c1_247 = arith.constant 1 : index
    %c0_248 = arith.constant 0 : index
    %561 = vector.load %arg19[%c1_247, %c0_248] : memref<2x16xf32, #tpu.memory_space<vmem>>, vector<1x16xf32>
    tpu.vector_store %arg19[%c1_247, %c0_248], %560 {strides = array<i32>} : memref<2x16xf32, #tpu.memory_space<vmem>>, vector<1x16xf32>,
    return
  }
  func.func @transform_0(%arg0: i32) -> (i32, i32) {
    %c0_i32 = arith.constant 0 : i32
    %c0_i32_0 = arith.constant 0 : i32
    %c0_i32_1 = arith.constant 0 : i32
    return %c0_i32, %c0_i32_0 : i32, i32
  }
  func.func @transform_1(%arg0: i32) -> (i32, i32) {
    %c0_i32 = arith.constant 0 : i32
    %c0_i32_0 = arith.constant 0 : i32
    %c0_i32_1 = arith.constant 0 : i32
    return %c0_i32, %c0_i32_0 : i32, i32
  }
  func.func @transform_2(%arg0: i32) -> (i32, i32) {
    %c0_i32 = arith.constant 0 : i32
    %c0_i32_0 = arith.constant 0 : i32
    %c0_i32_1 = arith.constant 0 : i32
    return %c0_i32, %c0_i32_0 : i32, i32
  }
  func.func @transform_3(%arg0: i32) -> (i32, i32) {
    %c0_i32 = arith.constant 0 : i32
    %c0_i32_0 = arith.constant 0 : i32
    %c0_i32_1 = arith.constant 0 : i32
    return %c0_i32, %c0_i32_0 : i32, i32
  }
  func.func @transform_4(%arg0: i32) -> (i32, i32, i32) {
    %c0_i32 = arith.constant 0 : i32
    %c0_i32_0 = arith.constant 0 : i32
    %c0_i32_1 = arith.constant 0 : i32
    %c0_i32_2 = arith.constant 0 : i32
    return %c0_i32, %c0_i32_0, %c0_i32_1 : i32, i32, i32
  }
  func.func @transform_5(%arg0: i32) -> (i32, i32, i32) {
    %c0_i32 = arith.constant 0 : i32
    %c0_i32_0 = arith.constant 0 : i32
    %c0_i32_1 = arith.constant 0 : i32
    %c0_i32_2 = arith.constant 0 : i32
    return %c0_i32, %c0_i32_0, %c0_i32_1 : i32, i32, i32
  }
  func.func @transform_6(%arg0: i32) -> (i32, i32, i32) {
    %c0_i32 = arith.constant 0 : i32
    %c0_i32_0 = arith.constant 0 : i32
    %c0_i32_1 = arith.constant 0 : i32
    %c0_i32_2 = arith.constant 0 : i32
    return %c0_i32, %c0_i32_0, %c0_i32_1 : i32, i32, i32
  }
  func.func @transform_7(%arg0: i32) -> (i32, i32, i32) {
    %c0_i32 = arith.constant 0 : i32
    %c0_i32_0 = arith.constant 0 : i32
    %c0_i32_1 = arith.constant 0 : i32
    %c0_i32_2 = arith.constant 0 : i32
    return %c0_i32, %c0_i32_0, %c0_i32_1 : i32, i32, i32
  }
  func.func @transform_8(%arg0: i32) -> (i32, i32, i32) {
    %c0_i32 = arith.constant 0 : i32
    %c0_i32_0 = arith.constant 0 : i32
    %c0_i32_1 = arith.constant 0 : i32
    %c0_i32_2 = arith.constant 0 : i32
    return %c0_i32, %c0_i32_0, %c0_i32_1 : i32, i32, i32
  }
  func.func @transform_9(%arg0: i32) -> (i32, i32, i32) {
    %c0_i32 = arith.constant 0 : i32
    %c0_i32_0 = arith.constant 0 : i32
    %c0_i32_1 = arith.constant 0 : i32
    %c0_i32_2 = arith.constant 0 : i32
    return %c0_i32, %c0_i32_0, %c0_i32_1 : i32, i32, i32
  }
  func.func @transform_10(%arg0: i32) -> (i32, i32, i32) {
    %c0_i32 = arith.constant 0 : i32
    %c0_i32_0 = arith.constant 0 : i32
    %c0_i32_1 = arith.constant 0 : i32
    %c0_i32_2 = arith.constant 0 : i32
    return %c0_i32, %c0_i32_0, %c0_i32_1 : i32, i32, i32
  }
  func.func @transform_11(%arg0: i32) -> (i32, i32, i32) {
    %c0_i32 = arith.constant 0 : i32
    %c0_i32_0 = arith.constant 0 : i32
    %c0_i32_1 = arith.constant 0 : i32
    %c0_i32_2 = arith.constant 0 : i32
    return %c0_i32, %c0_i32_0, %c0_i32_1 : i32, i32, i32
  }
  func.func @transform_12(%arg0: i32) -> (i32, i32, i32) {
    %c0_i32 = arith.constant 0 : i32
    %c0_i32_0 = arith.constant 0 : i32
    %c0_i32_1 = arith.constant 0 : i32
    %c0_i32_2 = arith.constant 0 : i32
    return %c0_i32, %c0_i32_0, %c0_i32_1 : i32, i32, i32
  }
  func.func @transform_13(%arg0: i32) -> (i32, i32, i32) {
    %c0_i32 = arith.constant 0 : i32
    %c0_i32_0 = arith.constant 0 : i32
    %c0_i32_1 = arith.constant 0 : i32
    %c0_i32_2 = arith.constant 0 : i32
    return %c0_i32, %c0_i32_0, %c0_i32_1 : i32, i32, i32
  }
  func.func @transform_14(%arg0: i32) -> (i32, i32, i32) {
    %c0_i32 = arith.constant 0 : i32
    %c0_i32_0 = arith.constant 0 : i32
    %c0_i32_1 = arith.constant 0 : i32
    %c0_i32_2 = arith.constant 0 : i32
    return %c0_i32, %c0_i32_0, %c0_i32_1 : i32, i32, i32
  }
  func.func @transform_15(%arg0: i32) -> (i32, i32, i32) {
    %c0_i32 = arith.constant 0 : i32
    %c0_i32_0 = arith.constant 0 : i32
    %c0_i32_1 = arith.constant 0 : i32
    %c0_i32_2 = arith.constant 0 : i32
    return %c0_i32, %c0_i32_0, %c0_i32_1 : i32, i32, i32
  }
  func.func @transform_16(%arg0: i32) -> (i32, i32) {
    %c0_i32 = arith.constant 0 : i32
    %c0_i32_0 = arith.constant 0 : i32
    %c0_i32_1 = arith.constant 0 : i32
    return %c0_i32, %c0_i32_0 : i32, i32
  }
  func.func @transform_17(%arg0: i32) -> (i32, i32) {
    %c0_i32 = arith.constant 0 : i32
    %c0_i32_0 = arith.constant 0 : i32
    %c0_i32_1 = arith.constant 0 : i32
    return %c0_i32, %c0_i32_0 : i32, i32
  }
  func.func @transform_18(%arg0: i32) -> (i32, i32) {
    %c0_i32 = arith.constant 0 : i32
    %c0_i32_0 = arith.constant 0 : i32
    %c0_i32_1 = arith.constant 0 : i32
    return %c0_i32, %c0_i32_0 : i32, i32
  }
}

</mosaic_0001>

<bundles_post_ra>
// kernel: text_location_encoder_forward.1
= control target key start
LH: loop header
LB: loop body
LE: loop exit
PB: predicated region body
PF: predicated region fallthrough
CT: control target
= control target key end

     0   :  { %s3004_s0 = inlined_call_operand.vmem [shape: f32[16,32], index: 0, kind: input, shape index: {}]   ;;  %s3005_s1 = inlined_call_operand.vmem [shape: f32[2,8], index: 1, kind: input, shape index: {}]   ;;  %s3006_s2 = inlined_call_operand.vmem [shape: f32[1,32], index: 2, kind: input, shape index: {}]   ;;  %s3007_s3 = inlined_call_operand.vmem [shape: f32[1,32], index: 3, kind: input, shape index: {}]   ;;  %s3008_s4 = inlined_call_operand.vmem [shape: f32[2,32,96], index: 4, kind: input, shape index: {}]   ;;  %s3009_s5 = inlined_call_operand.vmem [shape: f32[2,1,96], index: 5, kind: input, shape index: {}]   ;;  %s3010_s6 = inlined_call_operand.vmem [shape: f32[2,32,32], index: 6, kind: input, shape index: {}]   ;;  %s3011_s7 = inlined_call_operand.vmem [shape: f32[2,1,32], index: 7, kind: input, shape index: {}]   ;;  %s3012_s8 = inlined_call_operand.vmem [shape: f32[2,1,32], index: 8, kind: input, shape index: {}]   ;;  %s3013_s9 = inlined_call_operand.vmem [shape: f32[2,1,32], index: 9, kind: input, shape index: {}]   ;;  %s3014_s10 = inlined_call_operand.vmem [shape: f32[2,32,64], index: 10, kind: input, shape index: {}]   ;;  %s3015_s11 = inlined_call_operand.vmem [shape: f32[2,1,64], index: 11, kind: input, shape index: {}]   ;;  %s3016_s12 = inlined_call_operand.vmem [shape: f32[2,64,32], index: 12, kind: input, shape index: {}]   ;;  %s3017_s13 = inlined_call_operand.vmem [shape: f32[2,1,32], index: 13, kind: input, shape index: {}]   ;;  %s3018_s14 = inlined_call_operand.vmem [shape: f32[2,1,32], index: 14, kind: input, shape index: {}]   ;;  %s3019_s15 = inlined_call_operand.vmem [shape: f32[2,1,32], index: 15, kind: input, shape index: {}]   ;;  %s3020_s16 = inlined_call_operand.vmem [shape: f32[32,16], index: 16, kind: input, shape index: {}]   ;;  %s3021_s17 = inlined_call_operand.vmem [shape: f32[1,16], index: 17, kind: input, shape index: {}]   ;;  %s3022_s18 = inlined_call_operand.hbm [shape: f32[2,16], index: 18, kind: output, shape index: {}]  }
   0x1   :  { %3036 = sst [smem:[#allocation6_spill]] %s3004_s0 }
   0x2   :  { %3037 = sst [smem:[#allocation7_spill]] %s3005_s1 }
   0x3   :  { %3038 = sst [smem:[#allocation8_spill]] %s3006_s2 }
   0x4   :  { %s3039_s29 = sld [smem:[#allocation6_spill]]  ;;  %vm64_vm0 = vcmask 261120  }
   0xa   :  { %v60_v0 = vld [vmem:[%s3039_s29] sm:$0xff]  ;;  %v61_v1 = vld [vmem:[%s3039_s29 + $0x8] sm:$0xff] }
   0xb   :  { %v65_v2 = vsel %vm64_vm0, %v60_v0, 0.0  ;;  %v68_v3 = vsel %vm64_vm0, %v61_v1, 0.0 }
   0xc   :  { %66 = vadd.xlane.f32.xlu0 %v65_v2  ;;  %69 = vadd.xlane.f32.xlu1 %v68_v3 }
   0xd   :  { %23 = vsyncpa [#allocation4], 0  ;;  %v2325_v4 = vmov 32.0   ;;  %v132_v21 = vld [vmem:[%s3008_s4 + $0x18] sm:$0xff]  ;;  %v131_v22 = vld [vmem:[%s3008_s4 + $0x10] sm:$0xff]  ;;  %s3040_s27 = sld [smem:[#allocation8_spill]] }
   0xe   :  { %2205 = vrcp.f32 %v2325_v4  ;;  %155 = vmatpush.msra.mxu0 %v132_v21  ;;  %v130_v23 = vld [vmem:[%s3008_s4 + $0x8] sm:$0xff]  ;;  %v129_v24 = vld [vmem:[%s3008_s4] sm:$0xff]  ;;  %s2327_s19 = smov 96   ;;  %s3032_s1 = smov 64   ;;  %vm169_vm8 = vcmask 64512   ;;  %vm306_vm9 = vcmask 130112  }
   0xf   :  { %v2188_v46 = vld [vmem:[%s3007_s3] ss:$0 sm:$0xff]  ;;  %s3026_s3 = smov 120   ;;  %s2329_s20 = smov 88   ;;  %vm379_vm10 = vcmask 195712   ;;  %vm452_vm11 = vcmask 261312  }
  0x10   :  { %156 = vmatpush.msra.mxu0 %v131_v22  ;;  %v2481_v53 = vld [vmem:[%s3009_s5] ss:$0 sm:$0xff]  ;;  %s3034_s21 = smov 80   ;;  %s3030_s22 = smov 72  }
  0x11   :  { %s3024_s2 = smov 104   ;;  %s3041_s25 = sld [smem:[#allocation7_spill]] }
  0x12   :  { %157 = vmatpush.msra.mxu0 %v130_v23  ;;  %s3028_s26 = smov 112   ;;  %s2335_s28 = smov 40  }
  0x13   :  { %v2187_v42 = vld [vmem:[%s3040_s27] ss:$0 sm:$0xff]  ;;  %s2334_s27 = smov 56   ;;  %s2336_s29 = smov 48  }
  0x14   :  { %v2206_v5 = vpop.eup %2205  ;;  %158 = vmatpush.msra.mxu0 %v129_v24  ;;  %s2337_s30 = smov 8   ;;  %s2338_s0 = smov 16  }
  0x15   :  { %v72_v6 = vmul.f32 32.0, %v2206_v5  ;;  %vm76_vm1 = vweird.f32 %v2206_v5  ;;  %s2339_s23 = smov 24  }
  0x17   :  { %v73_v7 = vsub.f32 1.0, %v72_v6  ;;  %v126_v61 = vld [vmem:[%s3041_s25] sm:$0x3]  ;;  %s3042_s25 = smov 80  }
  0x18   :  { %v127_v62 = vsub.f32 1.0, %v126_v61 }
  0x19   :  { %v74_v8 = vmul.f32 %v2206_v5, %v73_v7 }
  0x1b   :  { %v75_v9 = vadd.f32 %v2206_v5, %v74_v8 }
  0x1d   :  { %v2444_v10 = vsel %vm76_vm1, %v2206_v5, %v75_v9 }
  0x7f   :  { %v67_v11 = vpop.xlane.xlu0 %66  ;;  %v70_v12 = vpop.xlane.xlu1 %69 }
  0x80   :  { %v78_v13 = vmul.f32 %v2444_v10, %v67_v11  ;;  %v79_v14 = vmul.f32 %v2444_v10, %v70_v12 }
  0x82   :  { %v80_v15 = vsub.f32 %v60_v0, %v78_v13  ;;  %v81_v16 = vsub.f32 %v61_v1, %v79_v14  ;;  %v2509_v0 = vmul.f32 -1e+09, %v127_v62 }
  0x84   :  { %v82_v17 = vmul.f32 %v80_v15, %v80_v15  ;;  %v83_v18 = vmul.f32 %v81_v16, %v81_v16  ;;  %v2512_v1 = vperm.slane %v2509_v0, 0 }
  0x86   :  { %v84_v19 = vsel %vm64_vm0, %v82_v17, 0.0  ;;  %v87_v20 = vsel %vm64_vm0, %v83_v18, 0.0 }
  0x87   :  { %85 = vadd.xlane.f32.xlu0 %v84_v19  ;;  %88 = vadd.xlane.f32.xlu1 %v87_v20 }
  0xfa   :  { %v86_v25 = vpop.xlane.xlu0 %85  ;;  %v89_v26 = vpop.xlane.xlu1 %88 }
  0xfb   :  { %v90_v27 = vmul.f32 %v86_v25, %v2444_v10  ;;  %v91_v28 = vmul.f32 %v89_v26, %v2444_v10 }
  0xfd   :  { %v92_v29 = vadd.f32 1e-12, %v90_v27  ;;  %v93_v30 = vadd.f32 1e-12, %v91_v28 }
  0xff   :  { %2207 = vrsqrt.f32 %v92_v29  ;;  %vm110_vm2 = vweird.f32 %v93_v30  ;;  %vm100_vm5 = vweird.f32 %v92_v29 }
 0x100   :  { %2209 = vrsqrt.f32 %v93_v30 }
 0x105   :  { %v2208_v31 = vpop.eup %2207 }
 0x106   :  { %v2210_v32 = vpop.eup %2209  ;;  %v95_v33 = vmul.f32 %v2208_v31, %v92_v29  ;;  %vm101_vm4 = vweird.f32 %v2208_v31 }
 0x107   :  { %v105_v34 = vmul.f32 %v2210_v32, %v93_v30  ;;  %vm111_vm3 = vweird.f32 %v2210_v32  ;;  %vm102_vm7 = vmor %vm100_vm5, %vm101_vm4  ;;  %vm972_vm4 = vcmask 523264  }
 0x108   :  { %v96_v35 = vmul.f32 %v2208_v31, %v95_v33  ;;  %vm112_vm6 = vmor %vm110_vm2, %vm111_vm3 }
 0x109   :  { %v106_v36 = vmul.f32 %v2210_v32, %v105_v34 }
 0x10a   :  { %v97_v37 = vmul.f32 0.5, %v96_v35 }
 0x10b   :  { %v107_v38 = vmul.f32 0.5, %v106_v36 }
 0x10c   :  { %v98_v39 = vsub.f32 1.5, %v97_v37 }
 0x10d   :  { %v108_v40 = vsub.f32 1.5, %v107_v38 }
 0x10e   :  { %v99_v41 = vmul.f32 %v2208_v31, %v98_v39 }
 0x10f   :  { %v109_v43 = vmul.f32 %v2210_v32, %v108_v40 }
 0x110   :  { %v103_v44 = vsel %vm102_vm7, %v2208_v31, %v99_v41 }
 0x111   :  { %v114_v45 = vmul.f32 %v103_v44, %v80_v15  ;;  %v113_v47 = vsel %vm112_vm6, %v2210_v32, %v109_v43 }
 0x112   :  { %v115_v49 = vmul.f32 %v113_v47, %v81_v16 }
 0x113   :  { %v119_v48 = vmul.f32 %v2187_v42, %v114_v45 }
 0x114   :  { %v120_v51 = vmul.f32 %v2187_v42, %v115_v49 }
 0x115   :  { %v2470_v50 = vadd.f32 %v2188_v46, %v119_v48 }
 0x116   :  { %v2474_v52 = vadd.f32 %v2188_v46, %v120_v51 }
 0x117   :  { %2073 = vmatmul.msk.f32.vlgmr.msra.gmra.mxu0 %vm64_vm0, %v2470_v50 }
 0x11f   :  { %2074 = vmatmul.msk.f32.gmra.mxu0 %vm64_vm0, %v2474_v52 }
 0x194   :  { %v160_v54 = vpop.f32.mrf.mxu0 }
 0x195   :  { %v2484_v55 = vadd.f32 %v2481_v53, %v160_v54 }
 0x197   :  { %235 = vrot.lane.b32.xlu0 %v2484_v55, %s3026_s3  ;;  %167 = vrot.lane.b32.xlu2 %v2484_v55, %s2327_s19 }
 0x19c   :  { %v163_v63 = vpop.f32.mrf.mxu0 }
 0x19d   :  { %v2534_v35 = vadd.f32 %v2481_v53, %v163_v63 }
 0x19f   :  { %208 = vrot.lane.b32.xlu0 %v2484_v55, %s3032_s1  ;;  %237 = vrot.lane.b32.xlu2 %v2484_v55, %s2329_s20 }
 0x1a7   :  { %310 = vrot.lane.b32.xlu0 %v2484_v55, %s3034_s21 }
 0x1af   :  { %383 = vrot.lane.b32.xlu0 %v2484_v55, %s3030_s22 }
 0x1b7   :  { %381 = vrot.lane.b32.xlu0 %v2484_v55, %s3024_s2 }
 0x1f1   :  { %v168_v56 = vpop.permute.xlu2 %167 }
 0x1f2   :  { %2075 = vmatpush.xpose.msk.msrb.mxu0 %vm169_vm8, %v168_v56 }
 0x1f5   :  { %2076 = vmatmul.msk.f32.vlgmr.msrb.gmra.mxu0 %vm169_vm8, %v2484_v55 }
 0x1f9   :  { %v238_v57 = vpop.permute.xlu2 %237 }
 0x1fa   :  { %2078 = vmatpush.xpose.msk.msra.mxu3 %vm169_vm8, %v238_v57 }
 0x209   :  { %v236_v58 = vpop.permute.xlu0 %235 }
 0x20a   :  { %2079 = vmatmul.msk.f32.vlgmr.msra.gmra.mxu3 %vm169_vm8, %v236_v58 }
 0x211   :  { %v209_v59 = vpop.permute.xlu0 %208 }
 0x212   :  { %229 = vmatpush.msra.mxu2 %v209_v59 }
 0x219   :  { %v311_v60 = vpop.permute.xlu0 %310 }
 0x21a   :  { %2081 = vmatpush.xpose.msk.msra.mxu1 %vm169_vm8, %v311_v60 }
 0x221   :  { %v384_v31 = vpop.permute.xlu0 %383 }
 0x229   :  { %v382_v34 = vpop.permute.xlu0 %381 }
 0x272   :  { %v191_v2 = vpop.f32.mrf.mxu0 }
 0x273   :  { %v194_v3 = vmul.f32 0.35355338, %v191_v2 }
 0x275   :  { %v196_v4 = vadd.f32 %v2512_v1, %v194_v3 }
 0x277   :  { %v197_v5 = vsel %vm169_vm8, %v196_v4, -inf }
 0x278   :  { %198 = vmax.xlane.f32.xlu1 %v197_v5 }
 0x28d   :  { %v260_v6 = vpop.f32.mrf.mxu3 }
 0x28e   :  { %v263_v7 = vmul.f32 0.35355338, %v260_v6 }
 0x290   :  { %v264_v8 = vadd.f32 %v263_v7, %v2512_v1 }
 0x292   :  { %v265_v9 = vsel %vm169_vm8, %v264_v8, -inf }
 0x293   :  { %266 = vmax.xlane.f32.xlu2 %v265_v9  ;;  %v2572_v9 = vperm.slane %v2509_v0, 1 }
 0x2ab   :  { %308 = vrot.lane.b32.xlu2 %v2484_v55, %s3028_s26 }
 0x2eb   :  { %v199_v11 = vpop.xlane.xlu1 %198 }
 0x2ec   :  { %v200_v12 = vsub.f32 %v196_v4, %v199_v11 }
 0x2ee   :  { %v201_v13 = vmul.f32 1.442695, %v200_v12 }
 0x2f0   :  { %2211 = vpow2.f32 %v201_v13 }
 0x2f6   :  { %v2212_v14 = vpop.eup %2211 }
 0x2f7   :  { %v203_v15 = vsel %vm169_vm8, %v2212_v14, 0.0 }
 0x2f8   :  { %204 = vadd.xlane.f32.xlu1 %v203_v15 }
 0x306   :  { %v267_v16 = vpop.xlane.xlu2 %266 }
 0x307   :  { %v268_v17 = vsub.f32 %v264_v8, %v267_v16 }
 0x309   :  { %v269_v18 = vmul.f32 1.442695, %v268_v17 }
 0x30b   :  { %2213 = vpow2.f32 %v269_v18 }
 0x30e   :  { %v309_v19 = vpop.permute.xlu2 %308 }
 0x30f   :  { %2082 = vmatmul.msk.f32.vlgmr.msra.gmra.mxu1 %vm169_vm8, %v309_v19 }
 0x311   :  { %v2214_v20 = vpop.eup %2213 }
 0x312   :  { %v271_v21 = vsel %vm169_vm8, %v2214_v20, 0.0 }
 0x313   :  { %272 = vadd.xlane.f32.xlu1 %v271_v21 }
 0x32c   :  { %276 = vrot.lane.b32.xlu1 %v2484_v55, %s2334_s27 }
 0x36b   :  { %v205_v22 = vpop.xlane.xlu1 %204 }
 0x36c   :  { %2215 = vrcp.f32 %v205_v22 }
 0x372   :  { %v2216_v23 = vpop.eup %2215 }
 0x373   :  { %v207_v24 = vmul.f32 %v2216_v23, %v2212_v14 }
 0x375   :  { %2077 = vmatmul.msk.f32.vlgmr.msra.gmra.mxu2 %vm169_vm8, %v207_v24 }
 0x386   :  { %v273_v29 = vpop.xlane.xlu1 %272 }
 0x387   :  { %2217 = vrcp.f32 %v273_v29 }
 0x38c   :  { %v333_v25 = vpop.f32.mrf.mxu1 }
 0x38d   :  { %v336_v26 = vmul.f32 0.35355338, %v333_v25  ;;  %v2218_v30 = vpop.eup %2217 }
 0x38e   :  { %v275_v33 = vmul.f32 %v2218_v30, %v2214_v20 }
 0x38f   :  { %v337_v27 = vadd.f32 %v336_v26, %v2512_v1 }
 0x391   :  { %v338_v28 = vsel %vm169_vm8, %v337_v27, -inf }
 0x392   :  { %339 = vmax.xlane.f32.xlu1 %v338_v28 }
 0x39e   :  { %v277_v32 = vpop.permute.xlu1 %276 }
 0x39f   :  { %297 = vmatpush.msrb.mxu2 %v277_v32 }
 0x3a0   :  { %2080 = vmatmul.msk.f32.vlgmr.msrb.gmra.mxu2 %vm169_vm8, %v275_v33 }
 0x3a1   :  { %2084 = vmatpush.xpose.msk.msra.mxu2 %vm169_vm8, %v384_v31 }
 0x3a8   :  { %2085 = vmatmul.msk.f32.vlgmr.msra.gmra.mxu2 %vm169_vm8, %v382_v34 }
 0x3ab   :  { %422 = vrot.lane.b32.xlu1 %v2484_v55, %s2335_s28 }
 0x3b3   :  { %596 = vrot.lane.b32.xlu1 %v2534_v35, %s3034_s21  ;;  %s3047_s21 = smov 64  }
 0x3f8   :  { %v231_v36 = vpop.f32.mrf.mxu2 }
 0x3f9   :  { %234 = vst.msk [vmem:[#allocation2] sm:$0xff] %vm169_vm8, %v231_v36 }
 0x405   :  { %v340_v37 = vpop.xlane.xlu1 %339 }
 0x406   :  { %v341_v38 = vsub.f32 %v337_v27, %v340_v37 }
 0x408   :  { %v342_v39 = vmul.f32 1.442695, %v341_v38 }
 0x40a   :  { %2219 = vpow2.f32 %v342_v39  ;;  %v743_v39 = vld [vmem:[%s3010_s6 + $0x18] sm:$0xff] }
 0x410   :  { %v2220_v40 = vpop.eup %2219 }
 0x411   :  { %v344_v41 = vsel %vm169_vm8, %v2220_v40, 0.0 }
 0x412   :  { %345 = vadd.xlane.f32.xlu2 %v344_v41  ;;  %v741_v41 = vld [vmem:[%s3010_s6 + $0x8] sm:$0xff] }
 0x41d   :  { %v423_v42 = vpop.permute.xlu1 %422 }
 0x41e   :  { %443 = vmatpush.msrb.mxu1 %v423_v42  ;;  %v740_v42 = vld [vmem:[%s3010_s6] sm:$0xff] }
 0x423   :  { %v299_v43 = vpop.f32.mrf.mxu2 }
 0x425   :  { %v597_v60 = vpop.permute.xlu1 %596 }
 0x42a   :  { %455 = vrot.lane.b32.xlu2 %v2534_v35, %s2327_s19 }
 0x42b   :  { %v406_v44 = vpop.f32.mrf.mxu2 }
 0x42c   :  { %v409_v45 = vmul.f32 0.35355338, %v406_v44 }
 0x42e   :  { %v410_v46 = vadd.f32 %v409_v45, %v2512_v1 }
 0x430   :  { %v411_v47 = vsel %vm169_vm8, %v410_v46, -inf }
 0x431   :  { %412 = vmax.xlane.f32.xlu0 %v411_v47 }
 0x432   :  { %594 = vrot.lane.b32.xlu2 %v2534_v35, %s3028_s26 }
 0x445   :  { %349 = vrot.lane.b32.xlu0 %v2484_v55, %s2336_s29 }
 0x44d   :  { %524 = vrot.lane.b32.xlu0 %v2534_v35, %s2329_s20 }
 0x455   :  { %522 = vrot.lane.b32.xlu0 %v2534_v35, %s3026_s3  ;;  %s3043_s3 = smov 72  }
 0x45d   :  { %668 = vrot.lane.b32.xlu0 %v2534_v35, %s3030_s22  ;;  %s2340_s22 = smov [#allocation3]  }
 0x465   :  { %303 = vrot.lane.b32.xlu0 %v299_v43, %s2337_s30 }
 0x485   :  { %v346_v53 = vpop.xlane.xlu2 %345 }
 0x48d   :  { %v456_v59 = vpop.permute.xlu2 %455 }
 0x495   :  { %v595_v63 = vpop.permute.xlu2 %594 }
 0x4a4   :  { %v413_v48 = vpop.xlane.xlu0 %412 }
 0x4a5   :  { %v414_v49 = vsub.f32 %v410_v46, %v413_v48 }
 0x4a7   :  { %v415_v51 = vmul.f32 1.442695, %v414_v49 }
 0x4a9   :  { %2221 = vpow2.f32 %v415_v51 }
 0x4aa   :  { %2223 = vrcp.f32 %v346_v53 }
 0x4af   :  { %v2222_v54 = vpop.eup %2221 }
 0x4b0   :  { %v417_v55 = vsel %vm169_vm8, %v2222_v54, 0.0  ;;  %v2224_v56 = vpop.eup %2223 }
 0x4b1   :  { %418 = vadd.xlane.f32.xlu1 %v417_v55  ;;  %v348_v58 = vmul.f32 %v2224_v56, %v2220_v40  ;;  %v742_v40 = vld [vmem:[%s3010_s6 + $0x10] sm:$0xff] }
 0x4b7   :  { %v350_v57 = vpop.permute.xlu0 %349 }
 0x4b8   :  { %370 = vmatpush.msrb.mxu3 %v350_v57 }
 0x4b9   :  { %2083 = vmatmul.msk.f32.vlgmr.msrb.gmra.mxu3 %vm169_vm8, %v348_v58 }
 0x4ba   :  { %2087 = vmatpush.xpose.msk.msra.mxu3 %vm169_vm8, %v456_v59 }
 0x4be   :  { %2093 = vmatpush.xpose.msk.msrb.mxu3 %vm169_vm8, %v597_v60 }
 0x4bf   :  { %v525_v61 = vpop.permute.xlu0 %524 }
 0x4c0   :  { %2090 = vmatpush.xpose.msk.msrb.mxu2 %vm169_vm8, %v525_v61  ;;  %v2614_v61 = vld [vmem:[%s3011_s7] ss:$0 sm:$0xff] }
 0x4c1   :  { %2088 = vmatmul.msk.f32.vlgmr.msra.gmra.mxu3 %vm169_vm8, %v2534_v35 }
 0x4c2   :  { %766 = vmatpush.msra.mxu3 %v743_v39 }
 0x4c4   :  { %767 = vmatpush.msra.mxu3 %v742_v40 }
 0x4c6   :  { %768 = vmatpush.msra.mxu3 %v741_v41  ;;  %v2649_v41 = vld [vmem:[%s3013_s9] ss:$0 sm:$0xff] }
 0x4c7   :  { %v523_v62 = vpop.permute.xlu0 %522 }
 0x4c8   :  { %2091 = vmatmul.msk.f32.vlgmr.msrb.gmra.mxu2 %vm169_vm8, %v523_v62  ;;  %769 = vmatpush.msra.mxu3 %v740_v42 }
 0x4c9   :  { %2094 = vmatmul.msk.f32.vlgmr.msrb.gmra.mxu3 %vm169_vm8, %v595_v63 }
 0x4ca   :  { %666 = vrot.lane.b32.xlu1 %v2534_v35, %s3024_s2  ;;  %s2062_s2 = sshll.u32 %s2340_s22, 4  ;;  %s2063_s2 = int_to_ptr.vmem [resolvable:$true] %s2062_s2 }
 0x4cf   :  { %v669_v2 = vpop.permute.xlu0 %668 }
 0x4d0   :  { %2096 = vmatpush.xpose.msk.msra.mxu2 %vm169_vm8, %v669_v2 }
 0x4d7   :  { %v304_v3 = vpop.permute.xlu0 %303 }
 0x4d8   :  { %307 = vst.msk [vmem:[#allocation2] sm:$0xff] %vm306_vm9, %v304_v3 }
 0x524   :  { %v419_v4 = vpop.xlane.xlu1 %418 }
 0x525   :  { %2225 = vrcp.f32 %v419_v4 }
 0x52b   :  { %v2226_v5 = vpop.eup %2225 }
 0x52c   :  { %v421_v6 = vmul.f32 %v2226_v5, %v2222_v54 }
 0x52e   :  { %2086 = vmatmul.msk.f32.vlgmr.msrb.gmra.mxu1 %vm169_vm8, %v421_v6 }
 0x53c   :  { %v372_v7 = vpop.f32.mrf.mxu3  ;;  %v667_v8 = vpop.permute.xlu1 %666 }
 0x53d   :  { %376 = vrot.lane.b32.xlu2 %v372_v7, %s2338_s0  ;;  %2097 = vmatmul.msk.f32.vlgmr.msra.gmra.mxu2 %vm169_vm8, %v667_v8 }
 0x544   :  { %v478_v11 = vpop.f32.mrf.mxu3 }
 0x545   :  { %v481_v12 = vmul.f32 0.35355338, %v478_v11 }
 0x547   :  { %v483_v13 = vadd.f32 %v2572_v9, %v481_v12 }
 0x549   :  { %v484_v14 = vsel %vm169_vm8, %v483_v13, -inf }
 0x54a   :  { %485 = vmax.xlane.f32.xlu0 %v484_v14 }
 0x54b   :  { %v547_v15 = vpop.f32.mrf.mxu2 }
 0x54c   :  { %v550_v16 = vmul.f32 0.35355338, %v547_v15  ;;  %v619_v29 = vpop.f32.mrf.mxu3 }
 0x54d   :  { %v622_v30 = vmul.f32 0.35355338, %v619_v29 }
 0x54e   :  { %v551_v17 = vadd.f32 %v550_v16, %v2572_v9 }
 0x54f   :  { %v623_v31 = vadd.f32 %v622_v30, %v2572_v9 }
 0x550   :  { %v552_v18 = vsel %vm169_vm8, %v551_v17, -inf }
 0x551   :  { %v624_v32 = vsel %vm169_vm8, %v623_v31, -inf }
 0x566   :  { %553 = vmax.xlane.f32.xlu2 %v552_v18 }
 0x597   :  { %v377_v19 = vpop.permute.xlu2 %376 }
 0x598   :  { %380 = vst.msk [vmem:[#allocation2] sm:$0xff] %vm379_vm10, %v377_v19 }
 0x5ab   :  { %v445_v0 = vpop.f32.mrf.mxu1 }
 0x5ac   :  { %449 = vrot.lane.b32.xlu1 %v445_v0, %s2339_s23 }
 0x5bd   :  { %v486_v20 = vpop.xlane.xlu0 %485 }
 0x5be   :  { %v487_v21 = vsub.f32 %v483_v13, %v486_v20 }
 0x5c0   :  { %v488_v22 = vmul.f32 1.442695, %v487_v21  ;;  %v691_v23 = vpop.f32.mrf.mxu2 }
 0x5c1   :  { %v694_v24 = vmul.f32 0.35355338, %v691_v23 }
 0x5c2   :  { %2227 = vpow2.f32 %v488_v22 }
 0x5c3   :  { %v695_v25 = vadd.f32 %v694_v24, %v2572_v9  ;;  %v838_v24 = vld [vmem:[%s3014_s10 + $0x18] sm:$0xff] }
 0x5c5   :  { %v696_v26 = vsel %vm169_vm8, %v695_v25, -inf }
 0x5c6   :  { %697 = vmax.xlane.f32.xlu2 %v696_v26  ;;  %v836_v26 = vld [vmem:[%s3014_s10 + $0x8] sm:$0xff] }
 0x5c8   :  { %v2228_v27 = vpop.eup %2227 }
 0x5c9   :  { %v490_v28 = vsel %vm169_vm8, %v2228_v27, 0.0 }
 0x5ca   :  { %491 = vadd.xlane.f32.xlu0 %v490_v28 }
 0x5d6   :  { %625 = vmax.xlane.f32.xlu1 %v624_v32 }
 0x5d9   :  { %v554_v33 = vpop.xlane.xlu2 %553 }
 0x5da   :  { %v555_v34 = vsub.f32 %v551_v17, %v554_v33 }
 0x5dc   :  { %v556_v36 = vmul.f32 1.442695, %v555_v34 }
 0x5de   :  { %2229 = vpow2.f32 %v556_v36  ;;  %495 = vrot.lane.b32.xlu0 %v2534_v35, %s3032_s1  ;;  %s3044_s1 = smov 112  }
 0x5e4   :  { %v2230_v37 = vpop.eup %2229 }
 0x5e5   :  { %v558_v38 = vsel %vm169_vm8, %v2230_v37, 0.0 }
 0x5e6   :  { %707 = vrot.lane.b32.xlu0 %v2534_v35, %s2335_s28  ;;  %559 = vadd.xlane.f32.xlu1 %v558_v38  ;;  %v2644_v38 = vld [vmem:[%s3012_s8] ss:$0 sm:$0xff] }
 0x61e   :  { %v450_v43 = vpop.permute.xlu1 %449 }
 0x61f   :  { %453 = vst.msk [vmem:[#allocation2] sm:$0xff] %vm452_vm11, %v450_v43 }
 0x626   :  { %v738_v44 = vld [vmem:[#allocation2] sm:$0xff] }
 0x627   :  { %2099 = vmatmul.msk.f32.vlgmr.msra.gmra.mxu3 %vm64_vm0, %v738_v44 }
 0x639   :  { %v698_v45 = vpop.xlane.xlu2 %697 }
 0x63a   :  { %v699_v46 = vsub.f32 %v695_v25, %v698_v45  ;;  %v837_v25 = vld [vmem:[%s3014_s10 + $0x10] sm:$0xff] }
 0x63c   :  { %v700_v47 = vmul.f32 1.442695, %v699_v46 }
 0x63d   :  { %v492_v49 = vpop.xlane.xlu0 %491 }
 0x63e   :  { %2231 = vpow2.f32 %v700_v47 }
 0x63f   :  { %2233 = vrcp.f32 %v492_v49 }
 0x644   :  { %v2232_v48 = vpop.eup %2231 }
 0x645   :  { %v702_v51 = vsel %vm169_vm8, %v2232_v48, 0.0  ;;  %v2234_v56 = vpop.eup %2233 }
 0x646   :  { %703 = vadd.xlane.f32.xlu1 %v702_v51  ;;  %v494_v57 = vmul.f32 %v2234_v56, %v2228_v27  ;;  %v835_v27 = vld [vmem:[%s3014_s10] sm:$0xff]  ;;  %v967_v56 = vld [vmem:[%s3016_s12 + $0x38] sm:$0xff] }
 0x647   :  { %987 = vmatpush.msrb.mxu2 %v967_v56 }
 0x649   :  { %v626_v53 = vpop.xlane.xlu1 %625 }
 0x64a   :  { %v627_v54 = vsub.f32 %v623_v31, %v626_v53 }
 0x64c   :  { %v628_v55 = vmul.f32 1.442695, %v627_v54 }
 0x64e   :  { %2235 = vpow2.f32 %v628_v55 }
 0x650   :  { %v496_v58 = vpop.permute.xlu0 %495 }
 0x651   :  { %516 = vmatpush.msra.mxu0 %v496_v58 }
 0x652   :  { %2089 = vmatmul.msk.f32.vlgmr.msra.gmra.mxu0 %vm169_vm8, %v494_v57 }
 0x654   :  { %v2236_v59 = vpop.eup %2235 }
 0x655   :  { %v630_v60 = vsel %vm169_vm8, %v2236_v59, 0.0 }
 0x656   :  { %631 = vadd.xlane.f32.xlu2 %v630_v60 }
 0x659   :  { %v560_v4 = vpop.xlane.xlu1 %559 }
 0x65a   :  { %2237 = vrcp.f32 %v560_v4  ;;  %v964_v4 = vld [vmem:[%s3016_s12 + $0x20] sm:$0xff] }
 0x65f   :  { %635 = vrot.lane.b32.xlu1 %v2534_v35, %s2336_s29 }
 0x660   :  { %v2238_v7 = vpop.eup %2237 }
 0x661   :  { %v562_v11 = vmul.f32 %v2238_v7, %v2230_v37  ;;  %v963_v7 = vld [vmem:[%s3016_s12 + $0x18] sm:$0xff] }
 0x66e   :  { %563 = vrot.lane.b32.xlu2 %v2534_v35, %s2334_s27 }
 0x6aa   :  { %v771_v62 = vpop.f32.mrf.mxu3 }
 0x6ab   :  { %v772_v63 = vadd.f32 %v2614_v61, %v771_v62 }
 0x6ad   :  { %v777_v2 = vadd.f32 %v772_v63, %v2470_v50  ;;  %v708_v50 = vpop.permute.xlu0 %707  ;;  %v965_v63 = vld [vmem:[%s3016_s12 + $0x28] sm:$0xff] }
 0x6af   :  { %v781_v3 = vsel %vm64_vm0, %v777_v2, 0.0 }
 0x6b0   :  { %782 = vadd.xlane.f32.xlu0 %v781_v3 }
 0x6b9   :  { %v704_v5 = vpop.xlane.xlu1 %703 }
 0x6c9   :  { %v632_v6 = vpop.xlane.xlu2 %631 }
 0x6ca   :  { %2239 = vrcp.f32 %v632_v6 }
 0x6cb   :  { %2241 = vrcp.f32 %v704_v5 }
 0x6cf   :  { %v518_v35 = vpop.f32.mrf.mxu0 }
 0x6d0   :  { %v2240_v8 = vpop.eup %2239  ;;  %521 = vst.msk [vmem:[#allocation2 + $0x8] sm:$0xff] %vm169_vm8, %v518_v35 }
 0x6d1   :  { %v634_v12 = vmul.f32 %v2240_v8, %v2236_v59  ;;  %v564_v13 = vpop.permute.xlu2 %563  ;;  %v636_v14 = vpop.permute.xlu1 %635  ;;  %v966_v59 = vld [vmem:[%s3016_s12 + $0x30] sm:$0xff] }
 0x6d2   :  { %584 = vmatpush.msra.mxu1 %v564_v13  ;;  %656 = vmatpush.msrb.mxu0 %v636_v14  ;;  %v2242_v15 = vpop.eup %2241  ;;  %v962_v8 = vld [vmem:[%s3016_s12 + $0x10] sm:$0xff]  ;;  %v961_v13 = vld [vmem:[%s3016_s12 + $0x8] sm:$0xff]  ;;  %v960_v14 = vld [vmem:[%s3016_s12] sm:$0xff] }
 0x6d3   :  { %2092 = vmatmul.msk.f32.vlgmr.msra.gmra.mxu1 %vm169_vm8, %v562_v11  ;;  %2095 = vmatmul.msk.f32.vlgmr.msrb.gmra.mxu0 %vm169_vm8, %v634_v12  ;;  %v706_v16 = vmul.f32 %v2242_v15, %v2232_v48  ;;  %v2664_v48 = vld [vmem:[%s3015_s11] ss:$0 sm:$0xff] }
 0x6d4   :  { %728 = vmatpush.msrb.mxu1 %v708_v50  ;;  %861 = vmatpush.msra.mxu0 %v838_v24 }
 0x6d5   :  { %988 = vmatpush.msrb.mxu2 %v966_v59 }
 0x6d6   :  { %862 = vmatpush.msra.mxu0 %v837_v25 }
 0x6d7   :  { %989 = vmatpush.msrb.mxu2 %v965_v63 }
 0x6d8   :  { %863 = vmatpush.msra.mxu0 %v836_v26 }
 0x6d9   :  { %990 = vmatpush.msrb.mxu2 %v964_v4 }
 0x6da   :  { %864 = vmatpush.msra.mxu0 %v835_v27 }
 0x6db   :  { %2098 = vmatmul.msk.f32.vlgmr.msrb.gmra.mxu1 %vm169_vm8, %v706_v16  ;;  %991 = vmatpush.msrb.mxu2 %v963_v7 }
 0x6dd   :  { %992 = vmatpush.msrb.mxu2 %v962_v8 }
 0x6df   :  { %993 = vmatpush.msrb.mxu2 %v961_v13 }
 0x6e1   :  { %994 = vmatpush.msrb.mxu2 %v960_v14  ;;  %v2110_v14 = vld [vmem:[%s3008_s4 + $0x38] sm:$0xff] }
 0x6e2   :  { %1088 = vmatpush.msra.mxu1 %v2110_v14 }
 0x723   :  { %v783_v17 = vpop.xlane.xlu0 %782 }
 0x724   :  { %v787_v18 = vmul.f32 %v783_v17, %v2444_v10 }
 0x726   :  { %v789_v19 = vsub.f32 %v777_v2, %v787_v18 }
 0x728   :  { %v791_v0 = vmul.f32 %v789_v19, %v789_v19 }
 0x72a   :  { %v793_v20 = vsel %vm64_vm0, %v791_v0, 0.0 }
 0x72b   :  { %794 = vadd.xlane.f32.xlu2 %v793_v20 }
 0x750   :  { %v586_v21 = vpop.f32.mrf.mxu1  ;;  %v658_v22 = vpop.f32.mrf.mxu0 }
 0x751   :  { %590 = vrot.lane.b32.xlu1 %v586_v21, %s2337_s30 }
 0x758   :  { %v730_v23 = vpop.f32.mrf.mxu1 }
 0x759   :  { %662 = vrot.lane.b32.xlu1 %v658_v22, %s2338_s0 }
 0x761   :  { %734 = vrot.lane.b32.xlu1 %v730_v23, %s2339_s23 }
 0x79e   :  { %v795_v28 = vpop.xlane.xlu2 %794 }
 0x79f   :  { %v799_v29 = vmul.f32 %v795_v28, %v2444_v10 }
 0x7a1   :  { %v801_v30 = vadd.f32 1e-12, %v799_v29 }
 0x7a3   :  { %2243 = vrsqrt.f32 %v801_v30  ;;  %vm809_vm13 = vweird.f32 %v801_v30 }
 0x7a9   :  { %v2244_v31 = vpop.eup %2243 }
 0x7aa   :  { %v804_v32 = vmul.f32 %v2244_v31, %v801_v30  ;;  %vm810_vm12 = vweird.f32 %v2244_v31 }
 0x7ab   :  { %vm811_vm14 = vmor %vm809_vm13, %vm810_vm12 }
 0x7ac   :  { %v805_v33 = vmul.f32 %v2244_v31, %v804_v32 }
 0x7ae   :  { %v806_v34 = vmul.f32 0.5, %v805_v33 }
 0x7b0   :  { %v807_v36 = vsub.f32 1.5, %v806_v34 }
 0x7b2   :  { %v808_v37 = vmul.f32 %v2244_v31, %v807_v36 }
 0x7b4   :  { %v812_v39 = vsel %vm811_vm14, %v2244_v31, %v808_v37 }
 0x7b5   :  { %v823_v40 = vmul.f32 %v812_v39, %v789_v19 }
 0x7b7   :  { %v828_v42 = vmul.f32 %v2644_v38, %v823_v40 }
 0x7b9   :  { %v2653_v43 = vadd.f32 %v2649_v41, %v828_v42 }
 0x7bb   :  { %2101 = vmatmul.msk.f32.vlgmr.msra.gmra.mxu0 %vm64_vm0, %v2653_v43 }
 0x7c3   :  { %v591_v44 = vpop.permute.xlu1 %590 }
 0x7c4   :  { %593 = vst.msk [vmem:[#allocation2 + $0x8] sm:$0xff] %vm306_vm9, %v591_v44 }
 0x7cb   :  { %v663_v45 = vpop.permute.xlu1 %662 }
 0x7cc   :  { %665 = vst.msk [vmem:[#allocation2 + $0x8] sm:$0xff] %vm379_vm10, %v663_v45 }
 0x7d3   :  { %v735_v46 = vpop.permute.xlu1 %734 }
 0x7d4   :  { %737 = vst.msk [vmem:[#allocation2 + $0x8] sm:$0xff] %vm452_vm11, %v735_v46 }
 0x7db   :  { %v739_v47 = vld [vmem:[#allocation2 + $0x8] sm:$0xff] }
 0x7dc   :  { %2100 = vmatmul.msk.f32.gmra.mxu3 %vm64_vm0, %v739_v47 }
 0x838   :  { %v866_v49 = vpop.f32.mrf.mxu0 }
 0x839   :  { %v867_v51 = vadd.f32 %v2664_v48, %v866_v49 }
 0x83b   :  { %v874_v53 = vmul.f32 0.70710677, %v867_v51  ;;  %v872_v42 = vmul.f32 0.5, %v867_v51 }
 0x83d   :  { %v876_v54 = vmul.f32 %v874_v53, %v874_v53 }
 0x83f   :  { %v877_v55 = vmin.f32 %v876_v54, 16.0 }
 0x841   :  { %v878_v57 = vmul.f32 2.1237322e-06, %v877_v55  ;;  %v889_v58 = vmul.f32 3.8918573e-05, %v877_v55 }
 0x843   :  { %v879_v60 = vadd.f32 0.00028619796, %v878_v57  ;;  %v890_v62 = vadd.f32 0.001143296, %v889_v58 }
 0x845   :  { %v880_v2 = vmul.f32 %v879_v60, %v877_v55  ;;  %v891_v3 = vmul.f32 %v890_v62, %v877_v55 }
 0x847   :  { %v881_v5 = vadd.f32 0.0036580483, %v880_v2  ;;  %v892_v6 = vadd.f32 0.014752088, %v891_v3 }
 0x849   :  { %v893_v35 = vmul.f32 %v892_v6, %v877_v55  ;;  %v882_v11 = vmul.f32 %v881_v5, %v877_v55 }
 0x84b   :  { %v894_v12 = vadd.f32 0.112945676, %v893_v35  ;;  %v883_v15 = vadd.f32 0.05243302, %v882_v11 }
 0x84d   :  { %v895_v50 = vmul.f32 %v894_v12, %v877_v55  ;;  %v884_v18 = vmul.f32 %v883_v15, %v877_v55 }
 0x84f   :  { %v896_v16 = vadd.f32 0.4994258, %v895_v50  ;;  %v885_v0 = vadd.f32 0.18741608, %v884_v18  ;;  %v2107_v50 = vld [vmem:[%s3008_s4 + $0x20] sm:$0xff] }
 0x851   :  { %v897_v17 = vmul.f32 %v896_v16, %v877_v55  ;;  %v886_v21 = vmul.f32 %v885_v0, %v877_v55 }
 0x853   :  { %v898_v19 = vadd.f32 1.0, %v897_v17  ;;  %v887_v24 = vadd.f32 1.1283791, %v886_v21 }
 0x855   :  { %2245 = vrcp.f32 %v898_v19  ;;  %v910_v25 = vand.u32 2147483648, %v898_v19  ;;  %v908_v28 = vand.u32 2147483647, %v898_v19  ;;  %vm904_vm1 = vweird.f32 %v898_v19 }
 0x856   :  { %v888_v33 = vmul.f32 %v887_v24, %v874_v53  ;;  %v2700_v53 = vld [vmem:[%s3017_s13] ss:$0 sm:$0xff] }
 0x857   :  { %v911_v32 = vor.u32 1.1754944e-38, %v910_v25  ;;  %vm909_vm3 = vcmp.eq.f32.partialorder %v908_v28, 8.507059e+37 }
 0x85b   :  { %v2246_v20 = vpop.eup %2245 }
 0x85c   :  { %v900_v22 = vmul.f32 %v2246_v20, %v898_v19  ;;  %vm905_vm15 = vweird.f32 %v2246_v20 }
 0x85d   :  { %vm906_vm2 = vmor %vm904_vm1, %vm905_vm15 }
 0x85e   :  { %v901_v23 = vsub.f32 1.0, %v900_v22 }
 0x85f   :  { %v774_v26 = vpop.f32.mrf.mxu3 }
 0x860   :  { %v902_v27 = vmul.f32 %v2246_v20, %v901_v23  ;;  %v775_v29 = vadd.f32 %v2614_v61, %v774_v26 }
 0x862   :  { %v903_v30 = vadd.f32 %v2246_v20, %v902_v27  ;;  %v778_v31 = vadd.f32 %v775_v29, %v2474_v52 }
 0x864   :  { %v907_v34 = vsel %vm906_vm2, %v2246_v20, %v903_v30  ;;  %v784_v36 = vsel %vm64_vm0, %v778_v31, 0.0 }
 0x865   :  { %v912_v37 = vsel %vm909_vm3, %v911_v32, %v907_v34  ;;  %785 = vadd.xlane.f32.xlu1 %v784_v36  ;;  %v2731_v32 = vld [vmem:[%s3018_s14] ss:$0 sm:$0xff] }
 0x866   :  { %v913_v39 = vmul.f32 %v912_v37, %v888_v33 }
 0x868   :  { %v2103_v40 = vclamps-f32 %v913_v39, 1.0  ;;  %v2736_v39 = vld [vmem:[%s3019_s15] ss:$0 sm:$0xff] }
 0x86a   :  { %v956_v44 = vadd.f32 1.0, %v2103_v40 }
 0x86c   :  { %v958_v45 = vmul.f32 %v956_v44, %v872_v42 }
 0x86e   :  { %2105 = vmatmul.msk.f32.vlgmr.msrb.gmra.mxu2 %vm972_vm4, %v958_v45 }
 0x8d8   :  { %v786_v61 = vpop.xlane.xlu1 %785 }
 0x8d9   :  { %v788_v52 = vmul.f32 %v786_v61, %v2444_v10 }
 0x8db   :  { %v790_v46 = vsub.f32 %v778_v31, %v788_v52 }
 0x8dd   :  { %v792_v47 = vmul.f32 %v790_v46, %v790_v46 }
 0x8df   :  { %v796_v49 = vsel %vm64_vm0, %v792_v47, 0.0 }
 0x8e0   :  { %797 = vadd.xlane.f32.xlu0 %v796_v49 }
 0x8f1   :  { %v996_v54 = vpop.f32.mrf.mxu2 }
 0x8f2   :  { %v997_v51 = vadd.f32 %v2700_v53, %v996_v54 }
 0x8f4   :  { %v1002_v55 = vadd.f32 %v997_v51, %v2653_v43 }
 0x8f6   :  { %v1006_v56 = vsel %vm64_vm0, %v1002_v55, 0.0 }
 0x8f7   :  { %1007 = vadd.xlane.f32.xlu2 %v1006_v56 }
 0x953   :  { %v798_v57 = vpop.xlane.xlu0 %797 }
 0x954   :  { %v800_v58 = vmul.f32 %v798_v57, %v2444_v10 }
 0x956   :  { %v802_v59 = vadd.f32 1e-12, %v800_v58 }
 0x958   :  { %2247 = vrsqrt.f32 %v802_v59  ;;  %vm819_vm6 = vweird.f32 %v802_v59 }
 0x95e   :  { %v2248_v60 = vpop.eup %2247 }
 0x95f   :  { %v814_v62 = vmul.f32 %v2248_v60, %v802_v59  ;;  %vm820_vm5 = vweird.f32 %v2248_v60 }
 0x960   :  { %vm821_vm7 = vmor %vm819_vm6, %vm820_vm5 }
 0x961   :  { %v815_v63 = vmul.f32 %v2248_v60, %v814_v62 }
 0x963   :  { %v816_v2 = vmul.f32 0.5, %v815_v63 }
 0x965   :  { %v817_v3 = vsub.f32 1.5, %v816_v2 }
 0x967   :  { %v818_v4 = vmul.f32 %v2248_v60, %v817_v3 }
 0x969   :  { %v822_v5 = vsel %vm821_vm7, %v2248_v60, %v818_v4 }
 0x96a   :  { %v1008_v6 = vpop.xlane.xlu2 %1007  ;;  %v824_v43 = vmul.f32 %v822_v5, %v790_v46 }
 0x96b   :  { %v1012_v7 = vmul.f32 %v1008_v6, %v2444_v10 }
 0x96c   :  { %v829_v35 = vmul.f32 %v2644_v38, %v824_v43  ;;  %v2109_v38 = vld [vmem:[%s3008_s4 + $0x30] sm:$0xff] }
 0x96d   :  { %v1014_v8 = vsub.f32 %v1002_v55, %v1012_v7  ;;  %1089 = vmatpush.msra.mxu1 %v2109_v38  ;;  %v2197_v38 = vld [vmem:[%s3009_s5 + $0x1] ss:$0 sm:$0xff]  ;;  %s3045_s5 = smov 120  }
 0x96e   :  { %v2709_v11 = vadd.f32 %v2649_v41, %v829_v35  ;;  %v2108_v41 = vld [vmem:[%s3008_s4 + $0x28] sm:$0xff]  ;;  %s3046_s4 = smov 104  }
 0x96f   :  { %v1016_v12 = vmul.f32 %v1014_v8, %v1014_v8  ;;  %1090 = vmatpush.msra.mxu1 %v2108_v41 }
 0x970   :  { %2102 = vmatmul.msk.f32.gmra.mxu0 %vm64_vm0, %v2709_v11 }
 0x971   :  { %v1018_v13 = vsel %vm64_vm0, %v1016_v12, 0.0  ;;  %1091 = vmatpush.msra.mxu1 %v2107_v50 }
 0x972   :  { %1019 = vadd.xlane.f32.xlu0 %v1018_v13 }
 0x9e5   :  { %v1020_v15 = vpop.xlane.xlu0 %1019 }
 0x9e6   :  { %v1024_v16 = vmul.f32 %v1020_v15, %v2444_v10 }
 0x9e8   :  { %v1026_v17 = vadd.f32 1e-12, %v1024_v16 }
 0x9ea   :  { %2249 = vrsqrt.f32 %v1026_v17  ;;  %vm1034_vm13 = vweird.f32 %v1026_v17 }
 0x9ed   :  { %v869_v18 = vpop.f32.mrf.mxu0 }
 0x9ee   :  { %v870_v19 = vadd.f32 %v2664_v48, %v869_v18 }
 0x9f0   :  { %v2250_v0 = vpop.eup %2249  ;;  %v875_v20 = vmul.f32 0.70710677, %v870_v19  ;;  %v873_v12 = vmul.f32 0.5, %v870_v19 }
 0x9f1   :  { %v1029_v21 = vmul.f32 %v2250_v0, %v1026_v17  ;;  %vm1035_vm12 = vweird.f32 %v2250_v0 }
 0x9f2   :  { %v916_v22 = vmul.f32 %v875_v20, %v875_v20  ;;  %vm1036_vm14 = vmor %vm1034_vm13, %vm1035_vm12 }
 0x9f3   :  { %v1030_v23 = vmul.f32 %v2250_v0, %v1029_v21 }
 0x9f4   :  { %v917_v24 = vmin.f32 %v916_v22, 16.0 }
 0x9f5   :  { %v1031_v25 = vmul.f32 0.5, %v1030_v23 }
 0x9f6   :  { %v918_v26 = vmul.f32 2.1237322e-06, %v917_v24  ;;  %v929_v27 = vmul.f32 3.8918573e-05, %v917_v24 }
 0x9f7   :  { %v1032_v28 = vsub.f32 1.5, %v1031_v25 }
 0x9f8   :  { %v919_v29 = vadd.f32 0.00028619796, %v918_v26  ;;  %v930_v30 = vadd.f32 0.001143296, %v929_v27 }
 0x9f9   :  { %v1033_v31 = vmul.f32 %v2250_v0, %v1032_v28 }
 0x9fa   :  { %v920_v48 = vmul.f32 %v919_v29, %v917_v24  ;;  %v931_v33 = vmul.f32 %v930_v30, %v917_v24 }
 0x9fb   :  { %v1037_v34 = vsel %vm1036_vm14, %v2250_v0, %v1033_v31 }
 0x9fc   :  { %v1048_v36 = vmul.f32 %v1037_v34, %v1014_v8  ;;  %v932_v37 = vadd.f32 0.014752088, %v931_v33  ;;  %v921_v40 = vadd.f32 0.0036580483, %v920_v48 }
 0x9fe   :  { %v1053_v42 = vmul.f32 %v2731_v32, %v1048_v36  ;;  %v933_v44 = vmul.f32 %v932_v37, %v917_v24  ;;  %v922_v52 = vmul.f32 %v921_v40, %v917_v24 }
 0xa00   :  { %v934_v45 = vadd.f32 0.112945676, %v933_v44  ;;  %v2740_v61 = vadd.f32 %v2736_v39, %v1053_v42  ;;  %v923_v49 = vadd.f32 0.05243302, %v922_v52 }
 0xa02   :  { %v935_v46 = vmul.f32 %v934_v45, %v917_v24  ;;  %2112 = vmatmul.msk.f32.vlgmr.msra.gmra.mxu1 %vm64_vm0, %v2740_v61  ;;  %v924_v55 = vmul.f32 %v923_v49, %v917_v24 }
 0xa04   :  { %v936_v47 = vadd.f32 0.4994258, %v935_v46  ;;  %v925_v56 = vadd.f32 0.18741608, %v924_v55 }
 0xa06   :  { %v937_v54 = vmul.f32 %v936_v47, %v917_v24  ;;  %v926_v58 = vmul.f32 %v925_v56, %v917_v24 }
 0xa08   :  { %v938_v51 = vadd.f32 1.0, %v937_v54  ;;  %v927_v63 = vadd.f32 1.1283791, %v926_v58 }
 0xa0a   :  { %2251 = vrcp.f32 %v938_v51  ;;  %v950_v62 = vand.u32 2147483648, %v938_v51  ;;  %v948_v3 = vand.u32 2147483647, %v938_v51  ;;  %vm944_vm1 = vweird.f32 %v938_v51 }
 0xa0b   :  { %v928_v6 = vmul.f32 %v927_v63, %v875_v20 }
 0xa0c   :  { %v951_v5 = vor.u32 1.1754944e-38, %v950_v62  ;;  %vm949_vm3 = vcmp.eq.f32.partialorder %v948_v3, 8.507059e+37 }
 0xa10   :  { %v2252_v57 = vpop.eup %2251 }
 0xa11   :  { %v940_v59 = vmul.f32 %v2252_v57, %v938_v51  ;;  %vm945_vm15 = vweird.f32 %v2252_v57 }
 0xa12   :  { %vm946_vm2 = vmor %vm944_vm1, %vm945_vm15 }
 0xa13   :  { %v941_v60 = vsub.f32 1.0, %v940_v59 }
 0xa15   :  { %v942_v2 = vmul.f32 %v2252_v57, %v941_v60 }
 0xa17   :  { %v943_v4 = vadd.f32 %v2252_v57, %v942_v2 }
 0xa19   :  { %v947_v43 = vsel %vm946_vm2, %v2252_v57, %v943_v4 }
 0xa1a   :  { %v952_v7 = vsel %vm949_vm3, %v951_v5, %v947_v43 }
 0xa1b   :  { %v953_v35 = vmul.f32 %v952_v7, %v928_v6 }
 0xa1d   :  { %v2104_v8 = vclamps-f32 %v953_v35, 1.0 }
 0xa1f   :  { %v957_v13 = vadd.f32 1.0, %v2104_v8 }
 0xa21   :  { %v959_v14 = vmul.f32 %v957_v13, %v873_v12 }
 0xa23   :  { %2106 = vmatmul.msk.f32.gmra.mxu2 %vm972_vm4, %v959_v14 }
 0xa7f   :  { %v1093_v41 = vpop.f32.mrf.mxu1 }
 0xa80   :  { %v2748_v50 = vadd.f32 %v2197_v38, %v1093_v41 }
 0xa82   :  { %1100 = vrot.lane.b32.xlu2 %v2748_v50, %s2327_s19 }
 0xa8a   :  { %1168 = vrot.lane.b32.xlu2 %v2748_v50, %s2329_s20 }
 0xa92   :  { %1240 = vrot.lane.b32.xlu2 %v2748_v50, %s3042_s25 }
 0xa9a   :  { %1312 = vrot.lane.b32.xlu2 %v2748_v50, %s3043_s3 }
 0xaa2   :  { %1238 = vrot.lane.b32.xlu2 %v2748_v50, %s3044_s1 }
 0xaa6   :  { %v999_v15 = vpop.f32.mrf.mxu2 }
 0xaa7   :  { %v1000_v16 = vadd.f32 %v2700_v53, %v999_v15 }
 0xaa9   :  { %v1003_v17 = vadd.f32 %v1000_v16, %v2709_v11 }
 0xaab   :  { %v1009_v18 = vsel %vm64_vm0, %v1003_v17, 0.0 }
 0xaac   :  { %1010 = vadd.xlane.f32.xlu0 %v1009_v18 }
 0xadc   :  { %v1101_v19 = vpop.permute.xlu2 %1100 }
 0xadd   :  { %2114 = vmatpush.xpose.msk.msrb.mxu3 %vm169_vm8, %v1101_v19 }
 0xae0   :  { %2115 = vmatmul.msk.f32.vlgmr.msrb.gmra.mxu3 %vm169_vm8, %v2748_v50 }
 0xae4   :  { %v1169_v0 = vpop.permute.xlu2 %1168 }
 0xae5   :  { %2117 = vmatpush.xpose.msk.msrb.mxu1 %vm169_vm8, %v1169_v0 }
 0xaec   :  { %v1241_v20 = vpop.permute.xlu2 %1240 }
 0xaf4   :  { %v1313_v21 = vpop.permute.xlu2 %1312 }
 0xaf5   :  { %2123 = vmatpush.xpose.msk.msra.mxu1 %vm169_vm8, %v1313_v21 }
 0xafc   :  { %v1239_v5 = vpop.permute.xlu2 %1238 }
 0xb1f   :  { %v1011_v22 = vpop.xlane.xlu0 %1010 }
 0xb20   :  { %v1013_v53 = vmul.f32 %v1011_v22, %v2444_v10 }
 0xb22   :  { %v1015_v11 = vsub.f32 %v1003_v17, %v1013_v53 }
 0xb24   :  { %v1017_v23 = vmul.f32 %v1015_v11, %v1015_v11 }
 0xb26   :  { %v1021_v24 = vsel %vm64_vm0, %v1017_v23, 0.0 }
 0xb27   :  { %1022 = vadd.xlane.f32.xlu0 %v1021_v24 }
 0xb3b   :  { %1166 = vrot.lane.b32.xlu0 %v2748_v50, %s3045_s5 }
 0xb43   :  { %1310 = vrot.lane.b32.xlu0 %v2748_v50, %s3046_s4 }
 0xb63   :  { %v1123_v25 = vpop.f32.mrf.mxu3 }
 0xb64   :  { %v1126_v26 = vmul.f32 0.35355338, %v1123_v25 }
 0xb66   :  { %v1127_v27 = vadd.f32 %v1126_v26, %v2512_v1 }
 0xb68   :  { %v1128_v28 = vsel %vm169_vm8, %v1127_v27, -inf }
 0xb69   :  { %1129 = vmax.xlane.f32.xlu1 %v1128_v28 }
 0xb82   :  { %1139 = vrot.lane.b32.xlu1 %v2748_v50, %s3047_s21 }
 0xb9a   :  { %v1023_v29 = vpop.xlane.xlu0 %1022 }
 0xb9b   :  { %v1025_v30 = vmul.f32 %v1023_v29, %v2444_v10 }
 0xb9d   :  { %v1027_v31 = vadd.f32 1e-12, %v1025_v30 }
 0xb9f   :  { %2253 = vrsqrt.f32 %v1027_v31  ;;  %vm1044_vm6 = vweird.f32 %v1027_v31 }
 0xba5   :  { %v2254_v48 = vpop.eup %2253 }
 0xba6   :  { %v1039_v33 = vmul.f32 %v2254_v48, %v1027_v31  ;;  %vm1045_vm5 = vweird.f32 %v2254_v48 }
 0xba7   :  { %vm1046_vm7 = vmor %vm1044_vm6, %vm1045_vm5 }
 0xba8   :  { %v1040_v34 = vmul.f32 %v2254_v48, %v1039_v33 }
 0xbaa   :  { %v1041_v36 = vmul.f32 0.5, %v1040_v34 }
 0xbac   :  { %v1042_v37 = vsub.f32 1.5, %v1041_v36 }
 0xbad   :  { %v1167_v46 = vpop.permute.xlu0 %1166 }
 0xbae   :  { %v1043_v40 = vmul.f32 %v2254_v48, %v1042_v37 }
 0xbb0   :  { %v1047_v42 = vsel %vm1046_vm7, %v2254_v48, %v1043_v40 }
 0xbb1   :  { %v1049_v44 = vmul.f32 %v1047_v42, %v1015_v11 }
 0xbb3   :  { %v1054_v45 = vmul.f32 %v2731_v32, %v1049_v44 }
 0xbb5   :  { %v2781_v52 = vadd.f32 %v2736_v39, %v1054_v45  ;;  %v1311_v47 = vpop.permute.xlu0 %1310 }
 0xbb7   :  { %2113 = vmatmul.msk.f32.gmra.mxu1 %vm64_vm0, %v2781_v52 }
 0xbbf   :  { %2118 = vmatmul.msk.f32.vlgmr.msrb.gmra.mxu1 %vm169_vm8, %v1167_v46 }
 0xbc7   :  { %2124 = vmatmul.msk.f32.vlgmr.msra.gmra.mxu1 %vm169_vm8, %v1311_v47 }
 0xbdc   :  { %v1130_v49 = vpop.xlane.xlu1 %1129 }
 0xbdd   :  { %v1131_v32 = vsub.f32 %v1127_v27, %v1130_v49 }
 0xbdf   :  { %v1132_v39 = vmul.f32 1.442695, %v1131_v32 }
 0xbe1   :  { %2255 = vpow2.f32 %v1132_v39 }
 0xbe7   :  { %v2256_v57 = vpop.eup %2255 }
 0xbe8   :  { %v1134_v59 = vsel %vm169_vm8, %v2256_v57, 0.0 }
 0xbf4   :  { %v1140_v54 = vpop.permute.xlu1 %1139 }
 0xbf5   :  { %1160 = vmatpush.msrb.mxu0 %v1140_v54 }
 0xbf7   :  { %2120 = vmatpush.xpose.msk.msra.mxu0 %vm169_vm8, %v1241_v20 }
 0xc34   :  { %v1096_v51 = vpop.f32.mrf.mxu1 }
 0xc35   :  { %v2788_v55 = vadd.f32 %v2197_v38, %v1096_v51 }
 0xc37   :  { %1449 = vrot.lane.b32.xlu0 %v2788_v55, %s3045_s5  ;;  %1451 = vrot.lane.b32.xlu2 %v2788_v55, %s2329_s20 }
 0xc38   :  { %1383 = vrot.lane.b32.xlu1 %v2788_v55, %s2327_s19 }
 0xc3c   :  { %v1191_v56 = vpop.f32.mrf.mxu1 }
 0xc3d   :  { %v1194_v58 = vmul.f32 0.35355338, %v1191_v56 }
 0xc3f   :  { %1595 = vrot.lane.b32.xlu2 %v2788_v55, %s3043_s3  ;;  %v1195_v60 = vadd.f32 %v1194_v58, %v2512_v1 }
 0xc40   :  { %1523 = vrot.lane.b32.xlu1 %v2788_v55, %s3042_s25 }
 0xc41   :  { %v1196_v63 = vsel %vm169_vm8, %v1195_v60, -inf }
 0xc44   :  { %v1335_v62 = vpop.f32.mrf.mxu1 }
 0xc45   :  { %v1338_v2 = vmul.f32 0.35355338, %v1335_v62 }
 0xc47   :  { %v1339_v3 = vadd.f32 %v1338_v2, %v2512_v1 }
 0xc48   :  { %1593 = vrot.lane.b32.xlu1 %v2788_v55, %s3046_s4 }
 0xc49   :  { %v1340_v4 = vsel %vm169_vm8, %v1339_v3, -inf }
 0xc61   :  { %1135 = vadd.xlane.f32.xlu0 %v1134_v59 }
 0xc68   :  { %1197 = vmax.xlane.f32.xlu2 %v1196_v63 }
 0xc72   :  { %1341 = vmax.xlane.f32.xlu1 %v1340_v4 }
 0xc75   :  { %1521 = vrot.lane.b32.xlu0 %v2788_v55, %s3044_s1 }
 0xc91   :  { %v1452_v6 = vpop.permute.xlu2 %1451 }
 0xc92   :  { %2129 = vmatpush.xpose.msk.msrb.mxu1 %vm169_vm8, %v1452_v6 }
 0xc99   :  { %v1596_v43 = vpop.permute.xlu2 %1595 }
 0xc9a   :  { %2135 = vmatpush.xpose.msk.msra.mxu1 %vm169_vm8, %v1596_v43 }
 0xca9   :  { %v1450_v7 = vpop.permute.xlu0 %1449 }
 0xcaa   :  { %v1384_v35 = vpop.permute.xlu1 %1383  ;;  %2130 = vmatmul.msk.f32.vlgmr.msrb.gmra.mxu1 %vm169_vm8, %v1450_v7 }
 0xcb2   :  { %v1524_v8 = vpop.permute.xlu1 %1523 }
 0xcba   :  { %v1594_v12 = vpop.permute.xlu1 %1593 }
 0xcbb   :  { %2136 = vmatmul.msk.f32.vlgmr.msra.gmra.mxu1 %vm169_vm8, %v1594_v12 }
 0xcd4   :  { %v1136_v13 = vpop.xlane.xlu0 %1135 }
 0xcd5   :  { %2257 = vrcp.f32 %v1136_v13 }
 0xcdb   :  { %v2258_v14 = vpop.eup %2257  ;;  %v1198_v17 = vpop.xlane.xlu2 %1197 }
 0xcdc   :  { %v1138_v38 = vmul.f32 %v2258_v14, %v2256_v57  ;;  %v1199_v20 = vsub.f32 %v1195_v60, %v1198_v17 }
 0xcde   :  { %2116 = vmatmul.msk.f32.vlgmr.msrb.gmra.mxu0 %vm169_vm8, %v1138_v38  ;;  %v1200_v53 = vmul.f32 1.442695, %v1199_v20 }
 0xcdf   :  { %2126 = vmatpush.xpose.msk.msrb.mxu0 %vm169_vm8, %v1384_v35 }
 0xce0   :  { %2259 = vpow2.f32 %v1200_v53 }
 0xce5   :  { %v1342_v23 = vpop.xlane.xlu1 %1341 }
 0xce6   :  { %2121 = vmatmul.msk.f32.vlgmr.msra.gmra.mxu0 %vm169_vm8, %v1239_v5  ;;  %v1343_v28 = vsub.f32 %v1339_v3, %v1342_v23  ;;  %v2260_v33 = vpop.eup %2259 }
 0xce7   :  { %2132 = vmatpush.xpose.msk.msra.mxu0 %vm169_vm8, %v1524_v8  ;;  %v1522_v41 = vpop.permute.xlu0 %1521  ;;  %v1202_v36 = vsel %vm169_vm8, %v2260_v33, 0.0 }
 0xce8   :  { %v1344_v31 = vmul.f32 1.442695, %v1343_v28 }
 0xcea   :  { %2261 = vpow2.f32 %v1344_v31 }
 0xcee   :  { %2127 = vmatmul.msk.f32.vlgmr.msrb.gmra.mxu0 %vm169_vm8, %v2788_v55 }
 0xcf0   :  { %v2262_v37 = vpop.eup %2261 }
 0xcf1   :  { %v1346_v40 = vsel %vm169_vm8, %v2262_v37, 0.0 }
 0xcf6   :  { %2133 = vmatmul.msk.f32.vlgmr.msra.gmra.mxu0 %vm169_vm8, %v1522_v41 }
 0xd27   :  { %v1474_v19 = vpop.f32.mrf.mxu1 }
 0xd28   :  { %v1477_v21 = vmul.f32 0.35355338, %v1474_v19 }
 0xd2a   :  { %v1478_v25 = vadd.f32 %v1477_v21, %v2572_v9 }
 0xd38   :  { %v1618_v26 = vpop.f32.mrf.mxu1 }
 0xd39   :  { %v1621_v29 = vmul.f32 0.35355338, %v1618_v26 }
 0xd3b   :  { %v1622_v48 = vadd.f32 %v1621_v29, %v2572_v9 }
 0xd3d   :  { %v1623_v34 = vsel %vm169_vm8, %v1622_v48, -inf }
 0xd5b   :  { %v1162_v15 = vpop.f32.mrf.mxu0 }
 0xd5c   :  { %1165 = vst.msk [vmem:[#allocation2] sm:$0xff] %vm169_vm8, %v1162_v15 }
 0xd63   :  { %v1263_v16 = vpop.f32.mrf.mxu0 }
 0xd64   :  { %v1266_v18 = vmul.f32 0.35355338, %v1263_v16 }
 0xd66   :  { %v1267_v0 = vadd.f32 %v1266_v18, %v2512_v1  ;;  %v1479_v1 = vsel %vm169_vm8, %v1478_v25, -inf }
 0xd68   :  { %v1268_v22 = vsel %vm169_vm8, %v1267_v0, -inf }
 0xd69   :  { %1269 = vmax.xlane.f32.xlu0 %v1268_v22 }
 0xd6b   :  { %v1406_v11 = vpop.f32.mrf.mxu0 }
 0xd6c   :  { %v1409_v24 = vmul.f32 0.35355338, %v1406_v11 }
 0xd6e   :  { %v1410_v27 = vadd.f32 %v1409_v24, %v2572_v9 }
 0xd70   :  { %v1411_v30 = vsel %vm169_vm8, %v1410_v27, -inf }
 0xd71   :  { %1412 = vmax.xlane.f32.xlu2 %v1411_v30  ;;  %1480 = vmax.xlane.f32.xlu0 %v1479_v1 }
 0xd73   :  { %v1546_v57 = vpop.f32.mrf.mxu0 }
 0xd74   :  { %v1549_v62 = vmul.f32 0.35355338, %v1546_v57 }
 0xd76   :  { %v1550_v4 = vadd.f32 %v1549_v62, %v2572_v9 }
 0xd78   :  { %v1551_v7 = vsel %vm169_vm8, %v1550_v4, -inf }
 0xd79   :  { %1624 = vmax.xlane.f32.xlu2 %v1623_v34  ;;  %1203 = vadd.xlane.f32.xlu0 %v1202_v36 }
 0xd81   :  { %1347 = vadd.xlane.f32.xlu2 %v1346_v40 }
 0xd8d   :  { %1207 = vrot.lane.b32.xlu0 %v2748_v50, %s2334_s27 }
 0xd95   :  { %1351 = vrot.lane.b32.xlu0 %v2748_v50, %s2335_s28 }
 0xd99   :  { %1279 = vrot.lane.b32.xlu2 %v2748_v50, %s2336_s29 }
 0xd9d   :  { %1422 = vrot.lane.b32.xlu0 %v2788_v55, %s3047_s21 }
 0xda1   :  { %1490 = vrot.lane.b32.xlu2 %v2788_v55, %s2334_s27 }
 0xda5   :  { %1562 = vrot.lane.b32.xlu0 %v2788_v55, %s2336_s29 }
 0xddc   :  { %v1270_v42 = vpop.xlane.xlu0 %1269 }
 0xddd   :  { %v1271_v59 = vsub.f32 %v1267_v0, %v1270_v42 }
 0xddf   :  { %v1272_v2 = vmul.f32 1.442695, %v1271_v59 }
 0xde4   :  { %v1413_v44 = vpop.xlane.xlu2 %1412  ;;  %v1481_v45 = vpop.xlane.xlu0 %1480 }
 0xde5   :  { %v1482_v46 = vsub.f32 %v1478_v25, %v1481_v45  ;;  %v1414_v43 = vsub.f32 %v1410_v27, %v1413_v44  ;;  %v2141_v45 = vld [vmem:[%s3010_s6 + $0x38] sm:$0xff] }
 0xde6   :  { %1695 = vmatpush.msrb.mxu0 %v2141_v45 }
 0xde7   :  { %v1483_v47 = vmul.f32 1.442695, %v1482_v46  ;;  %v1415_v8 = vmul.f32 1.442695, %v1414_v43  ;;  %v2140_v46 = vld [vmem:[%s3010_s6 + $0x30] sm:$0xff] }
 0xde8   :  { %1696 = vmatpush.msrb.mxu0 %v2140_v46 }
 0xde9   :  { %2263 = vpow2.f32 %v1483_v47  ;;  %v2139_v47 = vld [vmem:[%s3010_s6 + $0x28] sm:$0xff] }
 0xdea   :  { %1697 = vmatpush.msrb.mxu0 %v2139_v47 }
 0xdec   :  { %v1625_v49 = vpop.xlane.xlu2 %1624  ;;  %v1204_v39 = vpop.xlane.xlu0 %1203 }
 0xded   :  { %v1626_v54 = vsub.f32 %v1622_v48, %v1625_v49  ;;  %v2138_v49 = vld [vmem:[%s3010_s6 + $0x20] sm:$0xff] }
 0xdee   :  { %1698 = vmatpush.msrb.mxu0 %v2138_v49 }
 0xdef   :  { %v1627_v51 = vmul.f32 1.442695, %v1626_v54  ;;  %v2264_v32 = vpop.eup %2263 }
 0xdf0   :  { %v1485_v50 = vsel %vm169_vm8, %v2264_v32, 0.0 }
 0xdf1   :  { %2265 = vpow2.f32 %v1627_v51  ;;  %1486 = vadd.xlane.f32.xlu1 %v1485_v50 }
 0xdf2   :  { %2267 = vrcp.f32 %v1204_v39 }
 0xdf4   :  { %v1348_v56 = vpop.xlane.xlu2 %1347 }
 0xdf5   :  { %2269 = vrcp.f32 %v1348_v56 }
 0xdf6   :  { %2271 = vpow2.f32 %v1272_v2 }
 0xdf7   :  { %v2844_v58 = vpop.eup %2265  ;;  %2273 = vpow2.f32 %v1415_v8 }
 0xdf8   :  { %v1629_v60 = vsel %vm169_vm8, %v2844_v58, 0.0  ;;  %v2268_v63 = vpop.eup %2267 }
 0xdf9   :  { %1630 = vadd.xlane.f32.xlu1 %v1629_v60  ;;  %v1206_v5 = vmul.f32 %v2268_v63, %v2260_v33 }
 0xdfb   :  { %v2270_v35 = vpop.eup %2269 }
 0xdfc   :  { %v1280_v3 = vpop.permute.xlu2 %1279  ;;  %v2272_v12 = vpop.eup %2271  ;;  %v1350_v13 = vmul.f32 %v2270_v35, %v2262_v37 }
 0xdfd   :  { %1300 = vmatpush.msra.mxu2 %v1280_v3  ;;  %v1274_v9 = vsel %vm169_vm8, %v2272_v12, 0.0  ;;  %v2274_v41 = vpop.eup %2273 }
 0xdfe   :  { %v1417_v16 = vsel %vm169_vm8, %v2274_v41, 0.0 }
 0xdff   :  { %v1208_v6 = vpop.permute.xlu0 %1207 }
 0xe00   :  { %1228 = vmatpush.msra.mxu3 %v1208_v6 }
 0xe01   :  { %2119 = vmatmul.msk.f32.vlgmr.msra.gmra.mxu3 %vm169_vm8, %v1206_v5  ;;  %1552 = vmax.xlane.f32.xlu1 %v1551_v7 }
 0xe04   :  { %v1491_v38 = vpop.permute.xlu2 %1490 }
 0xe07   :  { %v1352_v14 = vpop.permute.xlu0 %1351 }
 0xe08   :  { %1372 = vmatpush.msrb.mxu3 %v1352_v14  ;;  %v2149_v14 = vld [vmem:[%s3014_s10 + $0x30] sm:$0xff] }
 0xe09   :  { %2125 = vmatmul.msk.f32.vlgmr.msrb.gmra.mxu3 %vm169_vm8, %v1350_v13  ;;  %1275 = vadd.xlane.f32.xlu1 %v1274_v9  ;;  %v2150_v13 = vld [vmem:[%s3014_s10 + $0x38] sm:$0xff] }
 0xe0a   :  { %1511 = vmatpush.msra.mxu3 %v1491_v38  ;;  %v2148_v38 = vld [vmem:[%s3014_s10 + $0x28] sm:$0xff] }
 0xe0f   :  { %v1423_v15 = vpop.permute.xlu0 %1422 }
 0xe10   :  { %1443 = vmatpush.msrb.mxu2 %v1423_v15 }
 0xe11   :  { %1418 = vadd.xlane.f32.xlu1 %v1417_v16 }
 0xe17   :  { %v1563_v28 = vpop.permute.xlu0 %1562 }
 0xe64   :  { %v1487_v17 = vpop.xlane.xlu1 %1486 }
 0xe65   :  { %2275 = vrcp.f32 %v1487_v17 }
 0xe6b   :  { %v2276_v18 = vpop.eup %2275 }
 0xe6c   :  { %v1489_v19 = vmul.f32 %v2276_v18, %v2264_v32  ;;  %v1631_v0 = vpop.xlane.xlu1 %1630 }
 0xe6e   :  { %2131 = vmatmul.msk.f32.vlgmr.msra.gmra.mxu3 %vm169_vm8, %v1489_v19 }
 0xe74   :  { %v1553_v20 = vpop.xlane.xlu1 %1552 }
 0xe75   :  { %v1554_v21 = vsub.f32 %v1550_v4, %v1553_v20 }
 0xe77   :  { %v1555_v22 = vmul.f32 1.442695, %v1554_v21 }
 0xe79   :  { %2277 = vpow2.f32 %v1555_v22 }
 0xe7c   :  { %v1276_v53 = vpop.xlane.xlu1 %1275 }
 0xe7d   :  { %2279 = vrcp.f32 %v1276_v53 }
 0xe7f   :  { %v2278_v11 = vpop.eup %2277 }
 0xe80   :  { %v1557_v23 = vsel %vm169_vm8, %v2278_v11, 0.0 }
 0xe81   :  { %1558 = vadd.xlane.f32.xlu1 %v1557_v23 }
 0xe83   :  { %v2280_v24 = vpop.eup %2279 }
 0xe84   :  { %v1230_v25 = vpop.f32.mrf.mxu3  ;;  %v1278_v26 = vmul.f32 %v2280_v24, %v2272_v12  ;;  %v1419_v27 = vpop.xlane.xlu1 %1418  ;;  %v2199_v24 = vld [vmem:[%s3012_s8 + $0x1] ss:$0 sm:$0xff] }
 0xe85   :  { %1234 = vrot.lane.b32.xlu2 %v1230_v25, %s2337_s30  ;;  %2281 = vrcp.f32 %v1419_v27  ;;  %v2200_v27 = vld [vmem:[%s3013_s9 + $0x1] ss:$0 sm:$0xff] }
 0xe86   :  { %2122 = vmatmul.msk.f32.vlgmr.msra.gmra.mxu2 %vm169_vm8, %v1278_v26 }
 0xe87   :  { %1583 = vmatpush.msra.mxu2 %v1563_v28 }
 0xe8b   :  { %v2282_v29 = vpop.eup %2281 }
 0xe8c   :  { %v1374_v30 = vpop.f32.mrf.mxu3  ;;  %v1421_v1 = vmul.f32 %v2282_v29, %v2274_v41 }
 0xe8d   :  { %1378 = vrot.lane.b32.xlu2 %v1374_v30, %s2339_s23 }
 0xe8e   :  { %2128 = vmatmul.msk.f32.vlgmr.msrb.gmra.mxu2 %vm169_vm8, %v1421_v1 }
 0xe8f   :  { %1794 = vmatpush.msrb.mxu2 %v2150_v13 }
 0xe91   :  { %1795 = vmatpush.msrb.mxu2 %v2149_v14 }
 0xe93   :  { %1796 = vmatpush.msrb.mxu2 %v2148_v38 }
 0xe9a   :  { %1634 = vrot.lane.b32.xlu1 %v2788_v55, %s2335_s28 }
 0xedf   :  { %v1235_v31 = vpop.permute.xlu2 %1234 }
 0xee0   :  { %1237 = vst.msk [vmem:[#allocation2] sm:$0xff] %vm306_vm9, %v1235_v31 }
 0xee7   :  { %v1379_v51 = vpop.permute.xlu2 %1378 }
 0xef1   :  { %v1513_v55 = vpop.f32.mrf.mxu3 }
 0xef4   :  { %v1559_v48 = vpop.xlane.xlu1 %1558 }
 0xef5   :  { %2283 = vrcp.f32 %v1559_v48 }
 0xef6   :  { %2285 = vrcp.f32 %v1631_v0 }
 0xefb   :  { %v2284_v33 = vpop.eup %2283 }
 0xefc   :  { %v1561_v34 = vmul.f32 %v2284_v33, %v2278_v11  ;;  %v2286_v36 = vpop.eup %2285 }
 0xefd   :  { %v1633_v40 = vmul.f32 %v2286_v36, %v2844_v58  ;;  %v2198_v58 = vld [vmem:[%s3011_s7 + $0x1] ss:$0 sm:$0xff] }
 0xefe   :  { %2134 = vmatmul.msk.f32.vlgmr.msra.gmra.mxu2 %vm169_vm8, %v1561_v34 }
 0xf09   :  { %v1302_v37 = vpop.f32.mrf.mxu2 }
 0xf0a   :  { %1306 = vrot.lane.b32.xlu0 %v1302_v37, %s2338_s0 }
 0xf0c   :  { %v1635_v42 = vpop.permute.xlu1 %1634 }
 0xf0d   :  { %1655 = vmatpush.msrb.mxu3 %v1635_v42 }
 0xf0e   :  { %2137 = vmatmul.msk.f32.vlgmr.msrb.gmra.mxu3 %vm169_vm8, %v1633_v40 }
 0xf11   :  { %v1445_v44 = vpop.f32.mrf.mxu2 }
 0xf12   :  { %1448 = vst.msk [vmem:[#allocation2 + $0x8] sm:$0xff] %vm169_vm8, %v1445_v44  ;;  %1517 = vrot.lane.b32.xlu0 %v1513_v55, %s2337_s30  ;;  %v2928_v55 = vld [vmem:[%s3015_s11 + $0x1] ss:$0 sm:$0xff]  ;;  %s2064_s30 = sshll.u32 %s3022_s18, 4  ;;  %s2065_s30 = int_to_ptr.hbm [resolvable:$true] %s2064_s30 }
 0xf7c   :  { %v1307_v54 = vpop.permute.xlu0 %1306 }
 0xf7d   :  { %1309 = vst.msk [vmem:[#allocation2] sm:$0xff] %vm379_vm10, %v1307_v54 }
 0xf7e   :  { %1381 = vst.msk [vmem:[#allocation2] sm:$0xff] %vm452_vm11, %v1379_v51 }
 0xf81   :  { %v1585_v32 = vpop.f32.mrf.mxu2 }
 0xf82   :  { %1589 = vrot.lane.b32.xlu2 %v1585_v32, %s2338_s0 }
 0xf84   :  { %v1518_v50 = vpop.permute.xlu0 %1517 }
 0xf85   :  { %1520 = vst.msk [vmem:[#allocation2 + $0x8] sm:$0xff] %vm306_vm9, %v1518_v50  ;;  %v1665_v39 = vld [vmem:[#allocation2] sm:$0xff]  ;;  %v2163_v50 = vld [vmem:[%s3016_s12 + $0x78] sm:$0xff] }
 0xf86   :  { %2143 = vmatmul.msk.f32.vlgmr.msrb.gmra.mxu0 %vm64_vm0, %v1665_v39  ;;  %1921 = vmatpush.msrb.mxu1 %v2163_v50 }
 0xf91   :  { %v1657_v56 = vpop.f32.mrf.mxu3 }
 0xf92   :  { %1661 = vrot.lane.b32.xlu0 %v1657_v56, %s2339_s23 }
 0xfdc   :  { %v1590_v57 = vpop.permute.xlu2 %1589 }
 0xfdd   :  { %1592 = vst.msk [vmem:[#allocation2 + $0x8] sm:$0xff] %vm379_vm10, %v1590_v57  ;;  %v2162_v57 = vld [vmem:[%s3016_s12 + $0x70] sm:$0xff] }
 0xfde   :  { %1922 = vmatpush.msrb.mxu1 %v2162_v57 }
0x1003   :  { %v1700_v59 = vpop.f32.mrf.mxu0 }
0x1004   :  { %v1701_v60 = vadd.f32 %v2198_v58, %v1700_v59  ;;  %v1662_v62 = vpop.permute.xlu0 %1661 }
0x1005   :  { %1664 = vst.msk [vmem:[#allocation2 + $0x8] sm:$0xff] %vm452_vm11, %v1662_v62 }
0x1006   :  { %v1706_v63 = vadd.f32 %v1701_v60, %v2740_v61  ;;  %v2161_v60 = vld [vmem:[%s3016_s12 + $0x68] sm:$0xff] }
0x1007   :  { %1923 = vmatpush.msrb.mxu1 %v2161_v60 }
0x1008   :  { %v1712_v2 = vsel %vm64_vm0, %v1706_v63, 0.0 }
0x1009   :  { %1713 = vadd.xlane.f32.xlu1 %v1712_v2  ;;  %v2160_v2 = vld [vmem:[%s3016_s12 + $0x60] sm:$0xff] }
0x100a   :  { %1924 = vmatpush.msrb.mxu1 %v2160_v2 }
0x100c   :  { %v1666_v3 = vld [vmem:[#allocation2 + $0x8] sm:$0xff] }
0x100d   :  { %2144 = vmatmul.msk.f32.gmra.mxu0 %vm64_vm0, %v1666_v3 }
0x107c   :  { %v1714_v4 = vpop.xlane.xlu1 %1713 }
0x107d   :  { %v1718_v5 = vmul.f32 %v1714_v4, %v2444_v10  ;;  %v2159_v4 = vld [vmem:[%s3016_s12 + $0x58] sm:$0xff] }
0x107e   :  { %1925 = vmatpush.msrb.mxu1 %v2159_v4 }
0x107f   :  { %v1720_v6 = vsub.f32 %v1706_v63, %v1718_v5 }
0x1081   :  { %v1722_v43 = vmul.f32 %v1720_v6, %v1720_v6 }
0x1083   :  { %v1724_v7 = vsel %vm64_vm0, %v1722_v43, 0.0  ;;  %v2158_v43 = vld [vmem:[%s3016_s12 + $0x50] sm:$0xff] }
0x1084   :  { %1725 = vadd.xlane.f32.xlu0 %v1724_v7  ;;  %1926 = vmatpush.msrb.mxu1 %v2158_v43  ;;  %v2202_v43 = vld [vmem:[%s3017_s13 + $0x1] ss:$0 sm:$0xff] }
0x108a   :  { %v1703_v35 = vpop.f32.mrf.mxu0 }
0x108b   :  { %v1704_v8 = vadd.f32 %v2198_v58, %v1703_v35  ;;  %v2157_v35 = vld [vmem:[%s3016_s12 + $0x48] sm:$0xff] }
0x108c   :  { %1927 = vmatpush.msrb.mxu1 %v2157_v35 }
0x108d   :  { %v1707_v12 = vadd.f32 %v1704_v8, %v2781_v52  ;;  %v2147_v52 = vld [vmem:[%s3014_s10 + $0x20] sm:$0xff] }
0x108e   :  { %1797 = vmatpush.msrb.mxu2 %v2147_v52 }
0x108f   :  { %v1715_v61 = vsel %vm64_vm0, %v1707_v12, 0.0 }
0x1090   :  { %1716 = vadd.xlane.f32.xlu2 %v1715_v61 }
0x10f7   :  { %v1726_v9 = vpop.xlane.xlu0 %1725 }
0x10f8   :  { %v1730_v41 = vmul.f32 %v1726_v9, %v2444_v10 }
0x10fa   :  { %v1732_v15 = vadd.f32 1e-12, %v1730_v41 }
0x10fc   :  { %2287 = vrsqrt.f32 %v1732_v15  ;;  %vm1740_vm9 = vweird.f32 %v1732_v15 }
0x1102   :  { %v2288_v16 = vpop.eup %2287 }
0x1103   :  { %v1735_v17 = vmul.f32 %v2288_v16, %v1732_v15  ;;  %v1717_v18 = vpop.xlane.xlu2 %1716  ;;  %vm1741_vm8 = vweird.f32 %v2288_v16 }
0x1104   :  { %v1719_v19 = vmul.f32 %v1717_v18, %v2444_v10  ;;  %vm1742_vm10 = vmor %vm1740_vm9, %vm1741_vm8 }
0x1105   :  { %v1736_v0 = vmul.f32 %v2288_v16, %v1735_v17 }
0x1106   :  { %v1721_v20 = vsub.f32 %v1707_v12, %v1719_v19  ;;  %v2156_v12 = vld [vmem:[%s3016_s12 + $0x40] sm:$0xff] }
0x1107   :  { %v1737_v21 = vmul.f32 0.5, %v1736_v0  ;;  %1928 = vmatpush.msrb.mxu1 %v2156_v12 }
0x1108   :  { %v1723_v22 = vmul.f32 %v1721_v20, %v1721_v20 }
0x1109   :  { %v1738_v53 = vsub.f32 1.5, %v1737_v21 }
0x110a   :  { %v1727_v11 = vsel %vm64_vm0, %v1723_v22, 0.0 }
0x110b   :  { %v1739_v23 = vmul.f32 %v2288_v16, %v1738_v53  ;;  %1728 = vadd.xlane.f32.xlu2 %v1727_v11 }
0x110d   :  { %v1743_v25 = vsel %vm1742_vm10, %v2288_v16, %v1739_v23 }
0x110e   :  { %v1754_v26 = vmul.f32 %v1743_v25, %v1720_v6 }
0x1110   :  { %v1759_v28 = vmul.f32 %v2199_v24, %v1754_v26 }
0x1112   :  { %v2920_v29 = vadd.f32 %v2200_v27, %v1759_v28 }
0x1114   :  { %2152 = vmatmul.msk.f32.vlgmr.msrb.gmra.mxu2 %vm64_vm0, %v2920_v29 }
0x117e   :  { %v1729_v30 = vpop.xlane.xlu2 %1728 }
0x117f   :  { %v1731_v1 = vmul.f32 %v1729_v30, %v2444_v10 }
0x1181   :  { %v1733_v31 = vadd.f32 1e-12, %v1731_v1 }
0x1183   :  { %2289 = vrsqrt.f32 %v1733_v31  ;;  %vm1750_vm12 = vweird.f32 %v1733_v31 }
0x1189   :  { %v2290_v48 = vpop.eup %2289 }
0x118a   :  { %v1745_v33 = vmul.f32 %v2290_v48, %v1733_v31  ;;  %vm1751_vm11 = vweird.f32 %v2290_v48 }
0x118b   :  { %vm1752_vm13 = vmor %vm1750_vm12, %vm1751_vm11 }
0x118c   :  { %v1746_v34 = vmul.f32 %v2290_v48, %v1745_v33 }
0x118e   :  { %v1747_v36 = vmul.f32 0.5, %v1746_v34 }
0x1190   :  { %v1748_v37 = vsub.f32 1.5, %v1747_v36 }
0x1192   :  { %v1749_v40 = vmul.f32 %v2290_v48, %v1748_v37 }
0x1194   :  { %v1753_v42 = vsel %vm1752_vm13, %v2290_v48, %v1749_v40  ;;  %vm2025_vm13 = vcmask 122880  }
0x1195   :  { %v1755_v44 = vmul.f32 %v1753_v42, %v1721_v20 }
0x1197   :  { %v1799_v45 = vpop.f32.mrf.mxu2  ;;  %v1760_v46 = vmul.f32 %v2199_v24, %v1755_v44 }
0x1198   :  { %v1800_v47 = vadd.f32 %v2928_v55, %v1799_v45 }
0x1199   :  { %v2931_v49 = vadd.f32 %v2200_v27, %v1760_v46 }
0x119a   :  { %v1807_v54 = vmul.f32 0.70710677, %v1800_v47  ;;  %v1805_v27 = vmul.f32 0.5, %v1800_v47 }
0x119b   :  { %2153 = vmatmul.msk.f32.gmra.mxu2 %vm64_vm0, %v2931_v49 }
0x119c   :  { %v1809_v51 = vmul.f32 %v1807_v54, %v1807_v54 }
0x119e   :  { %v1810_v32 = vmin.f32 %v1809_v51, 16.0 }
0x11a0   :  { %v1811_v39 = vmul.f32 2.1237322e-06, %v1810_v32  ;;  %v1822_v56 = vmul.f32 3.8918573e-05, %v1810_v32 }
0x11a2   :  { %v1812_v58 = vadd.f32 0.00028619796, %v1811_v39  ;;  %v1823_v59 = vadd.f32 0.001143296, %v1822_v56 }
0x11a4   :  { %v1813_v62 = vmul.f32 %v1812_v58, %v1810_v32  ;;  %v1824_v63 = vmul.f32 %v1823_v59, %v1810_v32 }
0x11a6   :  { %v1825_v3 = vadd.f32 0.014752088, %v1824_v63  ;;  %v1814_v5 = vadd.f32 0.0036580483, %v1813_v62 }
0x11a8   :  { %v1826_v6 = vmul.f32 %v1825_v3, %v1810_v32  ;;  %v1815_v8 = vmul.f32 %v1814_v5, %v1810_v32 }
0x11aa   :  { %v1827_v7 = vadd.f32 0.112945676, %v1826_v6  ;;  %v1816_v14 = vadd.f32 0.05243302, %v1815_v8 }
0x11ac   :  { %v1828_v61 = vmul.f32 %v1827_v7, %v1810_v32  ;;  %v1817_v9 = vmul.f32 %v1816_v14, %v1810_v32 }
0x11ae   :  { %v1829_v13 = vadd.f32 0.4994258, %v1828_v61  ;;  %v1818_v41 = vadd.f32 0.18741608, %v1817_v9 }
0x11b0   :  { %v1830_v38 = vmul.f32 %v1829_v13, %v1810_v32  ;;  %v1819_v16 = vmul.f32 %v1818_v41, %v1810_v32 }
0x11b2   :  { %v1831_v52 = vadd.f32 1.0, %v1830_v38  ;;  %v1820_v0 = vadd.f32 1.1283791, %v1819_v16 }
0x11b4   :  { %2291 = vrcp.f32 %v1831_v52  ;;  %v1843_v19 = vand.u32 2147483648, %v1831_v52  ;;  %v1841_v21 = vand.u32 2147483647, %v1831_v52  ;;  %vm1837_vm15 = vweird.f32 %v1831_v52 }
0x11b5   :  { %v1821_v11 = vmul.f32 %v1820_v0, %v1807_v54 }
0x11b6   :  { %v1844_v53 = vor.u32 1.1754944e-38, %v1843_v19  ;;  %vm1842_vm2 = vcmp.eq.f32.partialorder %v1841_v21, 8.507059e+37 }
0x11ba   :  { %v2292_v15 = vpop.eup %2291 }
0x11bb   :  { %v1833_v17 = vmul.f32 %v2292_v15, %v1831_v52  ;;  %vm1838_vm14 = vweird.f32 %v2292_v15 }
0x11bc   :  { %vm1839_vm1 = vmor %vm1837_vm15, %vm1838_vm14 }
0x11bd   :  { %v1834_v18 = vsub.f32 1.0, %v1833_v17 }
0x11bf   :  { %v1835_v20 = vmul.f32 %v2292_v15, %v1834_v18 }
0x11c1   :  { %v1836_v22 = vadd.f32 %v2292_v15, %v1835_v20 }
0x11c3   :  { %v1840_v23 = vsel %vm1839_vm1, %v2292_v15, %v1836_v22 }
0x11c4   :  { %v1845_v24 = vsel %vm1842_vm2, %v1844_v53, %v1840_v23  ;;  %v2000_v23 = vld [vmem:[%s3020_s16 + $0x18] sm:$0xff] }
0x11c5   :  { %v1846_v25 = vmul.f32 %v1845_v24, %v1821_v11  ;;  %2017 = vmatpush.msra.mxu3 %v2000_v23  ;;  %v1999_v24 = vld [vmem:[%s3020_s16 + $0x10] sm:$0xff] }
0x11c7   :  { %v2154_v26 = vclamps-f32 %v1846_v25, 1.0  ;;  %v1998_v25 = vld [vmem:[%s3020_s16 + $0x8] sm:$0xff]  ;;  %2018 = vmatpush.msra.mxu3 %v1999_v24 }
0x11c9   :  { %v1889_v28 = vadd.f32 1.0, %v2154_v26  ;;  %2019 = vmatpush.msra.mxu3 %v1998_v25 }
0x11cb   :  { %v1891_v30 = vmul.f32 %v1889_v28, %v1805_v27 }
0x11cd   :  { %2165 = vmatmul.msk.f32.vlgmr.msrb.gmra.mxu1 %vm972_vm4, %v1891_v30 }
0x121e   :  { %v1802_v1 = vpop.f32.mrf.mxu2 }
0x121f   :  { %v1803_v31 = vadd.f32 %v2928_v55, %v1802_v1 }
0x1221   :  { %v1808_v48 = vmul.f32 0.70710677, %v1803_v31  ;;  %v1806_v15 = vmul.f32 0.5, %v1803_v31 }
0x1223   :  { %v1849_v33 = vmul.f32 %v1808_v48, %v1808_v48 }
0x1225   :  { %v1850_v34 = vmin.f32 %v1849_v33, 16.0 }
0x1227   :  { %v1851_v36 = vmul.f32 2.1237322e-06, %v1850_v34  ;;  %v1862_v37 = vmul.f32 3.8918573e-05, %v1850_v34 }
0x1229   :  { %v1852_v40 = vadd.f32 0.00028619796, %v1851_v36  ;;  %v1863_v42 = vadd.f32 0.001143296, %v1862_v37 }
0x122b   :  { %v1853_v44 = vmul.f32 %v1852_v40, %v1850_v34  ;;  %v1864_v45 = vmul.f32 %v1863_v42, %v1850_v34 }
0x122d   :  { %v1865_v46 = vadd.f32 0.014752088, %v1864_v45  ;;  %v1854_v54 = vadd.f32 0.0036580483, %v1853_v44  ;;  %v2203_v45 = vld [vmem:[%s3018_s14 + $0x1] ss:$0 sm:$0xff] }
0x122f   :  { %v1866_v51 = vmul.f32 %v1865_v46, %v1850_v34  ;;  %v1855_v32 = vmul.f32 %v1854_v54, %v1850_v34 }
0x1231   :  { %v1867_v47 = vadd.f32 0.112945676, %v1866_v51  ;;  %v1856_v56 = vadd.f32 0.05243302, %v1855_v32  ;;  %v2204_v51 = vld [vmem:[%s3019_s15 + $0x1] ss:$0 sm:$0xff] }
0x1233   :  { %v1868_v50 = vmul.f32 %v1867_v47, %v1850_v34  ;;  %v1857_v55 = vmul.f32 %v1856_v56, %v1850_v34 }
0x1235   :  { %v1869_v39 = vadd.f32 0.4994258, %v1868_v50  ;;  %v1858_v59 = vadd.f32 0.18741608, %v1857_v55 }
0x1237   :  { %v1870_v57 = vmul.f32 %v1869_v39, %v1850_v34  ;;  %v1859_v62 = vmul.f32 %v1858_v59, %v1850_v34 }
0x1239   :  { %v1871_v58 = vadd.f32 1.0, %v1870_v57  ;;  %v1860_v4 = vadd.f32 1.1283791, %v1859_v62 }
0x123b   :  { %2293 = vrcp.f32 %v1871_v58  ;;  %v1883_v3 = vand.u32 2147483648, %v1871_v58  ;;  %v1881_v6 = vand.u32 2147483647, %v1871_v58  ;;  %vm1877_vm5 = vweird.f32 %v1871_v58 }
0x123c   :  { %v1861_v8 = vmul.f32 %v1860_v4, %v1808_v48 }
0x123d   :  { %v1884_v35 = vor.u32 1.1754944e-38, %v1883_v3  ;;  %vm1882_vm7 = vcmp.eq.f32.partialorder %v1881_v6, 8.507059e+37 }
0x1241   :  { %v2294_v60 = vpop.eup %2293 }
0x1242   :  { %v1873_v63 = vmul.f32 %v2294_v60, %v1871_v58  ;;  %vm1878_vm3 = vweird.f32 %v2294_v60 }
0x1243   :  { %vm1879_vm6 = vmor %vm1877_vm5, %vm1878_vm3 }
0x1244   :  { %v1874_v2 = vsub.f32 1.0, %v1873_v63 }
0x1246   :  { %v1875_v5 = vmul.f32 %v2294_v60, %v1874_v2 }
0x1248   :  { %v1876_v7 = vadd.f32 %v2294_v60, %v1875_v5  ;;  %v2001_v5 = vld [vmem:[%s3021_s17] sm:$0x1] }
0x124a   :  { %v1880_v12 = vsel %vm1879_vm6, %v2294_v60, %v1876_v7  ;;  %v1930_v61 = vpop.f32.mrf.mxu1 }
0x124b   :  { %v1885_v13 = vsel %vm1882_vm7, %v1884_v35, %v1880_v12  ;;  %v1931_v14 = vadd.f32 %v2202_v43, %v1930_v61  ;;  %v2032_v35 = vld [vmem:[%s3021_s17] sm:$0x1] }
0x124c   :  { %v1886_v38 = vmul.f32 %v1885_v13, %v1861_v8 }
0x124d   :  { %v1936_v52 = vadd.f32 %v1931_v14, %v2920_v29 }
0x124e   :  { %v2155_v9 = vclamps-f32 %v1886_v38, 1.0 }
0x124f   :  { %v1942_v41 = vsel %vm64_vm0, %v1936_v52, 0.0 }
0x1250   :  { %1943 = vadd.xlane.f32.xlu1 %v1942_v41  ;;  %v1890_v16 = vadd.f32 1.0, %v2155_v9 }
0x1252   :  { %v1892_v17 = vmul.f32 %v1890_v16, %v1806_v15 }
0x1254   :  { %2166 = vmatmul.msk.f32.gmra.mxu1 %vm972_vm4, %v1892_v17 }
0x12c3   :  { %v1944_v18 = vpop.xlane.xlu1 %1943 }
0x12c4   :  { %v1948_v19 = vmul.f32 %v1944_v18, %v2444_v10 }
0x12c6   :  { %v1950_v0 = vsub.f32 %v1936_v52, %v1948_v19 }
0x12c8   :  { %v1952_v20 = vmul.f32 %v1950_v0, %v1950_v0 }
0x12ca   :  { %v1954_v21 = vsel %vm64_vm0, %v1952_v20, 0.0 }
0x12cb   :  { %1955 = vadd.xlane.f32.xlu2 %v1954_v21 }
0x12d1   :  { %v1933_v22 = vpop.f32.mrf.mxu1 }
0x12d2   :  { %v1934_v53 = vadd.f32 %v2202_v43, %v1933_v22 }
0x12d4   :  { %v1937_v29 = vadd.f32 %v1934_v53, %v2931_v49  ;;  %v1997_v49 = vld [vmem:[%s3020_s16] sm:$0xff] }
0x12d5   :  { %2020 = vmatpush.msra.mxu3 %v1997_v49 }
0x12d6   :  { %v1945_v11 = vsel %vm64_vm0, %v1937_v29, 0.0 }
0x12d7   :  { %1946 = vadd.xlane.f32.xlu0 %v1945_v11  ;;  %2048 = vmatpush.msrb.mxu3 %v2000_v23 }
0x12d9   :  { %2049 = vmatpush.msrb.mxu3 %v1999_v24 }
0x12db   :  { %2050 = vmatpush.msrb.mxu3 %v1998_v25 }
0x12dd   :  { %2051 = vmatpush.msrb.mxu3 %v1997_v49 }
0x133e   :  { %v1956_v26 = vpop.xlane.xlu2 %1955 }
0x133f   :  { %v1960_v27 = vmul.f32 %v1956_v26, %v2444_v10 }
0x1341   :  { %v1962_v28 = vadd.f32 1e-12, %v1960_v27 }
0x1343   :  { %2295 = vrsqrt.f32 %v1962_v28  ;;  %vm1970_vm8 = vweird.f32 %v1962_v28 }
0x1349   :  { %v2296_v30 = vpop.eup %2295 }
0x134a   :  { %v1965_v1 = vmul.f32 %v2296_v30, %v1962_v28  ;;  %v1947_v31 = vpop.xlane.xlu0 %1946  ;;  %vm1971_vm4 = vweird.f32 %v2296_v30 }
0x134b   :  { %v1949_v48 = vmul.f32 %v1947_v31, %v2444_v10  ;;  %vm1972_vm9 = vmor %vm1970_vm8, %vm1971_vm4 }
0x134c   :  { %v1966_v33 = vmul.f32 %v2296_v30, %v1965_v1 }
0x134d   :  { %v1951_v34 = vsub.f32 %v1937_v29, %v1949_v48 }
0x134e   :  { %v1967_v36 = vmul.f32 0.5, %v1966_v33 }
0x134f   :  { %v1953_v37 = vmul.f32 %v1951_v34, %v1951_v34 }
0x1350   :  { %v1968_v40 = vsub.f32 1.5, %v1967_v36 }
0x1351   :  { %v1957_v42 = vsel %vm64_vm0, %v1953_v37, 0.0 }
0x1352   :  { %v1969_v44 = vmul.f32 %v2296_v30, %v1968_v40  ;;  %1958 = vadd.xlane.f32.xlu1 %v1957_v42 }
0x1354   :  { %v1973_v46 = vsel %vm1972_vm9, %v2296_v30, %v1969_v44 }
0x1355   :  { %v1984_v54 = vmul.f32 %v1973_v46, %v1950_v0 }
0x1357   :  { %v1989_v47 = vmul.f32 %v2203_v45, %v1984_v54 }
0x1359   :  { %v1994_v32 = vadd.f32 %v2204_v51, %v1989_v47 }
0x135b   :  { %v1996_v50 = vmax.f32 %v1994_v32, 0.0 }
0x135d   :  { %2169 = vmatmul.msk.f32.vlgmr.msra.gmra.mxu3 %vm64_vm0, %v1996_v50 }
0x13c5   :  { %v1959_v39 = vpop.xlane.xlu1 %1958 }
0x13c6   :  { %v1961_v56 = vmul.f32 %v1959_v39, %v2444_v10 }
0x13c8   :  { %v1963_v57 = vadd.f32 1e-12, %v1961_v56 }
0x13ca   :  { %2297 = vrsqrt.f32 %v1963_v57  ;;  %vm1980_vm11 = vweird.f32 %v1963_v57 }
0x13d0   :  { %v2298_v58 = vpop.eup %2297 }
0x13d1   :  { %v1975_v55 = vmul.f32 %v2298_v58, %v1963_v57  ;;  %vm1981_vm10 = vweird.f32 %v2298_v58 }
0x13d2   :  { %vm1982_vm12 = vmor %vm1980_vm11, %vm1981_vm10 }
0x13d3   :  { %v1976_v59 = vmul.f32 %v2298_v58, %v1975_v55 }
0x13d5   :  { %v1977_v60 = vmul.f32 0.5, %v1976_v59 }
0x13d7   :  { %v1978_v62 = vsub.f32 1.5, %v1977_v60 }
0x13d9   :  { %v1979_v63 = vmul.f32 %v2298_v58, %v1978_v62 }
0x13db   :  { %v1983_v2 = vsel %vm1982_vm12, %v2298_v58, %v1979_v63 }
0x13dc   :  { %v1985_v3 = vmul.f32 %v1983_v2, %v1951_v34 }
0x13de   :  { %v1990_v4 = vmul.f32 %v2203_v45, %v1985_v3 }
0x13e0   :  { %v2022_v6 = vpop.f32.mrf.mxu3  ;;  %v1995_v10 = vadd.f32 %v2204_v51, %v1990_v4 }
0x13e1   :  { %v2023_v43 = vadd.f32 %v2022_v6, %v2001_v5 }
0x13e2   :  { %v2027_v7 = vmax.f32 %v1995_v10, 0.0 }
0x13e3   :  { %2026 = vst.msk [vmem:[#allocation3] sm:$0x1] %vm2025_vm13, %v2023_v43 }
0x13e4   :  { %2170 = vmatmul.msk.f32.vlgmr.msrb.gmra.mxu3 %vm64_vm0, %v2027_v7 }
0x1467   :  { %v2053_v8 = vpop.f32.mrf.mxu3 }
0x1468   :  { %v2054_v12 = vadd.f32 %v2053_v8, %v2032_v35 }
0x146a   :  { %2056 = vst.msk [vmem:[#allocation3 + $0x1] sm:$0x1] %vm2025_vm13, %v2054_v12 }
0x146b   :  { %2067 = dma.vmem_to_hbm [thread:$0]  %s2063_s2, 32, %s2065_s30, [#allocation4]  }
0x146c   :  { %2323 = dma.done.wait [#allocation4], 32  }
0x146d   :  { %2324 = vsyncadd [#allocation4], 4294967264 }
0x146e   :  { %2072 = vsyncpa [#allocation4], 1 }

</bundles_post_ra>
